<compile_context>
chip_gen: v7x
topology: tpu7x:2x2x1
jax: 0.10.0
libtpu: 0.0.40
codegen_flags: <defaults>
</compile_context>

<pallas_src>
import functools
import math

import numpy as np
import jax
import jax.numpy as jnp
from jax.experimental import pallas as pl
from jax.experimental.pallas import tpu as pltpu

EMBED_DIM = 64          # small stand-in for the module's default 768
NUM_HEADS = 4           # small stand-in for the module's default 12
HEAD_DIM = EMBED_DIM // NUM_HEADS
LN_EPS = 1e-5


def mha_kernel(x_ref, gamma_ref, beta_ref,
               wq_ref, wk_ref, wv_ref,
               bq_ref, bk_ref, bv_ref,
               wo_ref, bo_ref,
               o_ref,
               q_scr, k_scr, v_scr, ctx_scr,
               *, seq_len, num_heads, head_dim, kv_block):
    """One grid step processes rows = batches_per_block * seq_len rows.

    x_ref         : (rows, E)  f32   (batch fused into rows; rows % seq_len == 0)
    gamma/beta    : (1, E)     f32
    wq/wk/wv/wo   : (E, E)     bf16, PyTorch (E_out, E_in) layout
                    (1/sqrt(head_dim) pre-folded into wq and bq)
    bq/bk/bv/bo   : (1, E)     f32
    o_ref         : (rows, E)
    q/k/v/ctx_scr : (rows, E)  bf16 VMEM scratch
    """
    rows, embed = x_ref.shape
    bpb = rows // seq_len                     # batches in this block (static)
    n_kv = seq_len // kv_block                # kv tiles per sequence (static)

    dn = (((1,), (1,)), ((), ()))             # contract dim 1 of both operands

    # ---- LayerNorm over E (f32 on VPU/EUP) ----
    x = x_ref[...].astype(jnp.float32)
    mean = jnp.mean(x, axis=-1, keepdims=True)
    cent = x - mean
    var = jnp.mean(cent * cent, axis=-1, keepdims=True)
    xn = cent * jax.lax.rsqrt(var + LN_EPS)
    xn = xn * gamma_ref[...] + beta_ref[...]
    xn_bf = xn.astype(jnp.bfloat16)

    # ---- QKV projections (== x @ W.T), staged to VMEM scratch as bf16 ----
    q_scr[...] = (jax.lax.dot_general(xn_bf, wq_ref[...], dn,
                                      preferred_element_type=jnp.float32)
                  + bq_ref[...]).astype(jnp.bfloat16)     # already scaled
    k_scr[...] = (jax.lax.dot_general(xn_bf, wk_ref[...], dn,
                                      preferred_element_type=jnp.float32)
                  + bk_ref[...]).astype(jnp.bfloat16)
    v_scr[...] = (jax.lax.dot_general(xn_bf, wv_ref[...], dn,
                                      preferred_element_type=jnp.float32)
                  + bv_ref[...]).astype(jnp.bfloat16)

    # ---- Flash attention per (batch-in-block, head) ----
    @pl.loop(0, bpb)
    def _batch(b):
        r0 = pl.multiple_of(b * seq_len, seq_len)
        for h in range(num_heads):            # static unroll (small H)
            lo = h * head_dim
            qh = q_scr[pl.ds(r0, seq_len), lo:lo + head_dim]      # (S, Dh) bf16

            def kv_step(j, carry):
                m_prev, l_prev, acc_prev = carry
                k0 = pl.multiple_of(r0 + j * kv_block, kv_block)
                kh = k_scr[pl.ds(k0, kv_block), lo:lo + head_dim]  # (tkv, Dh)
                vh = v_scr[pl.ds(k0, kv_block), lo:lo + head_dim]
                # scores (S, tkv); q already carries the 1/sqrt(Dh) factor
                s = jax.lax.dot_general(qh, kh, dn,
                                        preferred_element_type=jnp.float32)
                m_new = jnp.maximum(m_prev, jnp.max(s, axis=-1, keepdims=True))
                alpha = jnp.exp(m_prev - m_new)
                # TODO(synk): on v6e/v7x a bf16 exp roughly doubles EUP
                # throughput; keep f32 (v5e has no bf16 EUP) until re-validated.
                p = jnp.exp(s - m_new)
                l_new = alpha * l_prev + jnp.sum(p, axis=-1, keepdims=True)
                acc_new = alpha * acc_prev + jnp.dot(
                    p.astype(jnp.bfloat16), vh,
                    preferred_element_type=jnp.float32)
                return m_new, l_new, acc_new

            m0 = jnp.full((seq_len, 1), -jnp.inf, jnp.float32)
            l0 = jnp.zeros((seq_len, 1), jnp.float32)
            a0 = jnp.zeros((seq_len, head_dim), jnp.float32)
            _m_f, l_f, acc_f = jax.lax.fori_loop(0, n_kv, kv_step, (m0, l0, a0),
                                                 unroll=(n_kv <= 8))
            # Deferred softmax normalization: (S, Dh) multiply, not (S, S).
            inv = pl.reciprocal(l_f, approx=True)
            ctx_scr[pl.ds(r0, seq_len), lo:lo + head_dim] = (
                acc_f * inv).astype(jnp.bfloat16)

    # ---- single full-width (K = E) output projection: ctx @ Wo.T + bo ----
    out = jax.lax.dot_general(ctx_scr[...], wo_ref[...], dn,
                              preferred_element_type=jnp.float32) + bo_ref[...]
    o_ref[...] = out.astype(o_ref.dtype)


def prepare_params(gamma, beta, wq, wk, wv, bq, bk, bv, wo, bo, *, num_heads):
    """One-time parameter packing (outside the per-call path)."""
    E = gamma.shape[0]
    head_dim = E // num_heads
    scale = 1.0 / math.sqrt(head_dim)
    g2 = gamma.reshape(1, E).astype(jnp.float32)
    b2 = beta.reshape(1, E).astype(jnp.float32)
    wq_p = (wq * scale).astype(jnp.bfloat16)      # fold 1/sqrt(Dh) once
    wk_p = wk.astype(jnp.bfloat16)
    wv_p = wv.astype(jnp.bfloat16)
    bq_p = (bq * scale).reshape(1, E).astype(jnp.float32)
    bk_p = bk.reshape(1, E).astype(jnp.float32)
    bv_p = bv.reshape(1, E).astype(jnp.float32)
    wo_p = wo.astype(jnp.bfloat16)                # torch layout; contract axis 1
    bo_p = bo.reshape(1, E).astype(jnp.float32)
    return (g2, b2, wq_p, wk_p, wv_p, bq_p, bk_p, bv_p, wo_p, bo_p)


def _tpu_kind():
    try:
        return jax.devices()[0].device_kind.lower()
    except Exception:
        return ""


def _choose_tiling(batch, seq_len, kind):
    """Generation-aware row-block / kv-tile sizes."""
    newer = ("v6" in kind) or ("v7" in kind)
    multi_tc = "v7" in kind                        # only v7x has 2 TCs/chip
    row_target = 256 if newer else 128             # fill 256-deep MXU on v6e/v7x
    kv_target = 512 if "v6" in kind else 256       # v5e & v7x: smaller tkv

    bpb = max(1, row_target // seq_len)
    if multi_tc and batch > 1:
        bpb = max(1, min(bpb, batch // 2))         # >=2 grid steps only if 2 TCs
    bpb = min(bpb, batch)
    while batch % bpb:
        bpb -= 1

    kv_block = max(1, min(seq_len, kv_target))
    while seq_len % kv_block:
        kv_block -= 1
    return bpb, kv_block, multi_tc


def _vmem_limit_bytes(rows, E, seq_len, kv_block, kind):
    io = 2 * 2 * rows * E * 4                      # x + out slabs, double-buffered
    weights = 2 * (4 * E * E * 2 + 10 * E * 4)     # worst case double-buffered
    scratch = 4 * rows * E * 2                     # q/k/v/ctx bf16
    transient = 6 * rows * E * 4                   # xn + f32 qkv/out temporaries
    attn = 4 * seq_len * kv_block * 4 + 4 * seq_len * E * 4
    est = io + weights + scratch + transient + attn + (2 << 20)
    cap = (60 << 20) if "v7" in kind else (100 << 20)   # v7x: 64 MiB physical
    return int(min(max(est, 16 << 20), cap))


def _cost_estimate(B, S, E, H, Dh):
    flops = 8 * B * S * E * E + 4 * B * H * S * S * Dh + 10 * B * S * E
    transcendentals = B * H * S * S + 2 * B * S
    bytes_accessed = 2 * B * S * E * 4 + 4 * E * E * 2 + 10 * E * 4
    return pl.CostEstimate(flops=int(flops),
                           transcendentals=int(transcendentals),
                           bytes_accessed=int(bytes_accessed))


def mha_forward(x, params, *, num_heads=NUM_HEADS):
    """x: (B, S, E) f32; params from prepare_params (prepared once)."""
    B, S, E = x.shape
    head_dim = E // num_heads
    (g2, b2, wq_p, wk_p, wv_p, bq_p, bk_p, bv_p, wo_p, bo_p) = params

    kind = _tpu_kind()
    bpb, kv_block, _ = _choose_tiling(B, S, kind)
    rows_per_block = bpb * S
    grid = (B // bpb,)

    # Fuse batch into rows; at the real E=768 these slabs are lane-dense.
    x2 = x.reshape(B * S, E)

    kernel = functools.partial(mha_kernel, seq_len=S, num_heads=num_heads,
                               head_dim=head_dim, kv_block=kv_block)
    cost = _cost_estimate(B, S, E, num_heads, head_dim)
    vmem_limit = _vmem_limit_bytes(rows_per_block, E, S, kv_block, kind)

    def build(single_buffer_params):
        # Grid-invariant params: single-buffer (their index_map is constant).
        extra = ({"pipeline_mode": pl.Buffered(1)}
                 if single_buffer_params else {})
        row_spec = pl.BlockSpec((rows_per_block, E), lambda i: (i, 0))
        vec_spec = pl.BlockSpec((1, E), lambda i: (0, 0), **extra)
        mat_spec = pl.BlockSpec((E, E), lambda i: (0, 0), **extra)
        return pl.pallas_call(
            kernel,
            out_shape=jax.ShapeDtypeStruct((B * S, E), x.dtype),
            grid=grid,
            in_specs=[
                row_spec,                       # x (rows, E)
                vec_spec, vec_spec,             # gamma, beta
                mat_spec, mat_spec, mat_spec,   # Wq, Wk, Wv (bf16, torch layout)
                vec_spec, vec_spec, vec_spec,   # bq, bk, bv
                mat_spec, vec_spec,             # Wo (bf16, torch layout), bo
            ],
            out_specs=row_spec,
            scratch_shapes=[
                pltpu.VMEM((rows_per_block, E), jnp.bfloat16),   # q
                pltpu.VMEM((rows_per_block, E), jnp.bfloat16),   # k
                pltpu.VMEM((rows_per_block, E), jnp.bfloat16),   # v
                pltpu.VMEM((rows_per_block, E), jnp.bfloat16),   # ctx
            ],
            compiler_params=pltpu.CompilerParams(
                dimension_semantics=("parallel",),
                vmem_limit_bytes=vmem_limit),
            cost_estimate=cost,
        )

    args = (x2, g2, b2, wq_p, wk_p, wv_p, bq_p, bk_p, bv_p, wo_p, bo_p)
    try:
        out2 = jax.block_until_ready(build(True)(*args))
    except Exception:
        # Fallback if this JAX build rejects BlockSpec.pipeline_mode.
        out2 = build(False)(*args)
    return out2.reshape(B, S, E)


def reference(x, gamma, beta, wq, wk, wv, bq, bk, bv, wo, bo):
    """Pure-JAX f32 reference mirroring torch LayerNorm + MultiheadAttention."""
    B, S, E = x.shape
    mean = jnp.mean(x, -1, keepdims=True)
    var = jnp.mean((x - mean) ** 2, -1, keepdims=True)
    xn = (x - mean) / jnp.sqrt(var + LN_EPS) * gamma + beta
    q = xn @ wq.T + bq
    k = xn @ wk.T + bk
    v = xn @ wv.T + bv
    qh = q.reshape(B, S, NUM_HEADS, HEAD_DIM).transpose(0, 2, 1, 3)
    kh = k.reshape(B, S, NUM_HEADS, HEAD_DIM).transpose(0, 2, 1, 3)
    vh = v.reshape(B, S, NUM_HEADS, HEAD_DIM).transpose(0, 2, 1, 3)
    s = (qh @ kh.transpose(0, 1, 3, 2)) / math.sqrt(HEAD_DIM)
    p = jax.nn.softmax(s, axis=-1)
    ctx = (p @ vh).transpose(0, 2, 1, 3).reshape(B, S, E)
    return ctx @ wo.T + bo


if __name__ == "__main__":
    B, S, E = 2, 16, EMBED_DIM

    key = jax.random.PRNGKey(0)
    kx, kq, kk, kv, ko, kbq, kbk, kbv, kbo = jax.random.split(key, 9)

    x = jax.random.normal(kx, (B, S, E), dtype=jnp.float32)

    # Synthetic parameters with nn.LayerNorm / nn.MultiheadAttention shapes
    # (in_proj (3E, E) split into Wq/Wk/Wv, out_proj (E, E)).
    gamma = jnp.ones((E,), jnp.float32)
    beta = jnp.zeros((E,), jnp.float32)
    wq = 0.05 * jax.random.normal(kq, (E, E), dtype=jnp.float32)
    wk = 0.05 * jax.random.normal(kk, (E, E), dtype=jnp.float32)
    wv = 0.05 * jax.random.normal(kv, (E, E), dtype=jnp.float32)
    wo = 0.05 * jax.random.normal(ko, (E, E), dtype=jnp.float32)
    bq = 0.01 * jax.random.normal(kbq, (E,), dtype=jnp.float32)
    bk = 0.01 * jax.random.normal(kbk, (E,), dtype=jnp.float32)
    bv = 0.01 * jax.random.normal(kbv, (E,), dtype=jnp.float32)
    bo = 0.01 * jax.random.normal(kbo, (E,), dtype=jnp.float32)

    # Parameter packing happens once, outside the per-call forward path.
    params = prepare_params(gamma, beta, wq, wk, wv, bq, bk, bv, wo, bo,
                            num_heads=NUM_HEADS)

    out = mha_forward(x, params, num_heads=NUM_HEADS)
    out = jax.block_until_ready(out)

    ref = reference(x, gamma, beta, wq, wk, wv, bq, bk, bv, wo, bo)
    # Tolerance reflects bf16 MXU operands (f32 accumulation) + approx recip.
    np.testing.assert_allclose(np.asarray(out), np.asarray(ref),
                               rtol=2e-2, atol=2e-2)
    print("KERNEL_OK")
</pallas_src>

<mosaic_0001>
module attributes {stable_mosaic.version = 11 : i64} {
  func.func @mha_kernel(%arg0: i32, %arg1: memref<32x64xf32, #tpu.memory_space<vmem>>, %arg2: memref<1x64xf32, #tpu.memory_space<vmem>>, %arg3: memref<1x64xf32, #tpu.memory_space<vmem>>, %arg4: memref<64x64xbf16, #tpu.memory_space<vmem>>, %arg5: memref<64x64xbf16, #tpu.memory_space<vmem>>, %arg6: memref<64x64xbf16, #tpu.memory_space<vmem>>, %arg7: memref<1x64xf32, #tpu.memory_space<vmem>>, %arg8: memref<1x64xf32, #tpu.memory_space<vmem>>, %arg9: memref<1x64xf32, #tpu.memory_space<vmem>>, %arg10: memref<64x64xbf16, #tpu.memory_space<vmem>>, %arg11: memref<1x64xf32, #tpu.memory_space<vmem>>, %arg12: memref<32x64xf32, #tpu.memory_space<vmem>>, %arg13: memref<32x64xbf16, #tpu.memory_space<vmem>>, %arg14: memref<32x64xbf16, #tpu.memory_space<vmem>>, %arg15: memref<32x64xbf16, #tpu.memory_space<vmem>>, %arg16: memref<32x64xbf16, #tpu.memory_space<vmem>>) attributes {dimension_semantics = [#tpu.dimension_semantics<parallel>], iteration_bounds = array<i64: 1>, scalar_prefetch = 0 : i64, scratch_operands = 4 : i64, tpu.core_type = #tpu.core_type<tc>, window_params = [{transform_indices = @transform_0, window_bounds = array<i64: 32, 64>}, {pipeline_mode = #tpu.pipeline_mode<synchronous>, transform_indices = @transform_1, window_bounds = array<i64: 1, 64>}, {pipeline_mode = #tpu.pipeline_mode<synchronous>, transform_indices = @transform_2, window_bounds = array<i64: 1, 64>}, {pipeline_mode = #tpu.pipeline_mode<synchronous>, transform_indices = @transform_3, window_bounds = array<i64: 64, 64>}, {pipeline_mode = #tpu.pipeline_mode<synchronous>, transform_indices = @transform_4, window_bounds = array<i64: 64, 64>}, {pipeline_mode = #tpu.pipeline_mode<synchronous>, transform_indices = @transform_5, window_bounds = array<i64: 64, 64>}, {pipeline_mode = #tpu.pipeline_mode<synchronous>, transform_indices = @transform_6, window_bounds = array<i64: 1, 64>}, {pipeline_mode = #tpu.pipeline_mode<synchronous>, transform_indices = @transform_7, window_bounds = array<i64: 1, 64>}, {pipeline_mode = #tpu.pipeline_mode<synchronous>, transform_indices = @transform_8, window_bounds = array<i64: 1, 64>}, {pipeline_mode = #tpu.pipeline_mode<synchronous>, transform_indices = @transform_9, window_bounds = array<i64: 64, 64>}, {pipeline_mode = #tpu.pipeline_mode<synchronous>, transform_indices = @transform_10, window_bounds = array<i64: 1, 64>}, {transform_indices = @transform_11, window_bounds = array<i64: 32, 64>}]} {
    %c0 = arith.constant 0 : index
    %c0_0 = arith.constant 0 : index
    %0 = vector.load %arg1[%c0, %c0_0] : memref<32x64xf32, #tpu.memory_space<vmem>>, vector<32x64xf32>
    %cst = arith.constant dense<0.000000e+00> : vector<32xf32>
    %1 = vector.multi_reduction <add>, %0, %cst [1] : vector<32x64xf32> to vector<32xf32>
    %2 = vector.shape_cast %1 : vector<32xf32> to vector<32x1xf32>
    %cst_1 = arith.constant 6.400000e+01 : f32
    %3 = vector.broadcast %cst_1 : f32 to vector<32x1xf32>
    %4 = arith.divf %2, %3 : vector<32x1xf32>
    %5 = vector.broadcast %4 : vector<32x1xf32> to vector<32x64xf32>
    %6 = arith.subf %0, %5 : vector<32x64xf32>
    %7 = arith.mulf %6, %6 : vector<32x64xf32>
    %cst_2 = arith.constant dense<0.000000e+00> : vector<32xf32>
    %8 = vector.multi_reduction <add>, %7, %cst_2 [1] : vector<32x64xf32> to vector<32xf32>
    %9 = vector.shape_cast %8 : vector<32xf32> to vector<32x1xf32>
    %cst_3 = arith.constant 6.400000e+01 : f32
    %10 = vector.broadcast %cst_3 : f32 to vector<32x1xf32>
    %11 = arith.divf %9, %10 : vector<32x1xf32>
    %cst_4 = arith.constant 9.99999974E-6 : f32
    %12 = vector.broadcast %cst_4 : f32 to vector<32x1xf32>
    %13 = arith.addf %11, %12 : vector<32x1xf32>
    %14 = math.rsqrt %13 : vector<32x1xf32>
    %15 = vector.broadcast %14 : vector<32x1xf32> to vector<32x64xf32>
    %16 = arith.mulf %6, %15 : vector<32x64xf32>
    %c0_5 = arith.constant 0 : index
    %c0_6 = arith.constant 0 : index
    %17 = vector.load %arg2[%c0_5, %c0_6] : memref<1x64xf32, #tpu.memory_space<vmem>>, vector<1x64xf32>
    %18 = vector.broadcast %17 : vector<1x64xf32> to vector<32x64xf32>
    %19 = arith.mulf %16, %18 : vector<32x64xf32>
    %c0_7 = arith.constant 0 : index
    %c0_8 = arith.constant 0 : index
    %20 = vector.load %arg3[%c0_7, %c0_8] : memref<1x64xf32, #tpu.memory_space<vmem>>, vector<1x64xf32>
    %21 = vector.broadcast %20 : vector<1x64xf32> to vector<32x64xf32>
    %22 = arith.addf %19, %21 : vector<32x64xf32>
    %23 = arith.truncf %22 : vector<32x64xf32> to vector<32x64xbf16>
    %c0_9 = arith.constant 0 : index
    %c0_10 = arith.constant 0 : index
    %24 = vector.load %arg4[%c0_9, %c0_10] : memref<64x64xbf16, #tpu.memory_space<vmem>>, vector<64x64xbf16>
    %cst_11 = arith.constant dense<0.000000e+00> : vector<32x64xf32>
    %25 = tpu.matmul %23, %24, %cst_11 {dimension_numbers = #tpu.dot_dimension_numbers<[1], [1], [0], [0], [0, 0, 1, 0], [], []>} : vector<32x64xbf16>, vector<64x64xbf16>, vector<32x64xf32> -> vector<32x64xf32>
    %c0_12 = arith.constant 0 : index
    %c0_13 = arith.constant 0 : index
    %26 = vector.load %arg7[%c0_12, %c0_13] : memref<1x64xf32, #tpu.memory_space<vmem>>, vector<1x64xf32>
    %27 = vector.broadcast %26 : vector<1x64xf32> to vector<32x64xf32>
    %28 = arith.addf %25, %27 : vector<32x64xf32>
    %29 = arith.truncf %28 : vector<32x64xf32> to vector<32x64xbf16>
    %c0_14 = arith.constant 0 : index
    %c0_15 = arith.constant 0 : index
    %30 = vector.load %arg13[%c0_14, %c0_15] : memref<32x64xbf16, #tpu.memory_space<vmem>>, vector<32x64xbf16>
    tpu.vector_store %arg13[%c0_14, %c0_15], %29 {strides = array<i32>} : memref<32x64xbf16, #tpu.memory_space<vmem>>, vector<32x64xbf16>,
    %c0_16 = arith.constant 0 : index
    %c0_17 = arith.constant 0 : index
    %31 = vector.load %arg5[%c0_16, %c0_17] : memref<64x64xbf16, #tpu.memory_space<vmem>>, vector<64x64xbf16>
    %cst_18 = arith.constant dense<0.000000e+00> : vector<32x64xf32>
    %32 = tpu.matmul %23, %31, %cst_18 {dimension_numbers = #tpu.dot_dimension_numbers<[1], [1], [0], [0], [0, 0, 1, 0], [], []>} : vector<32x64xbf16>, vector<64x64xbf16>, vector<32x64xf32> -> vector<32x64xf32>
    %c0_19 = arith.constant 0 : index
    %c0_20 = arith.constant 0 : index
    %33 = vector.load %arg8[%c0_19, %c0_20] : memref<1x64xf32, #tpu.memory_space<vmem>>, vector<1x64xf32>
    %34 = vector.broadcast %33 : vector<1x64xf32> to vector<32x64xf32>
    %35 = arith.addf %32, %34 : vector<32x64xf32>
    %36 = arith.truncf %35 : vector<32x64xf32> to vector<32x64xbf16>
    %c0_21 = arith.constant 0 : index
    %c0_22 = arith.constant 0 : index
    %37 = vector.load %arg14[%c0_21, %c0_22] : memref<32x64xbf16, #tpu.memory_space<vmem>>, vector<32x64xbf16>
    tpu.vector_store %arg14[%c0_21, %c0_22], %36 {strides = array<i32>} : memref<32x64xbf16, #tpu.memory_space<vmem>>, vector<32x64xbf16>,
    %c0_23 = arith.constant 0 : index
    %c0_24 = arith.constant 0 : index
    %38 = vector.load %arg6[%c0_23, %c0_24] : memref<64x64xbf16, #tpu.memory_space<vmem>>, vector<64x64xbf16>
    %cst_25 = arith.constant dense<0.000000e+00> : vector<32x64xf32>
    %39 = tpu.matmul %23, %38, %cst_25 {dimension_numbers = #tpu.dot_dimension_numbers<[1], [1], [0], [0], [0, 0, 1, 0], [], []>} : vector<32x64xbf16>, vector<64x64xbf16>, vector<32x64xf32> -> vector<32x64xf32>
    %c0_26 = arith.constant 0 : index
    %c0_27 = arith.constant 0 : index
    %40 = vector.load %arg9[%c0_26, %c0_27] : memref<1x64xf32, #tpu.memory_space<vmem>>, vector<1x64xf32>
    %41 = vector.broadcast %40 : vector<1x64xf32> to vector<32x64xf32>
    %42 = arith.addf %39, %41 : vector<32x64xf32>
    %43 = arith.truncf %42 : vector<32x64xf32> to vector<32x64xbf16>
    %c0_28 = arith.constant 0 : index
    %c0_29 = arith.constant 0 : index
    %44 = vector.load %arg15[%c0_28, %c0_29] : memref<32x64xbf16, #tpu.memory_space<vmem>>, vector<32x64xbf16>
    tpu.vector_store %arg15[%c0_28, %c0_29], %43 {strides = array<i32>} : memref<32x64xbf16, #tpu.memory_space<vmem>>, vector<32x64xbf16>,
    %c0_i32 = arith.constant 0 : i32
    %c2_i32 = arith.constant 2 : i32
    %45 = arith.addi %c0_i32, %c2_i32 : i32
    %c1_i32 = arith.constant 1 : i32
    scf.for %arg17 = %c0_i32 to %45 step %c1_i32  : i32 {
      %c1_i32_40 = arith.constant 1 : i32
      %53 = arith.muli %arg17, %c1_i32_40 : i32
      %c0_i32_41 = arith.constant 0 : i32
      %54 = arith.addi %c0_i32_41, %53 : i32
      %c16_i32 = arith.constant 16 : i32
      %55 = arith.muli %54, %c16_i32 : i32
      %56 = tpu.assume_multiple %55, 16 : i32
      %57 = arith.index_cast %56 : i32 to index
      %c0_42 = arith.constant 0 : index
      %58 = vector.load %arg13[%57, %c0_42] : memref<32x64xbf16, #tpu.memory_space<vmem>>, vector<16x16xbf16>
      %cst_43 = arith.constant 0xFF800000 : f32
      %59 = vector.broadcast %cst_43 : f32 to vector<16x1xf32>
      %cst_44 = arith.constant 0.000000e+00 : f32
      %60 = vector.broadcast %cst_44 : f32 to vector<16x1xf32>
      %cst_45 = arith.constant 0.000000e+00 : f32
      %61 = vector.broadcast %cst_45 : f32 to vector<16x16xf32>
      %c0_i32_46 = arith.constant 0 : i32
      %c16_i32_47 = arith.constant 16 : i32
      %62 = arith.muli %c0_i32_46, %c16_i32_47 : i32
      %63 = arith.addi %56, %62 : i32
      %64 = tpu.assume_multiple %63, 16 : i32
      %65 = arith.index_cast %64 : i32 to index
      %c0_48 = arith.constant 0 : index
      %66 = vector.load %arg14[%65, %c0_48] : memref<32x64xbf16, #tpu.memory_space<vmem>>, vector<16x16xbf16>
      %67 = arith.index_cast %64 : i32 to index
      %c0_49 = arith.constant 0 : index
      %68 = vector.load %arg15[%67, %c0_49] : memref<32x64xbf16, #tpu.memory_space<vmem>>, vector<16x16xbf16>
      %cst_50 = arith.constant dense<0.000000e+00> : vector<16x16xf32>
      %69 = tpu.matmul %58, %66, %cst_50 {dimension_numbers = #tpu.dot_dimension_numbers<[1], [1], [0], [0], [0, 0, 1, 0], [], []>} : vector<16x16xbf16>, vector<16x16xbf16>, vector<16x16xf32> -> vector<16x16xf32>
      %cst_51 = arith.constant dense<0xFF800000> : vector<16xf32>
      %70 = vector.multi_reduction <maximumf>, %69, %cst_51 [1] : vector<16x16xf32> to vector<16xf32>
      %71 = vector.shape_cast %70 : vector<16xf32> to vector<16x1xf32>
      %72 = arith.maximumf %59, %71 : vector<16x1xf32>
      %73 = arith.subf %59, %72 : vector<16x1xf32>
      %74 = math.exp %73 : vector<16x1xf32>
      %75 = vector.broadcast %72 : vector<16x1xf32> to vector<16x16xf32>
      %76 = arith.subf %69, %75 : vector<16x16xf32>
      %77 = math.exp %76 : vector<16x16xf32>
      %78 = arith.mulf %74, %60 : vector<16x1xf32>
      %cst_52 = arith.constant dense<0.000000e+00> : vector<16xf32>
      %79 = vector.multi_reduction <add>, %77, %cst_52 [1] : vector<16x16xf32> to vector<16xf32>
      %80 = vector.shape_cast %79 : vector<16xf32> to vector<16x1xf32>
      %81 = arith.addf %78, %80 : vector<16x1xf32>
      %82 = vector.broadcast %74 : vector<16x1xf32> to vector<16x16xf32>
      %83 = arith.mulf %82, %61 : vector<16x16xf32>
      %84 = arith.truncf %77 : vector<16x16xf32> to vector<16x16xbf16>
      %cst_53 = arith.constant dense<0.000000e+00> : vector<16x16xf32>
      %85 = tpu.matmul %84, %68, %cst_53 {dimension_numbers = #tpu.dot_dimension_numbers<[1], [0], [0], [1], [0, 0, 1, 1], [], []>} : vector<16x16xbf16>, vector<16x16xbf16>, vector<16x16xf32> -> vector<16x16xf32>
      %86 = arith.addf %83, %85 : vector<16x16xf32>
      %c1_i32_54 = arith.constant 1 : i32
      %87 = tpu.reciprocal %81 {approx = true} : vector<16x1xf32> -> vector<16x1xf32>
      %88 = vector.broadcast %87 : vector<16x1xf32> to vector<16x16xf32>
      %89 = arith.mulf %86, %88 : vector<16x16xf32>
      %90 = arith.truncf %89 : vector<16x16xf32> to vector<16x16xbf16>
      %91 = arith.index_cast %56 : i32 to index
      %c0_55 = arith.constant 0 : index
      %92 = vector.load %arg16[%91, %c0_55] : memref<32x64xbf16, #tpu.memory_space<vmem>>, vector<16x16xbf16>
      tpu.vector_store %arg16[%91, %c0_55], %90 {strides = array<i32>} : memref<32x64xbf16, #tpu.memory_space<vmem>>, vector<16x16xbf16>,
      %93 = arith.index_cast %56 : i32 to index
      %c16 = arith.constant 16 : index
      %94 = vector.load %arg13[%93, %c16] : memref<32x64xbf16, #tpu.memory_space<vmem>>, vector<16x16xbf16>
      %cst_56 = arith.constant 0xFF800000 : f32
      %95 = vector.broadcast %cst_56 : f32 to vector<16x1xf32>
      %cst_57 = arith.constant 0.000000e+00 : f32
      %96 = vector.broadcast %cst_57 : f32 to vector<16x1xf32>
      %cst_58 = arith.constant 0.000000e+00 : f32
      %97 = vector.broadcast %cst_58 : f32 to vector<16x16xf32>
      %c0_i32_59 = arith.constant 0 : i32
      %c16_i32_60 = arith.constant 16 : i32
      %98 = arith.muli %c0_i32_59, %c16_i32_60 : i32
      %99 = arith.addi %56, %98 : i32
      %100 = tpu.assume_multiple %99, 16 : i32
      %101 = arith.index_cast %100 : i32 to index
      %c16_61 = arith.constant 16 : index
      %102 = vector.load %arg14[%101, %c16_61] : memref<32x64xbf16, #tpu.memory_space<vmem>>, vector<16x16xbf16>
      %103 = arith.index_cast %100 : i32 to index
      %c16_62 = arith.constant 16 : index
      %104 = vector.load %arg15[%103, %c16_62] : memref<32x64xbf16, #tpu.memory_space<vmem>>, vector<16x16xbf16>
      %cst_63 = arith.constant dense<0.000000e+00> : vector<16x16xf32>
      %105 = tpu.matmul %94, %102, %cst_63 {dimension_numbers = #tpu.dot_dimension_numbers<[1], [1], [0], [0], [0, 0, 1, 0], [], []>} : vector<16x16xbf16>, vector<16x16xbf16>, vector<16x16xf32> -> vector<16x16xf32>
      %cst_64 = arith.constant dense<0xFF800000> : vector<16xf32>
      %106 = vector.multi_reduction <maximumf>, %105, %cst_64 [1] : vector<16x16xf32> to vector<16xf32>
      %107 = vector.shape_cast %106 : vector<16xf32> to vector<16x1xf32>
      %108 = arith.maximumf %95, %107 : vector<16x1xf32>
      %109 = arith.subf %95, %108 : vector<16x1xf32>
      %110 = math.exp %109 : vector<16x1xf32>
      %111 = vector.broadcast %108 : vector<16x1xf32> to vector<16x16xf32>
      %112 = arith.subf %105, %111 : vector<16x16xf32>
      %113 = math.exp %112 : vector<16x16xf32>
      %114 = arith.mulf %110, %96 : vector<16x1xf32>
      %cst_65 = arith.constant dense<0.000000e+00> : vector<16xf32>
      %115 = vector.multi_reduction <add>, %113, %cst_65 [1] : vector<16x16xf32> to vector<16xf32>
      %116 = vector.shape_cast %115 : vector<16xf32> to vector<16x1xf32>
      %117 = arith.addf %114, %116 : vector<16x1xf32>
      %118 = vector.broadcast %110 : vector<16x1xf32> to vector<16x16xf32>
      %119 = arith.mulf %118, %97 : vector<16x16xf32>
      %120 = arith.truncf %113 : vector<16x16xf32> to vector<16x16xbf16>
      %cst_66 = arith.constant dense<0.000000e+00> : vector<16x16xf32>
      %121 = tpu.matmul %120, %104, %cst_66 {dimension_numbers = #tpu.dot_dimension_numbers<[1], [0], [0], [1], [0, 0, 1, 1], [], []>} : vector<16x16xbf16>, vector<16x16xbf16>, vector<16x16xf32> -> vector<16x16xf32>
      %122 = arith.addf %119, %121 : vector<16x16xf32>
      %c1_i32_67 = arith.constant 1 : i32
      %123 = tpu.reciprocal %117 {approx = true} : vector<16x1xf32> -> vector<16x1xf32>
      %124 = vector.broadcast %123 : vector<16x1xf32> to vector<16x16xf32>
      %125 = arith.mulf %122, %124 : vector<16x16xf32>
      %126 = arith.truncf %125 : vector<16x16xf32> to vector<16x16xbf16>
      %127 = arith.index_cast %56 : i32 to index
      %c16_68 = arith.constant 16 : index
      %128 = vector.load %arg16[%127, %c16_68] : memref<32x64xbf16, #tpu.memory_space<vmem>>, vector<16x16xbf16>
      tpu.vector_store %arg16[%127, %c16_68], %126 {strides = array<i32>} : memref<32x64xbf16, #tpu.memory_space<vmem>>, vector<16x16xbf16>,
      %129 = arith.index_cast %56 : i32 to index
      %c32 = arith.constant 32 : index
      %130 = vector.load %arg13[%129, %c32] : memref<32x64xbf16, #tpu.memory_space<vmem>>, vector<16x16xbf16>
      %cst_69 = arith.constant 0xFF800000 : f32
      %131 = vector.broadcast %cst_69 : f32 to vector<16x1xf32>
      %cst_70 = arith.constant 0.000000e+00 : f32
      %132 = vector.broadcast %cst_70 : f32 to vector<16x1xf32>
      %cst_71 = arith.constant 0.000000e+00 : f32
      %133 = vector.broadcast %cst_71 : f32 to vector<16x16xf32>
      %c0_i32_72 = arith.constant 0 : i32
      %c16_i32_73 = arith.constant 16 : i32
      %134 = arith.muli %c0_i32_72, %c16_i32_73 : i32
      %135 = arith.addi %56, %134 : i32
      %136 = tpu.assume_multiple %135, 16 : i32
      %137 = arith.index_cast %136 : i32 to index
      %c32_74 = arith.constant 32 : index
      %138 = vector.load %arg14[%137, %c32_74] : memref<32x64xbf16, #tpu.memory_space<vmem>>, vector<16x16xbf16>
      %139 = arith.index_cast %136 : i32 to index
      %c32_75 = arith.constant 32 : index
      %140 = vector.load %arg15[%139, %c32_75] : memref<32x64xbf16, #tpu.memory_space<vmem>>, vector<16x16xbf16>
      %cst_76 = arith.constant dense<0.000000e+00> : vector<16x16xf32>
      %141 = tpu.matmul %130, %138, %cst_76 {dimension_numbers = #tpu.dot_dimension_numbers<[1], [1], [0], [0], [0, 0, 1, 0], [], []>} : vector<16x16xbf16>, vector<16x16xbf16>, vector<16x16xf32> -> vector<16x16xf32>
      %cst_77 = arith.constant dense<0xFF800000> : vector<16xf32>
      %142 = vector.multi_reduction <maximumf>, %141, %cst_77 [1] : vector<16x16xf32> to vector<16xf32>
      %143 = vector.shape_cast %142 : vector<16xf32> to vector<16x1xf32>
      %144 = arith.maximumf %131, %143 : vector<16x1xf32>
      %145 = arith.subf %131, %144 : vector<16x1xf32>
      %146 = math.exp %145 : vector<16x1xf32>
      %147 = vector.broadcast %144 : vector<16x1xf32> to vector<16x16xf32>
      %148 = arith.subf %141, %147 : vector<16x16xf32>
      %149 = math.exp %148 : vector<16x16xf32>
      %150 = arith.mulf %146, %132 : vector<16x1xf32>
      %cst_78 = arith.constant dense<0.000000e+00> : vector<16xf32>
      %151 = vector.multi_reduction <add>, %149, %cst_78 [1] : vector<16x16xf32> to vector<16xf32>
      %152 = vector.shape_cast %151 : vector<16xf32> to vector<16x1xf32>
      %153 = arith.addf %150, %152 : vector<16x1xf32>
      %154 = vector.broadcast %146 : vector<16x1xf32> to vector<16x16xf32>
      %155 = arith.mulf %154, %133 : vector<16x16xf32>
      %156 = arith.truncf %149 : vector<16x16xf32> to vector<16x16xbf16>
      %cst_79 = arith.constant dense<0.000000e+00> : vector<16x16xf32>
      %157 = tpu.matmul %156, %140, %cst_79 {dimension_numbers = #tpu.dot_dimension_numbers<[1], [0], [0], [1], [0, 0, 1, 1], [], []>} : vector<16x16xbf16>, vector<16x16xbf16>, vector<16x16xf32> -> vector<16x16xf32>
      %158 = arith.addf %155, %157 : vector<16x16xf32>
      %c1_i32_80 = arith.constant 1 : i32
      %159 = tpu.reciprocal %153 {approx = true} : vector<16x1xf32> -> vector<16x1xf32>
      %160 = vector.broadcast %159 : vector<16x1xf32> to vector<16x16xf32>
      %161 = arith.mulf %158, %160 : vector<16x16xf32>
      %162 = arith.truncf %161 : vector<16x16xf32> to vector<16x16xbf16>
      %163 = arith.index_cast %56 : i32 to index
      %c32_81 = arith.constant 32 : index
      %164 = vector.load %arg16[%163, %c32_81] : memref<32x64xbf16, #tpu.memory_space<vmem>>, vector<16x16xbf16>
      tpu.vector_store %arg16[%163, %c32_81], %162 {strides = array<i32>} : memref<32x64xbf16, #tpu.memory_space<vmem>>, vector<16x16xbf16>,
      %165 = arith.index_cast %56 : i32 to index
      %c48 = arith.constant 48 : index
      %166 = vector.load %arg13[%165, %c48] : memref<32x64xbf16, #tpu.memory_space<vmem>>, vector<16x16xbf16>
      %cst_82 = arith.constant 0xFF800000 : f32
      %167 = vector.broadcast %cst_82 : f32 to vector<16x1xf32>
      %cst_83 = arith.constant 0.000000e+00 : f32
      %168 = vector.broadcast %cst_83 : f32 to vector<16x1xf32>
      %cst_84 = arith.constant 0.000000e+00 : f32
      %169 = vector.broadcast %cst_84 : f32 to vector<16x16xf32>
      %c0_i32_85 = arith.constant 0 : i32
      %c16_i32_86 = arith.constant 16 : i32
      %170 = arith.muli %c0_i32_85, %c16_i32_86 : i32
      %171 = arith.addi %56, %170 : i32
      %172 = tpu.assume_multiple %171, 16 : i32
      %173 = arith.index_cast %172 : i32 to index
      %c48_87 = arith.constant 48 : index
      %174 = vector.load %arg14[%173, %c48_87] : memref<32x64xbf16, #tpu.memory_space<vmem>>, vector<16x16xbf16>
      %175 = arith.index_cast %172 : i32 to index
      %c48_88 = arith.constant 48 : index
      %176 = vector.load %arg15[%175, %c48_88] : memref<32x64xbf16, #tpu.memory_space<vmem>>, vector<16x16xbf16>
      %cst_89 = arith.constant dense<0.000000e+00> : vector<16x16xf32>
      %177 = tpu.matmul %166, %174, %cst_89 {dimension_numbers = #tpu.dot_dimension_numbers<[1], [1], [0], [0], [0, 0, 1, 0], [], []>} : vector<16x16xbf16>, vector<16x16xbf16>, vector<16x16xf32> -> vector<16x16xf32>
      %cst_90 = arith.constant dense<0xFF800000> : vector<16xf32>
      %178 = vector.multi_reduction <maximumf>, %177, %cst_90 [1] : vector<16x16xf32> to vector<16xf32>
      %179 = vector.shape_cast %178 : vector<16xf32> to vector<16x1xf32>
      %180 = arith.maximumf %167, %179 : vector<16x1xf32>
      %181 = arith.subf %167, %180 : vector<16x1xf32>
      %182 = math.exp %181 : vector<16x1xf32>
      %183 = vector.broadcast %180 : vector<16x1xf32> to vector<16x16xf32>
      %184 = arith.subf %177, %183 : vector<16x16xf32>
      %185 = math.exp %184 : vector<16x16xf32>
      %186 = arith.mulf %182, %168 : vector<16x1xf32>
      %cst_91 = arith.constant dense<0.000000e+00> : vector<16xf32>
      %187 = vector.multi_reduction <add>, %185, %cst_91 [1] : vector<16x16xf32> to vector<16xf32>
      %188 = vector.shape_cast %187 : vector<16xf32> to vector<16x1xf32>
      %189 = arith.addf %186, %188 : vector<16x1xf32>
      %190 = vector.broadcast %182 : vector<16x1xf32> to vector<16x16xf32>
      %191 = arith.mulf %190, %169 : vector<16x16xf32>
      %192 = arith.truncf %185 : vector<16x16xf32> to vector<16x16xbf16>
      %cst_92 = arith.constant dense<0.000000e+00> : vector<16x16xf32>
      %193 = tpu.matmul %192, %176, %cst_92 {dimension_numbers = #tpu.dot_dimension_numbers<[1], [0], [0], [1], [0, 0, 1, 1], [], []>} : vector<16x16xbf16>, vector<16x16xbf16>, vector<16x16xf32> -> vector<16x16xf32>
      %194 = arith.addf %191, %193 : vector<16x16xf32>
      %c1_i32_93 = arith.constant 1 : i32
      %195 = tpu.reciprocal %189 {approx = true} : vector<16x1xf32> -> vector<16x1xf32>
      %196 = vector.broadcast %195 : vector<16x1xf32> to vector<16x16xf32>
      %197 = arith.mulf %194, %196 : vector<16x16xf32>
      %198 = arith.truncf %197 : vector<16x16xf32> to vector<16x16xbf16>
      %199 = arith.index_cast %56 : i32 to index
      %c48_94 = arith.constant 48 : index
      %200 = vector.load %arg16[%199, %c48_94] : memref<32x64xbf16, #tpu.memory_space<vmem>>, vector<16x16xbf16>
      tpu.vector_store %arg16[%199, %c48_94], %198 {strides = array<i32>} : memref<32x64xbf16, #tpu.memory_space<vmem>>, vector<16x16xbf16>,
    }
    %c2_i32_30 = arith.constant 2 : i32
    %c0_31 = arith.constant 0 : index
    %c0_32 = arith.constant 0 : index
    %46 = vector.load %arg16[%c0_31, %c0_32] : memref<32x64xbf16, #tpu.memory_space<vmem>>, vector<32x64xbf16>
    %c0_33 = arith.constant 0 : index
    %c0_34 = arith.constant 0 : index
    %47 = vector.load %arg10[%c0_33, %c0_34] : memref<64x64xbf16, #tpu.memory_space<vmem>>, vector<64x64xbf16>
    %cst_35 = arith.constant dense<0.000000e+00> : vector<32x64xf32>
    %48 = tpu.matmul %46, %47, %cst_35 {dimension_numbers = #tpu.dot_dimension_numbers<[1], [1], [0], [0], [0, 0, 1, 0], [], []>} : vector<32x64xbf16>, vector<64x64xbf16>, vector<32x64xf32> -> vector<32x64xf32>
    %c0_36 = arith.constant 0 : index
    %c0_37 = arith.constant 0 : index
    %49 = vector.load %arg11[%c0_36, %c0_37] : memref<1x64xf32, #tpu.memory_space<vmem>>, vector<1x64xf32>
    %50 = vector.broadcast %49 : vector<1x64xf32> to vector<32x64xf32>
    %51 = arith.addf %48, %50 : vector<32x64xf32>
    %c0_38 = arith.constant 0 : index
    %c0_39 = arith.constant 0 : index
    %52 = vector.load %arg12[%c0_38, %c0_39] : memref<32x64xf32, #tpu.memory_space<vmem>>, vector<32x64xf32>
    tpu.vector_store %arg12[%c0_38, %c0_39], %51 {strides = array<i32>} : memref<32x64xf32, #tpu.memory_space<vmem>>, vector<32x64xf32>,
    return
  }
  func.func @transform_0(%arg0: i32) -> (i32, i32) {
    %c0_i32 = arith.constant 0 : i32
    %c0_i32_0 = arith.constant 0 : i32
    return %arg0, %c0_i32 : i32, i32
  }
  func.func @transform_1(%arg0: i32) -> (i32, i32) {
    %c0_i32 = arith.constant 0 : i32
    %c0_i32_0 = arith.constant 0 : i32
    %c0_i32_1 = arith.constant 0 : i32
    return %c0_i32, %c0_i32_0 : i32, i32
  }
  func.func @transform_2(%arg0: i32) -> (i32, i32) {
    %c0_i32 = arith.constant 0 : i32
    %c0_i32_0 = arith.constant 0 : i32
    %c0_i32_1 = arith.constant 0 : i32
    return %c0_i32, %c0_i32_0 : i32, i32
  }
  func.func @transform_3(%arg0: i32) -> (i32, i32) {
    %c0_i32 = arith.constant 0 : i32
    %c0_i32_0 = arith.constant 0 : i32
    %c0_i32_1 = arith.constant 0 : i32
    return %c0_i32, %c0_i32_0 : i32, i32
  }
  func.func @transform_4(%arg0: i32) -> (i32, i32) {
    %c0_i32 = arith.constant 0 : i32
    %c0_i32_0 = arith.constant 0 : i32
    %c0_i32_1 = arith.constant 0 : i32
    return %c0_i32, %c0_i32_0 : i32, i32
  }
  func.func @transform_5(%arg0: i32) -> (i32, i32) {
    %c0_i32 = arith.constant 0 : i32
    %c0_i32_0 = arith.constant 0 : i32
    %c0_i32_1 = arith.constant 0 : i32
    return %c0_i32, %c0_i32_0 : i32, i32
  }
  func.func @transform_6(%arg0: i32) -> (i32, i32) {
    %c0_i32 = arith.constant 0 : i32
    %c0_i32_0 = arith.constant 0 : i32
    %c0_i32_1 = arith.constant 0 : i32
    return %c0_i32, %c0_i32_0 : i32, i32
  }
  func.func @transform_7(%arg0: i32) -> (i32, i32) {
    %c0_i32 = arith.constant 0 : i32
    %c0_i32_0 = arith.constant 0 : i32
    %c0_i32_1 = arith.constant 0 : i32
    return %c0_i32, %c0_i32_0 : i32, i32
  }
  func.func @transform_8(%arg0: i32) -> (i32, i32) {
    %c0_i32 = arith.constant 0 : i32
    %c0_i32_0 = arith.constant 0 : i32
    %c0_i32_1 = arith.constant 0 : i32
    return %c0_i32, %c0_i32_0 : i32, i32
  }
  func.func @transform_9(%arg0: i32) -> (i32, i32) {
    %c0_i32 = arith.constant 0 : i32
    %c0_i32_0 = arith.constant 0 : i32
    %c0_i32_1 = arith.constant 0 : i32
    return %c0_i32, %c0_i32_0 : i32, i32
  }
  func.func @transform_10(%arg0: i32) -> (i32, i32) {
    %c0_i32 = arith.constant 0 : i32
    %c0_i32_0 = arith.constant 0 : i32
    %c0_i32_1 = arith.constant 0 : i32
    return %c0_i32, %c0_i32_0 : i32, i32
  }
  func.func @transform_11(%arg0: i32) -> (i32, i32) {
    %c0_i32 = arith.constant 0 : i32
    %c0_i32_0 = arith.constant 0 : i32
    return %arg0, %c0_i32 : i32, i32
  }
}

module attributes {stable_mosaic.version = 11 : i64} {
  func.func @mha_kernel(%arg0: i32, %arg1: memref<32x64xf32, #tpu.memory_space<vmem>>, %arg2: memref<1x64xf32, #tpu.memory_space<vmem>>, %arg3: memref<1x64xf32, #tpu.memory_space<vmem>>, %arg4: memref<64x64xbf16, #tpu.memory_space<vmem>>, %arg5: memref<64x64xbf16, #tpu.memory_space<vmem>>, %arg6: memref<64x64xbf16, #tpu.memory_space<vmem>>, %arg7: memref<1x64xf32, #tpu.memory_space<vmem>>, %arg8: memref<1x64xf32, #tpu.memory_space<vmem>>, %arg9: memref<1x64xf32, #tpu.memory_space<vmem>>, %arg10: memref<64x64xbf16, #tpu.memory_space<vmem>>, %arg11: memref<1x64xf32, #tpu.memory_space<vmem>>, %arg12: memref<32x64xf32, #tpu.memory_space<vmem>>, %arg13: memref<32x64xbf16, #tpu.memory_space<vmem>>, %arg14: memref<32x64xbf16, #tpu.memory_space<vmem>>, %arg15: memref<32x64xbf16, #tpu.memory_space<vmem>>, %arg16: memref<32x64xbf16, #tpu.memory_space<vmem>>) attributes {dimension_semantics = [#tpu.dimension_semantics<parallel>], iteration_bounds = array<i64: 1>, scalar_prefetch = 0 : i64, scratch_operands = 4 : i64, tpu.core_type = #tpu.core_type<tc>, window_params = [{transform_indices = @transform_0, window_bounds = array<i64: 32, 64>}, {pipeline_mode = #tpu.pipeline_mode<synchronous>, transform_indices = @transform_1, window_bounds = array<i64: 1, 64>}, {pipeline_mode = #tpu.pipeline_mode<synchronous>, transform_indices = @transform_2, window_bounds = array<i64: 1, 64>}, {pipeline_mode = #tpu.pipeline_mode<synchronous>, transform_indices = @transform_3, window_bounds = array<i64: 64, 64>}, {pipeline_mode = #tpu.pipeline_mode<synchronous>, transform_indices = @transform_4, window_bounds = array<i64: 64, 64>}, {pipeline_mode = #tpu.pipeline_mode<synchronous>, transform_indices = @transform_5, window_bounds = array<i64: 64, 64>}, {pipeline_mode = #tpu.pipeline_mode<synchronous>, transform_indices = @transform_6, window_bounds = array<i64: 1, 64>}, {pipeline_mode = #tpu.pipeline_mode<synchronous>, transform_indices = @transform_7, window_bounds = array<i64: 1, 64>}, {pipeline_mode = #tpu.pipeline_mode<synchronous>, transform_indices = @transform_8, window_bounds = array<i64: 1, 64>}, {pipeline_mode = #tpu.pipeline_mode<synchronous>, transform_indices = @transform_9, window_bounds = array<i64: 64, 64>}, {pipeline_mode = #tpu.pipeline_mode<synchronous>, transform_indices = @transform_10, window_bounds = array<i64: 1, 64>}, {transform_indices = @transform_11, window_bounds = array<i64: 32, 64>}]} {
    %c0 = arith.constant 0 : index
    %c0_0 = arith.constant 0 : index
    %0 = vector.load %arg1[%c0, %c0_0] : memref<32x64xf32, #tpu.memory_space<vmem>>, vector<32x64xf32>
    %cst = arith.constant dense<0.000000e+00> : vector<32xf32>
    %1 = vector.multi_reduction <add>, %0, %cst [1] : vector<32x64xf32> to vector<32xf32>
    %2 = vector.shape_cast %1 : vector<32xf32> to vector<32x1xf32>
    %cst_1 = arith.constant 6.400000e+01 : f32
    %3 = vector.broadcast %cst_1 : f32 to vector<32x1xf32>
    %4 = arith.divf %2, %3 : vector<32x1xf32>
    %5 = vector.broadcast %4 : vector<32x1xf32> to vector<32x64xf32>
    %6 = arith.subf %0, %5 : vector<32x64xf32>
    %7 = arith.mulf %6, %6 : vector<32x64xf32>
    %cst_2 = arith.constant dense<0.000000e+00> : vector<32xf32>
    %8 = vector.multi_reduction <add>, %7, %cst_2 [1] : vector<32x64xf32> to vector<32xf32>
    %9 = vector.shape_cast %8 : vector<32xf32> to vector<32x1xf32>
    %cst_3 = arith.constant 6.400000e+01 : f32
    %10 = vector.broadcast %cst_3 : f32 to vector<32x1xf32>
    %11 = arith.divf %9, %10 : vector<32x1xf32>
    %cst_4 = arith.constant 9.99999974E-6 : f32
    %12 = vector.broadcast %cst_4 : f32 to vector<32x1xf32>
    %13 = arith.addf %11, %12 : vector<32x1xf32>
    %14 = math.rsqrt %13 : vector<32x1xf32>
    %15 = vector.broadcast %14 : vector<32x1xf32> to vector<32x64xf32>
    %16 = arith.mulf %6, %15 : vector<32x64xf32>
    %c0_5 = arith.constant 0 : index
    %c0_6 = arith.constant 0 : index
    %17 = vector.load %arg2[%c0_5, %c0_6] : memref<1x64xf32, #tpu.memory_space<vmem>>, vector<1x64xf32>
    %18 = vector.broadcast %17 : vector<1x64xf32> to vector<32x64xf32>
    %19 = arith.mulf %16, %18 : vector<32x64xf32>
    %c0_7 = arith.constant 0 : index
    %c0_8 = arith.constant 0 : index
    %20 = vector.load %arg3[%c0_7, %c0_8] : memref<1x64xf32, #tpu.memory_space<vmem>>, vector<1x64xf32>
    %21 = vector.broadcast %20 : vector<1x64xf32> to vector<32x64xf32>
    %22 = arith.addf %19, %21 : vector<32x64xf32>
    %23 = arith.truncf %22 : vector<32x64xf32> to vector<32x64xbf16>
    %c0_9 = arith.constant 0 : index
    %c0_10 = arith.constant 0 : index
    %24 = vector.load %arg4[%c0_9, %c0_10] : memref<64x64xbf16, #tpu.memory_space<vmem>>, vector<64x64xbf16>
    %cst_11 = arith.constant dense<0.000000e+00> : vector<32x64xf32>
    %25 = tpu.matmul %23, %24, %cst_11 {dimension_numbers = #tpu.dot_dimension_numbers<[1], [1], [0], [0], [0, 0, 1, 0], [], []>} : vector<32x64xbf16>, vector<64x64xbf16>, vector<32x64xf32> -> vector<32x64xf32>
    %c0_12 = arith.constant 0 : index
    %c0_13 = arith.constant 0 : index
    %26 = vector.load %arg7[%c0_12, %c0_13] : memref<1x64xf32, #tpu.memory_space<vmem>>, vector<1x64xf32>
    %27 = vector.broadcast %26 : vector<1x64xf32> to vector<32x64xf32>
    %28 = arith.addf %25, %27 : vector<32x64xf32>
    %29 = arith.truncf %28 : vector<32x64xf32> to vector<32x64xbf16>
    %c0_14 = arith.constant 0 : index
    %c0_15 = arith.constant 0 : index
    %30 = vector.load %arg13[%c0_14, %c0_15] : memref<32x64xbf16, #tpu.memory_space<vmem>>, vector<32x64xbf16>
    tpu.vector_store %arg13[%c0_14, %c0_15], %29 {strides = array<i32>} : memref<32x64xbf16, #tpu.memory_space<vmem>>, vector<32x64xbf16>,
    %c0_16 = arith.constant 0 : index
    %c0_17 = arith.constant 0 : index
    %31 = vector.load %arg5[%c0_16, %c0_17] : memref<64x64xbf16, #tpu.memory_space<vmem>>, vector<64x64xbf16>
    %cst_18 = arith.constant dense<0.000000e+00> : vector<32x64xf32>
    %32 = tpu.matmul %23, %31, %cst_18 {dimension_numbers = #tpu.dot_dimension_numbers<[1], [1], [0], [0], [0, 0, 1, 0], [], []>} : vector<32x64xbf16>, vector<64x64xbf16>, vector<32x64xf32> -> vector<32x64xf32>
    %c0_19 = arith.constant 0 : index
    %c0_20 = arith.constant 0 : index
    %33 = vector.load %arg8[%c0_19, %c0_20] : memref<1x64xf32, #tpu.memory_space<vmem>>, vector<1x64xf32>
    %34 = vector.broadcast %33 : vector<1x64xf32> to vector<32x64xf32>
    %35 = arith.addf %32, %34 : vector<32x64xf32>
    %36 = arith.truncf %35 : vector<32x64xf32> to vector<32x64xbf16>
    %c0_21 = arith.constant 0 : index
    %c0_22 = arith.constant 0 : index
    %37 = vector.load %arg14[%c0_21, %c0_22] : memref<32x64xbf16, #tpu.memory_space<vmem>>, vector<32x64xbf16>
    tpu.vector_store %arg14[%c0_21, %c0_22], %36 {strides = array<i32>} : memref<32x64xbf16, #tpu.memory_space<vmem>>, vector<32x64xbf16>,
    %c0_23 = arith.constant 0 : index
    %c0_24 = arith.constant 0 : index
    %38 = vector.load %arg6[%c0_23, %c0_24] : memref<64x64xbf16, #tpu.memory_space<vmem>>, vector<64x64xbf16>
    %cst_25 = arith.constant dense<0.000000e+00> : vector<32x64xf32>
    %39 = tpu.matmul %23, %38, %cst_25 {dimension_numbers = #tpu.dot_dimension_numbers<[1], [1], [0], [0], [0, 0, 1, 0], [], []>} : vector<32x64xbf16>, vector<64x64xbf16>, vector<32x64xf32> -> vector<32x64xf32>
    %c0_26 = arith.constant 0 : index
    %c0_27 = arith.constant 0 : index
    %40 = vector.load %arg9[%c0_26, %c0_27] : memref<1x64xf32, #tpu.memory_space<vmem>>, vector<1x64xf32>
    %41 = vector.broadcast %40 : vector<1x64xf32> to vector<32x64xf32>
    %42 = arith.addf %39, %41 : vector<32x64xf32>
    %43 = arith.truncf %42 : vector<32x64xf32> to vector<32x64xbf16>
    %c0_28 = arith.constant 0 : index
    %c0_29 = arith.constant 0 : index
    %44 = vector.load %arg15[%c0_28, %c0_29] : memref<32x64xbf16, #tpu.memory_space<vmem>>, vector<32x64xbf16>
    tpu.vector_store %arg15[%c0_28, %c0_29], %43 {strides = array<i32>} : memref<32x64xbf16, #tpu.memory_space<vmem>>, vector<32x64xbf16>,
    %c0_i32 = arith.constant 0 : i32
    %c2_i32 = arith.constant 2 : i32
    %45 = arith.addi %c0_i32, %c2_i32 : i32
    %c1_i32 = arith.constant 1 : i32
    scf.for %arg17 = %c0_i32 to %45 step %c1_i32  : i32 {
      %c1_i32_40 = arith.constant 1 : i32
      %53 = arith.muli %arg17, %c1_i32_40 : i32
      %c0_i32_41 = arith.constant 0 : i32
      %54 = arith.addi %c0_i32_41, %53 : i32
      %c16_i32 = arith.constant 16 : i32
      %55 = arith.muli %54, %c16_i32 : i32
      %56 = tpu.assume_multiple %55, 16 : i32
      %57 = arith.index_cast %56 : i32 to index
      %c0_42 = arith.constant 0 : index
      %58 = vector.load %arg13[%57, %c0_42] : memref<32x64xbf16, #tpu.memory_space<vmem>>, vector<16x16xbf16>
      %cst_43 = arith.constant 0xFF800000 : f32
      %59 = vector.broadcast %cst_43 : f32 to vector<16x1xf32>
      %cst_44 = arith.constant 0.000000e+00 : f32
      %60 = vector.broadcast %cst_44 : f32 to vector<16x1xf32>
      %cst_45 = arith.constant 0.000000e+00 : f32
      %61 = vector.broadcast %cst_45 : f32 to vector<16x16xf32>
      %c0_i32_46 = arith.constant 0 : i32
      %c16_i32_47 = arith.constant 16 : i32
      %62 = arith.muli %c0_i32_46, %c16_i32_47 : i32
      %63 = arith.addi %56, %62 : i32
      %64 = tpu.assume_multiple %63, 16 : i32
      %65 = arith.index_cast %64 : i32 to index
      %c0_48 = arith.constant 0 : index
      %66 = vector.load %arg14[%65, %c0_48] : memref<32x64xbf16, #tpu.memory_space<vmem>>, vector<16x16xbf16>
      %67 = arith.index_cast %64 : i32 to index
      %c0_49 = arith.constant 0 : index
      %68 = vector.load %arg15[%67, %c0_49] : memref<32x64xbf16, #tpu.memory_space<vmem>>, vector<16x16xbf16>
      %cst_50 = arith.constant dense<0.000000e+00> : vector<16x16xf32>
      %69 = tpu.matmul %58, %66, %cst_50 {dimension_numbers = #tpu.dot_dimension_numbers<[1], [1], [0], [0], [0, 0, 1, 0], [], []>} : vector<16x16xbf16>, vector<16x16xbf16>, vector<16x16xf32> -> vector<16x16xf32>
      %cst_51 = arith.constant dense<0xFF800000> : vector<16xf32>
      %70 = vector.multi_reduction <maximumf>, %69, %cst_51 [1] : vector<16x16xf32> to vector<16xf32>
      %71 = vector.shape_cast %70 : vector<16xf32> to vector<16x1xf32>
      %72 = arith.maximumf %59, %71 : vector<16x1xf32>
      %73 = arith.subf %59, %72 : vector<16x1xf32>
      %74 = math.exp %73 : vector<16x1xf32>
      %75 = vector.broadcast %72 : vector<16x1xf32> to vector<16x16xf32>
      %76 = arith.subf %69, %75 : vector<16x16xf32>
      %77 = math.exp %76 : vector<16x16xf32>
      %78 = arith.mulf %74, %60 : vector<16x1xf32>
      %cst_52 = arith.constant dense<0.000000e+00> : vector<16xf32>
      %79 = vector.multi_reduction <add>, %77, %cst_52 [1] : vector<16x16xf32> to vector<16xf32>
      %80 = vector.shape_cast %79 : vector<16xf32> to vector<16x1xf32>
      %81 = arith.addf %78, %80 : vector<16x1xf32>
      %82 = vector.broadcast %74 : vector<16x1xf32> to vector<16x16xf32>
      %83 = arith.mulf %82, %61 : vector<16x16xf32>
      %84 = arith.truncf %77 : vector<16x16xf32> to vector<16x16xbf16>
      %cst_53 = arith.constant dense<0.000000e+00> : vector<16x16xf32>
      %85 = tpu.matmul %84, %68, %cst_53 {dimension_numbers = #tpu.dot_dimension_numbers<[1], [0], [0], [1], [0, 0, 1, 1], [], []>} : vector<16x16xbf16>, vector<16x16xbf16>, vector<16x16xf32> -> vector<16x16xf32>
      %86 = arith.addf %83, %85 : vector<16x16xf32>
      %c1_i32_54 = arith.constant 1 : i32
      %87 = tpu.reciprocal %81 {approx = true} : vector<16x1xf32> -> vector<16x1xf32>
      %88 = vector.broadcast %87 : vector<16x1xf32> to vector<16x16xf32>
      %89 = arith.mulf %86, %88 : vector<16x16xf32>
      %90 = arith.truncf %89 : vector<16x16xf32> to vector<16x16xbf16>
      %91 = arith.index_cast %56 : i32 to index
      %c0_55 = arith.constant 0 : index
      %92 = vector.load %arg16[%91, %c0_55] : memref<32x64xbf16, #tpu.memory_space<vmem>>, vector<16x16xbf16>
      tpu.vector_store %arg16[%91, %c0_55], %90 {strides = array<i32>} : memref<32x64xbf16, #tpu.memory_space<vmem>>, vector<16x16xbf16>,
      %93 = arith.index_cast %56 : i32 to index
      %c16 = arith.constant 16 : index
      %94 = vector.load %arg13[%93, %c16] : memref<32x64xbf16, #tpu.memory_space<vmem>>, vector<16x16xbf16>
      %cst_56 = arith.constant 0xFF800000 : f32
      %95 = vector.broadcast %cst_56 : f32 to vector<16x1xf32>
      %cst_57 = arith.constant 0.000000e+00 : f32
      %96 = vector.broadcast %cst_57 : f32 to vector<16x1xf32>
      %cst_58 = arith.constant 0.000000e+00 : f32
      %97 = vector.broadcast %cst_58 : f32 to vector<16x16xf32>
      %c0_i32_59 = arith.constant 0 : i32
      %c16_i32_60 = arith.constant 16 : i32
      %98 = arith.muli %c0_i32_59, %c16_i32_60 : i32
      %99 = arith.addi %56, %98 : i32
      %100 = tpu.assume_multiple %99, 16 : i32
      %101 = arith.index_cast %100 : i32 to index
      %c16_61 = arith.constant 16 : index
      %102 = vector.load %arg14[%101, %c16_61] : memref<32x64xbf16, #tpu.memory_space<vmem>>, vector<16x16xbf16>
      %103 = arith.index_cast %100 : i32 to index
      %c16_62 = arith.constant 16 : index
      %104 = vector.load %arg15[%103, %c16_62] : memref<32x64xbf16, #tpu.memory_space<vmem>>, vector<16x16xbf16>
      %cst_63 = arith.constant dense<0.000000e+00> : vector<16x16xf32>
      %105 = tpu.matmul %94, %102, %cst_63 {dimension_numbers = #tpu.dot_dimension_numbers<[1], [1], [0], [0], [0, 0, 1, 0], [], []>} : vector<16x16xbf16>, vector<16x16xbf16>, vector<16x16xf32> -> vector<16x16xf32>
      %cst_64 = arith.constant dense<0xFF800000> : vector<16xf32>
      %106 = vector.multi_reduction <maximumf>, %105, %cst_64 [1] : vector<16x16xf32> to vector<16xf32>
      %107 = vector.shape_cast %106 : vector<16xf32> to vector<16x1xf32>
      %108 = arith.maximumf %95, %107 : vector<16x1xf32>
      %109 = arith.subf %95, %108 : vector<16x1xf32>
      %110 = math.exp %109 : vector<16x1xf32>
      %111 = vector.broadcast %108 : vector<16x1xf32> to vector<16x16xf32>
      %112 = arith.subf %105, %111 : vector<16x16xf32>
      %113 = math.exp %112 : vector<16x16xf32>
      %114 = arith.mulf %110, %96 : vector<16x1xf32>
      %cst_65 = arith.constant dense<0.000000e+00> : vector<16xf32>
      %115 = vector.multi_reduction <add>, %113, %cst_65 [1] : vector<16x16xf32> to vector<16xf32>
      %116 = vector.shape_cast %115 : vector<16xf32> to vector<16x1xf32>
      %117 = arith.addf %114, %116 : vector<16x1xf32>
      %118 = vector.broadcast %110 : vector<16x1xf32> to vector<16x16xf32>
      %119 = arith.mulf %118, %97 : vector<16x16xf32>
      %120 = arith.truncf %113 : vector<16x16xf32> to vector<16x16xbf16>
      %cst_66 = arith.constant dense<0.000000e+00> : vector<16x16xf32>
      %121 = tpu.matmul %120, %104, %cst_66 {dimension_numbers = #tpu.dot_dimension_numbers<[1], [0], [0], [1], [0, 0, 1, 1], [], []>} : vector<16x16xbf16>, vector<16x16xbf16>, vector<16x16xf32> -> vector<16x16xf32>
      %122 = arith.addf %119, %121 : vector<16x16xf32>
      %c1_i32_67 = arith.constant 1 : i32
      %123 = tpu.reciprocal %117 {approx = true} : vector<16x1xf32> -> vector<16x1xf32>
      %124 = vector.broadcast %123 : vector<16x1xf32> to vector<16x16xf32>
      %125 = arith.mulf %122, %124 : vector<16x16xf32>
      %126 = arith.truncf %125 : vector<16x16xf32> to vector<16x16xbf16>
      %127 = arith.index_cast %56 : i32 to index
      %c16_68 = arith.constant 16 : index
      %128 = vector.load %arg16[%127, %c16_68] : memref<32x64xbf16, #tpu.memory_space<vmem>>, vector<16x16xbf16>
      tpu.vector_store %arg16[%127, %c16_68], %126 {strides = array<i32>} : memref<32x64xbf16, #tpu.memory_space<vmem>>, vector<16x16xbf16>,
      %129 = arith.index_cast %56 : i32 to index
      %c32 = arith.constant 32 : index
      %130 = vector.load %arg13[%129, %c32] : memref<32x64xbf16, #tpu.memory_space<vmem>>, vector<16x16xbf16>
      %cst_69 = arith.constant 0xFF800000 : f32
      %131 = vector.broadcast %cst_69 : f32 to vector<16x1xf32>
      %cst_70 = arith.constant 0.000000e+00 : f32
      %132 = vector.broadcast %cst_70 : f32 to vector<16x1xf32>
      %cst_71 = arith.constant 0.000000e+00 : f32
      %133 = vector.broadcast %cst_71 : f32 to vector<16x16xf32>
      %c0_i32_72 = arith.constant 0 : i32
      %c16_i32_73 = arith.constant 16 : i32
      %134 = arith.muli %c0_i32_72, %c16_i32_73 : i32
      %135 = arith.addi %56, %134 : i32
      %136 = tpu.assume_multiple %135, 16 : i32
      %137 = arith.index_cast %136 : i32 to index
      %c32_74 = arith.constant 32 : index
      %138 = vector.load %arg14[%137, %c32_74] : memref<32x64xbf16, #tpu.memory_space<vmem>>, vector<16x16xbf16>
      %139 = arith.index_cast %136 : i32 to index
      %c32_75 = arith.constant 32 : index
      %140 = vector.load %arg15[%139, %c32_75] : memref<32x64xbf16, #tpu.memory_space<vmem>>, vector<16x16xbf16>
      %cst_76 = arith.constant dense<0.000000e+00> : vector<16x16xf32>
      %141 = tpu.matmul %130, %138, %cst_76 {dimension_numbers = #tpu.dot_dimension_numbers<[1], [1], [0], [0], [0, 0, 1, 0], [], []>} : vector<16x16xbf16>, vector<16x16xbf16>, vector<16x16xf32> -> vector<16x16xf32>
      %cst_77 = arith.constant dense<0xFF800000> : vector<16xf32>
      %142 = vector.multi_reduction <maximumf>, %141, %cst_77 [1] : vector<16x16xf32> to vector<16xf32>
      %143 = vector.shape_cast %142 : vector<16xf32> to vector<16x1xf32>
      %144 = arith.maximumf %131, %143 : vector<16x1xf32>
      %145 = arith.subf %131, %144 : vector<16x1xf32>
      %146 = math.exp %145 : vector<16x1xf32>
      %147 = vector.broadcast %144 : vector<16x1xf32> to vector<16x16xf32>
      %148 = arith.subf %141, %147 : vector<16x16xf32>
      %149 = math.exp %148 : vector<16x16xf32>
      %150 = arith.mulf %146, %132 : vector<16x1xf32>
      %cst_78 = arith.constant dense<0.000000e+00> : vector<16xf32>
      %151 = vector.multi_reduction <add>, %149, %cst_78 [1] : vector<16x16xf32> to vector<16xf32>
      %152 = vector.shape_cast %151 : vector<16xf32> to vector<16x1xf32>
      %153 = arith.addf %150, %152 : vector<16x1xf32>
      %154 = vector.broadcast %146 : vector<16x1xf32> to vector<16x16xf32>
      %155 = arith.mulf %154, %133 : vector<16x16xf32>
      %156 = arith.truncf %149 : vector<16x16xf32> to vector<16x16xbf16>
      %cst_79 = arith.constant dense<0.000000e+00> : vector<16x16xf32>
      %157 = tpu.matmul %156, %140, %cst_79 {dimension_numbers = #tpu.dot_dimension_numbers<[1], [0], [0], [1], [0, 0, 1, 1], [], []>} : vector<16x16xbf16>, vector<16x16xbf16>, vector<16x16xf32> -> vector<16x16xf32>
      %158 = arith.addf %155, %157 : vector<16x16xf32>
      %c1_i32_80 = arith.constant 1 : i32
      %159 = tpu.reciprocal %153 {approx = true} : vector<16x1xf32> -> vector<16x1xf32>
      %160 = vector.broadcast %159 : vector<16x1xf32> to vector<16x16xf32>
      %161 = arith.mulf %158, %160 : vector<16x16xf32>
      %162 = arith.truncf %161 : vector<16x16xf32> to vector<16x16xbf16>
      %163 = arith.index_cast %56 : i32 to index
      %c32_81 = arith.constant 32 : index
      %164 = vector.load %arg16[%163, %c32_81] : memref<32x64xbf16, #tpu.memory_space<vmem>>, vector<16x16xbf16>
      tpu.vector_store %arg16[%163, %c32_81], %162 {strides = array<i32>} : memref<32x64xbf16, #tpu.memory_space<vmem>>, vector<16x16xbf16>,
      %165 = arith.index_cast %56 : i32 to index
      %c48 = arith.constant 48 : index
      %166 = vector.load %arg13[%165, %c48] : memref<32x64xbf16, #tpu.memory_space<vmem>>, vector<16x16xbf16>
      %cst_82 = arith.constant 0xFF800000 : f32
      %167 = vector.broadcast %cst_82 : f32 to vector<16x1xf32>
      %cst_83 = arith.constant 0.000000e+00 : f32
      %168 = vector.broadcast %cst_83 : f32 to vector<16x1xf32>
      %cst_84 = arith.constant 0.000000e+00 : f32
      %169 = vector.broadcast %cst_84 : f32 to vector<16x16xf32>
      %c0_i32_85 = arith.constant 0 : i32
      %c16_i32_86 = arith.constant 16 : i32
      %170 = arith.muli %c0_i32_85, %c16_i32_86 : i32
      %171 = arith.addi %56, %170 : i32
      %172 = tpu.assume_multiple %171, 16 : i32
      %173 = arith.index_cast %172 : i32 to index
      %c48_87 = arith.constant 48 : index
      %174 = vector.load %arg14[%173, %c48_87] : memref<32x64xbf16, #tpu.memory_space<vmem>>, vector<16x16xbf16>
      %175 = arith.index_cast %172 : i32 to index
      %c48_88 = arith.constant 48 : index
      %176 = vector.load %arg15[%175, %c48_88] : memref<32x64xbf16, #tpu.memory_space<vmem>>, vector<16x16xbf16>
      %cst_89 = arith.constant dense<0.000000e+00> : vector<16x16xf32>
      %177 = tpu.matmul %166, %174, %cst_89 {dimension_numbers = #tpu.dot_dimension_numbers<[1], [1], [0], [0], [0, 0, 1, 0], [], []>} : vector<16x16xbf16>, vector<16x16xbf16>, vector<16x16xf32> -> vector<16x16xf32>
      %cst_90 = arith.constant dense<0xFF800000> : vector<16xf32>
      %178 = vector.multi_reduction <maximumf>, %177, %cst_90 [1] : vector<16x16xf32> to vector<16xf32>
      %179 = vector.shape_cast %178 : vector<16xf32> to vector<16x1xf32>
      %180 = arith.maximumf %167, %179 : vector<16x1xf32>
      %181 = arith.subf %167, %180 : vector<16x1xf32>
      %182 = math.exp %181 : vector<16x1xf32>
      %183 = vector.broadcast %180 : vector<16x1xf32> to vector<16x16xf32>
      %184 = arith.subf %177, %183 : vector<16x16xf32>
      %185 = math.exp %184 : vector<16x16xf32>
      %186 = arith.mulf %182, %168 : vector<16x1xf32>
      %cst_91 = arith.constant dense<0.000000e+00> : vector<16xf32>
      %187 = vector.multi_reduction <add>, %185, %cst_91 [1] : vector<16x16xf32> to vector<16xf32>
      %188 = vector.shape_cast %187 : vector<16xf32> to vector<16x1xf32>
      %189 = arith.addf %186, %188 : vector<16x1xf32>
      %190 = vector.broadcast %182 : vector<16x1xf32> to vector<16x16xf32>
      %191 = arith.mulf %190, %169 : vector<16x16xf32>
      %192 = arith.truncf %185 : vector<16x16xf32> to vector<16x16xbf16>
      %cst_92 = arith.constant dense<0.000000e+00> : vector<16x16xf32>
      %193 = tpu.matmul %192, %176, %cst_92 {dimension_numbers = #tpu.dot_dimension_numbers<[1], [0], [0], [1], [0, 0, 1, 1], [], []>} : vector<16x16xbf16>, vector<16x16xbf16>, vector<16x16xf32> -> vector<16x16xf32>
      %194 = arith.addf %191, %193 : vector<16x16xf32>
      %c1_i32_93 = arith.constant 1 : i32
      %195 = tpu.reciprocal %189 {approx = true} : vector<16x1xf32> -> vector<16x1xf32>
      %196 = vector.broadcast %195 : vector<16x1xf32> to vector<16x16xf32>
      %197 = arith.mulf %194, %196 : vector<16x16xf32>
      %198 = arith.truncf %197 : vector<16x16xf32> to vector<16x16xbf16>
      %199 = arith.index_cast %56 : i32 to index
      %c48_94 = arith.constant 48 : index
      %200 = vector.load %arg16[%199, %c48_94] : memref<32x64xbf16, #tpu.memory_space<vmem>>, vector<16x16xbf16>
      tpu.vector_store %arg16[%199, %c48_94], %198 {strides = array<i32>} : memref<32x64xbf16, #tpu.memory_space<vmem>>, vector<16x16xbf16>,
    }
    %c2_i32_30 = arith.constant 2 : i32
    %c0_31 = arith.constant 0 : index
    %c0_32 = arith.constant 0 : index
    %46 = vector.load %arg16[%c0_31, %c0_32] : memref<32x64xbf16, #tpu.memory_space<vmem>>, vector<32x64xbf16>
    %c0_33 = arith.constant 0 : index
    %c0_34 = arith.constant 0 : index
    %47 = vector.load %arg10[%c0_33, %c0_34] : memref<64x64xbf16, #tpu.memory_space<vmem>>, vector<64x64xbf16>
    %cst_35 = arith.constant dense<0.000000e+00> : vector<32x64xf32>
    %48 = tpu.matmul %46, %47, %cst_35 {dimension_numbers = #tpu.dot_dimension_numbers<[1], [1], [0], [0], [0, 0, 1, 0], [], []>} : vector<32x64xbf16>, vector<64x64xbf16>, vector<32x64xf32> -> vector<32x64xf32>
    %c0_36 = arith.constant 0 : index
    %c0_37 = arith.constant 0 : index
    %49 = vector.load %arg11[%c0_36, %c0_37] : memref<1x64xf32, #tpu.memory_space<vmem>>, vector<1x64xf32>
    %50 = vector.broadcast %49 : vector<1x64xf32> to vector<32x64xf32>
    %51 = arith.addf %48, %50 : vector<32x64xf32>
    %c0_38 = arith.constant 0 : index
    %c0_39 = arith.constant 0 : index
    %52 = vector.load %arg12[%c0_38, %c0_39] : memref<32x64xf32, #tpu.memory_space<vmem>>, vector<32x64xf32>
    tpu.vector_store %arg12[%c0_38, %c0_39], %51 {strides = array<i32>} : memref<32x64xf32, #tpu.memory_space<vmem>>, vector<32x64xf32>,
    return
  }
  func.func @transform_0(%arg0: i32) -> (i32, i32) {
    %c0_i32 = arith.constant 0 : i32
    %c0_i32_0 = arith.constant 0 : i32
    return %arg0, %c0_i32 : i32, i32
  }
  func.func @transform_1(%arg0: i32) -> (i32, i32) {
    %c0_i32 = arith.constant 0 : i32
    %c0_i32_0 = arith.constant 0 : i32
    %c0_i32_1 = arith.constant 0 : i32
    return %c0_i32, %c0_i32_0 : i32, i32
  }
  func.func @transform_2(%arg0: i32) -> (i32, i32) {
    %c0_i32 = arith.constant 0 : i32
    %c0_i32_0 = arith.constant 0 : i32
    %c0_i32_1 = arith.constant 0 : i32
    return %c0_i32, %c0_i32_0 : i32, i32
  }
  func.func @transform_3(%arg0: i32) -> (i32, i32) {
    %c0_i32 = arith.constant 0 : i32
    %c0_i32_0 = arith.constant 0 : i32
    %c0_i32_1 = arith.constant 0 : i32
    return %c0_i32, %c0_i32_0 : i32, i32
  }
  func.func @transform_4(%arg0: i32) -> (i32, i32) {
    %c0_i32 = arith.constant 0 : i32
    %c0_i32_0 = arith.constant 0 : i32
    %c0_i32_1 = arith.constant 0 : i32
    return %c0_i32, %c0_i32_0 : i32, i32
  }
  func.func @transform_5(%arg0: i32) -> (i32, i32) {
    %c0_i32 = arith.constant 0 : i32
    %c0_i32_0 = arith.constant 0 : i32
    %c0_i32_1 = arith.constant 0 : i32
    return %c0_i32, %c0_i32_0 : i32, i32
  }
  func.func @transform_6(%arg0: i32) -> (i32, i32) {
    %c0_i32 = arith.constant 0 : i32
    %c0_i32_0 = arith.constant 0 : i32
    %c0_i32_1 = arith.constant 0 : i32
    return %c0_i32, %c0_i32_0 : i32, i32
  }
  func.func @transform_7(%arg0: i32) -> (i32, i32) {
    %c0_i32 = arith.constant 0 : i32
    %c0_i32_0 = arith.constant 0 : i32
    %c0_i32_1 = arith.constant 0 : i32
    return %c0_i32, %c0_i32_0 : i32, i32
  }
  func.func @transform_8(%arg0: i32) -> (i32, i32) {
    %c0_i32 = arith.constant 0 : i32
    %c0_i32_0 = arith.constant 0 : i32
    %c0_i32_1 = arith.constant 0 : i32
    return %c0_i32, %c0_i32_0 : i32, i32
  }
  func.func @transform_9(%arg0: i32) -> (i32, i32) {
    %c0_i32 = arith.constant 0 : i32
    %c0_i32_0 = arith.constant 0 : i32
    %c0_i32_1 = arith.constant 0 : i32
    return %c0_i32, %c0_i32_0 : i32, i32
  }
  func.func @transform_10(%arg0: i32) -> (i32, i32) {
    %c0_i32 = arith.constant 0 : i32
    %c0_i32_0 = arith.constant 0 : i32
    %c0_i32_1 = arith.constant 0 : i32
    return %c0_i32, %c0_i32_0 : i32, i32
  }
  func.func @transform_11(%arg0: i32) -> (i32, i32) {
    %c0_i32 = arith.constant 0 : i32
    %c0_i32_0 = arith.constant 0 : i32
    return %arg0, %c0_i32 : i32, i32
  }
}

</mosaic_0001>

<bundles_post_ra>
// kernel: tpu_custom_call.1
= control target key start
LH: loop header
LB: loop body
LE: loop exit
PB: predicated region body
PF: predicated region fallthrough
CT: control target
= control target key end

     0   :  { %16 = vsyncpa [#allocation7], 0  ;;  %s2159_s0 = inlined_call_operand.hbm [shape: f32[32,64], index: 0, kind: input, shape index: {}]   ;;  %s2160_s1 = inlined_call_operand.vmem [shape: f32[1,64], index: 1, kind: input, shape index: {}]   ;;  %s2161_s2 = inlined_call_operand.vmem [shape: f32[1,64], index: 2, kind: input, shape index: {}]   ;;  %s2162_s3 = inlined_call_operand.hbm [shape: bf16[64,64], index: 3, kind: input, shape index: {}]   ;;  %s2163_s4 = inlined_call_operand.hbm [shape: bf16[64,64], index: 4, kind: input, shape index: {}]   ;;  %s2164_s5 = inlined_call_operand.hbm [shape: bf16[64,64], index: 5, kind: input, shape index: {}]   ;;  %s2165_s6 = inlined_call_operand.hbm [shape: f32[1,64], index: 6, kind: input, shape index: {}]   ;;  %s2166_s7 = inlined_call_operand.hbm [shape: f32[1,64], index: 7, kind: input, shape index: {}]   ;;  %s2167_s8 = inlined_call_operand.hbm [shape: f32[1,64], index: 8, kind: input, shape index: {}]   ;;  %s2168_s9 = inlined_call_operand.vmem [shape: bf16[64,64], index: 9, kind: input, shape index: {}]   ;;  %s2169_s10 = inlined_call_operand.vmem [shape: f32[1,64], index: 10, kind: input, shape index: {}]   ;;  %s2170_s11 = inlined_call_operand.hbm [shape: f32[32,64], index: 11, kind: output, shape index: {}]  }
   0x1   :  { %17 = vsyncpa [#allocation10], 0 }
   0x2   :  { %18 = vsyncpa [#allocation13], 0 }
   0x3   :  { %19 = vsyncpa [#allocation16], 0 }
   0x4   :  { %20 = vsyncpa [#allocation8], 0  ;;  %s1736_s17 = smov [#allocation9]   ;;  %s1542_s21 = scalar_lea.hbm %s2162_s3, 512 }
   0x5   :  { %s42_s18 = sshll.u32 %s1736_s17, 4  ;;  %p1543_p0 = scmp.ne.s32.totalorder %s2162_s3, %s1542_s21  ;;  %s43_s18 = int_to_ptr.vmem [resolvable:$true] %s42_s18 }
   0x6   :  { %p1546_p1 = scmp.lt.u32.totalorder %s1542_s21, %s2162_s3 }
   0x8   :  { %p1548_p2 = pnand %p1546_p1, %p1543_p0 }
   0xa   :  { %1551 = shalt.err (!%p1548_p2)
}
   0xb   :  { %s1552_s26 = scalar_lea.vmem %s43_s18, 512  ;;  %p1557_p4 = scmp.lt.s32.totalorder %s43_s18, %s43_s18 }
   0xc   :  { %p1553_p3 = scmp.ne.s32.totalorder %s43_s18, %s1552_s26  ;;  %p1558_p5 = scmp.lt.s32.totalorder %s1552_s26, %s1552_s26 }
   0xe   :  { %p1559_p6 = por %p1558_p5, %p1557_p4 }
  0x10   :  { %p1560_p7 = pnand %p1559_p6, %p1553_p3 }
  0x12   :  { %1563 = shalt.err (!%p1560_p7)
}
  0x13   :  { %s1737_s27 = smov 64   ;;  %s1738_s28 = smov 4  }
  0x14   :  { %48 = dma.hbm_to_vmem [thread:$0]  %s2162_s3, 512, %s43_s18, [#allocation10], %s1737_s27, %s1737_s27, %s1738_s28  }
  0x15   :  { %s1739_s12 = smov [#allocation12]   ;;  %s1740_s14 = smov [#allocation15]  }
  0x16   :  { %s66_s13 = sshll.u32 %s1739_s12, 4  ;;  %s89_s15 = sshll.u32 %s1740_s14, 4  ;;  %s67_s13 = int_to_ptr.vmem [resolvable:$true] %s66_s13  ;;  %s90_s15 = int_to_ptr.vmem [resolvable:$true] %s89_s15 }
  0x17   :  { %s1564_s19 = scalar_lea.hbm %s2164_s5, 512 }
  0x18   :  { %p1565_p8 = scmp.ne.s32.totalorder %s2164_s5, %s1564_s19  ;;  %p1568_p9 = scmp.lt.u32.totalorder %s1564_s19, %s2164_s5 }
  0x1a   :  { %p1570_p10 = pnand %p1568_p9, %p1565_p8 }
  0x1c   :  { %1573 = shalt.err (!%p1570_p10)
}
  0x1d   :  { %s1574_s3 = scalar_lea.vmem %s67_s13, 512  ;;  %p1579_p12 = scmp.lt.s32.totalorder %s67_s13, %s67_s13 }
  0x1e   :  { %p1575_p11 = scmp.ne.s32.totalorder %s67_s13, %s1574_s3  ;;  %p1580_p13 = scmp.lt.s32.totalorder %s1574_s3, %s1574_s3 }
  0x20   :  { %p1581_p0 = por %p1580_p13, %p1579_p12 }
  0x22   :  { %p1582_p1 = pnand %p1581_p0, %p1575_p11 }
  0x24   :  { %1585 = shalt.err (!%p1582_p1)
}
  0x25   :  { %72 = dma.hbm_to_vmem [thread:$0]  %s2164_s5, 512, %s67_s13, [#allocation13], %s1737_s27, %s1737_s27, %s1738_s28  }
  0x26   :  { %s1586_s29 = scalar_lea.hbm %s2166_s7, 16 }
  0x27   :  { %p1587_p2 = scmp.ne.s32.totalorder %s2166_s7, %s1586_s29  ;;  %p1590_p3 = scmp.lt.u32.totalorder %s1586_s29, %s2166_s7 }
  0x29   :  { %p1592_p4 = pnand %p1590_p3, %p1587_p2 }
  0x2b   :  { %1595 = shalt.err (!%p1592_p4)
}
  0x2c   :  { %s1596_s17 = scalar_lea.vmem %s90_s15, 16  ;;  %s1600_s19 = scalar_lea.vmem %s90_s15, 32 }
  0x2d   :  { %p1597_p5 = scmp.ne.s32.totalorder %s90_s15, %s1596_s17  ;;  %p1601_p6 = scmp.lt.s32.totalorder %s90_s15, %s90_s15 }
  0x2e   :  { %p1602_p7 = scmp.lt.s32.totalorder %s1600_s19, %s1596_s17 }
  0x30   :  { %p1603_p8 = por %p1602_p7, %p1601_p6 }
  0x32   :  { %p1604_p9 = pnand %p1603_p8, %p1597_p5 }
  0x34   :  { %1607 = shalt.err (!%p1604_p9)
}
  0x35   :  { %92 = dma.hbm_to_vmem [thread:$0]  %s2166_s7, 16, %s90_s15, [#allocation16]  }
  0x36   :  { %s1741_s20 = smov [#allocation6]   ;;  %s1608_s3 = scalar_lea.hbm %s2159_s0, 512 }
  0x37   :  { %s26_s21 = sshll.u32 %s1741_s20, 4  ;;  %p1609_p10 = scmp.ne.s32.totalorder %s2159_s0, %s1608_s3  ;;  %s27_s21 = int_to_ptr.vmem [resolvable:$true] %s26_s21 }
  0x38   :  { %p1612_p11 = scmp.lt.u32.totalorder %s1608_s3, %s2159_s0 }
  0x3a   :  { %p1614_p12 = pnand %p1612_p11, %p1609_p10 }
  0x3c   :  { %1617 = shalt.err (!%p1614_p12)
}
  0x3d   :  { %s1618_s29 = scalar_lea.vmem %s27_s21, 512  ;;  %p1623_p0 = scmp.lt.s32.totalorder %s27_s21, %s27_s21 }
  0x3e   :  { %p1619_p13 = scmp.ne.s32.totalorder %s27_s21, %s1618_s29  ;;  %p1624_p1 = scmp.lt.s32.totalorder %s1618_s29, %s1618_s29 }
  0x40   :  { %p1625_p2 = por %p1624_p1, %p1623_p0 }
  0x42   :  { %p1626_p3 = pnand %p1625_p2, %p1619_p13 }
  0x44   :  { %1629 = shalt.err (!%p1626_p3)
}
  0x45   :  { %s1742_s7 = smov 128   ;;  %s1743_s15 = smov 8  }
  0x46   :  { %32 = dma.hbm_to_vmem [thread:$0]  %s2159_s0, 512, %s27_s21, [#allocation7], %s1742_s7, %s1742_s7, %s1743_s15  }
  0x47   :  { %s1744_s14 = smov [#allocation11]   ;;  %s1745_s17 = smov [#allocation14]  }
  0x48   :  { %s54_s16 = sshll.u32 %s1744_s14, 4  ;;  %s79_s19 = sshll.u32 %s1745_s17, 4  ;;  %s55_s16 = int_to_ptr.vmem [resolvable:$true] %s54_s16  ;;  %s80_s19 = int_to_ptr.vmem [resolvable:$true] %s79_s19 }
  0x49   :  { %s1630_s20 = scalar_lea.hbm %s2163_s4, 512 }
  0x4a   :  { %p1631_p4 = scmp.ne.s32.totalorder %s2163_s4, %s1630_s20  ;;  %p1634_p5 = scmp.lt.u32.totalorder %s1630_s20, %s2163_s4 }
  0x4c   :  { %p1636_p6 = pnand %p1634_p5, %p1631_p4 }
  0x4e   :  { %1639 = shalt.err (!%p1636_p6)
}
  0x4f   :  { %s1640_s0 = scalar_lea.vmem %s55_s16, 512  ;;  %p1645_p8 = scmp.lt.s32.totalorder %s55_s16, %s55_s16 }
  0x50   :  { %p1641_p7 = scmp.ne.s32.totalorder %s55_s16, %s1640_s0  ;;  %p1646_p9 = scmp.lt.s32.totalorder %s1640_s0, %s1640_s0 }
  0x52   :  { %p1647_p10 = por %p1646_p9, %p1645_p8 }
  0x54   :  { %p1648_p11 = pnand %p1647_p10, %p1641_p7 }
  0x56   :  { %1651 = shalt.err (!%p1648_p11)
}
  0x57   :  { %60 = dma.hbm_to_vmem [thread:$0]  %s2163_s4, 512, %s55_s16, [#allocation10], %s1737_s27, %s1737_s27, %s1738_s28  }
  0x58   :  { %s1652_s29 = scalar_lea.hbm %s2165_s6, 16 }
  0x59   :  { %p1653_p12 = scmp.ne.s32.totalorder %s2165_s6, %s1652_s29  ;;  %p1656_p13 = scmp.lt.u32.totalorder %s1652_s29, %s2165_s6 }
  0x5b   :  { %p1658_p0 = pnand %p1656_p13, %p1653_p12 }
  0x5d   :  { %1661 = shalt.err (!%p1658_p0)
}
  0x5e   :  { %s1662_s5 = scalar_lea.vmem %s80_s19, 16  ;;  %s1666_s13 = scalar_lea.vmem %s80_s19, 32 }
  0x5f   :  { %p1663_p1 = scmp.ne.s32.totalorder %s80_s19, %s1662_s5  ;;  %p1667_p2 = scmp.lt.s32.totalorder %s80_s19, %s80_s19 }
  0x60   :  { %p1668_p3 = scmp.lt.s32.totalorder %s1666_s13, %s1662_s5 }
  0x62   :  { %p1669_p4 = por %p1668_p3, %p1667_p2 }
  0x64   :  { %p1670_p5 = pnand %p1669_p4, %p1663_p1 }
  0x66   :  { %1673 = shalt.err (!%p1670_p5)
}
  0x67   :  { %82 = dma.hbm_to_vmem [thread:$0]  %s2165_s6, 16, %s80_s19, [#allocation13]  }
  0x68   :  { %s1746_s28 = smov [#allocation17]   ;;  %s1674_s23 = scalar_lea.hbm %s2167_s8, 16 }
  0x69   :  { %s99_s16 = sshll.u32 %s1746_s28, 4  ;;  %p1675_p6 = scmp.ne.s32.totalorder %s2167_s8, %s1674_s23  ;;  %s100_s16 = int_to_ptr.vmem [resolvable:$true] %s99_s16 }
  0x6a   :  { %p1678_p7 = scmp.lt.u32.totalorder %s1674_s23, %s2167_s8 }
  0x6c   :  { %p1680_p8 = pnand %p1678_p7, %p1675_p6 }
  0x6e   :  { %1683 = shalt.err (!%p1680_p8)
}
  0x6f   :  { %s1684_s24 = scalar_lea.vmem %s100_s16, 16  ;;  %s1688_s6 = scalar_lea.vmem %s100_s16, 32 }
  0x70   :  { %p1685_p9 = scmp.ne.s32.totalorder %s100_s16, %s1684_s24  ;;  %p1689_p10 = scmp.lt.s32.totalorder %s100_s16, %s100_s16 }
  0x71   :  { %p1690_p11 = scmp.lt.s32.totalorder %s1688_s6, %s1684_s24 }
  0x73   :  { %p1691_p12 = por %p1690_p11, %p1689_p10 }
  0x75   :  { %p1692_p13 = pnand %p1691_p12, %p1685_p9 }
  0x77   :  { %1695 = shalt.err (!%p1692_p13)
}
  0x78   :  { %102 = dma.hbm_to_vmem [thread:$0]  %s2167_s8, 16, %s100_s16, [#allocation16]  }
  0x79   :  { %1722 = dma.done.wait [#allocation7], 512  }
  0x7a   :  { %1723 = vsyncadd [#allocation7], 4294966784 }
  0x7b   :  { %1724 = dma.done.wait [#allocation10], 1024  }
  0x7c   :  { %1725 = vsyncadd [#allocation10], 4294966272 }
  0x7d   :  { %1726 = dma.done.wait [#allocation13], 528  }
  0x7e   :  { %1727 = vsyncadd [#allocation13], 4294966768 }
  0x7f   :  { %1728 = dma.done.wait [#allocation16], 32  }
  0x80   :  { %1729 = vsyncadd [#allocation16], 4294967264  ;;  %vm133_vm0 = vcmask 523264   ;;  %v129_v0 = vld [vmem:[#allocation6] sm:$0xff]  ;;  %v131_v1 = vld [vmem:[#allocation6 + $0x10] sm:$0xff] }
  0x81   :  { %v130_v2 = vld [vmem:[#allocation6 + $0x8] sm:$0xff]  ;;  %v134_v3 = vsel %vm133_vm0, %v129_v0, 0.0  ;;  %v140_v4 = vsel %vm133_vm0, %v131_v1, 0.0  ;;  %v132_v5 = vld [vmem:[#allocation6 + $0x18] sm:$0xff]  ;;  %v1470_v8 = vld [vmem:[#allocation9] sm:$0xff]  }
  0x82   :  { %135 = vadd.xlane.f32.xlu0 %v134_v3  ;;  %141 = vadd.xlane.f32.xlu1 %v140_v4  ;;  %v137_v6 = vsel %vm133_vm0, %v130_v2, 0.0  ;;  %v143_v7 = vsel %vm133_vm0, %v132_v5, 0.0  ;;  %v1471_v9 = vld [vmem:[#allocation11] sm:$0xff]   ;;  %v253_v10 = vsel %vm133_vm0, %v1470_v8, 0  ;;  %v1472_v32 = vld [vmem:[#allocation9 + $0x8] sm:$0xff]   ;;  %v1474_v36 = vld [vmem:[#allocation9 + $0x10] sm:$0xff]  }
  0x83   :  { %1426 = vmatprep.subr.msk.bf16.mxu0 %vm133_vm0, %v1470_v8  ;;  %1430 = vmatprep.subr.msk.bf16.mxu1 %vm133_vm0, %v1471_v9  ;;  %v353_v31 = vsel %vm133_vm0, %v1471_v9, 0  ;;  %v1473_v33 = vld [vmem:[#allocation11 + $0x8] sm:$0xff]   ;;  %v256_v34 = vsel %vm133_vm0, %v1472_v32, 0  ;;  %v1475_v37 = vld [vmem:[#allocation11 + $0x10] sm:$0xff]   ;;  %v259_v38 = vsel %vm133_vm0, %v1474_v36, 0  ;;  %v1476_v40 = vld [vmem:[#allocation9 + $0x18] sm:$0xff]  }
  0x84   :  { %1331 = vmatpush3.bf16.xpose.msra.mxu0 %v253_v10  ;;  %1343 = vmatpush3.bf16.xpose.msra.mxu1 %v353_v31  ;;  %v356_v35 = vsel %vm133_vm0, %v1473_v33, 0  ;;  %v359_v39 = vsel %vm133_vm0, %v1475_v37, 0  ;;  %v1477_v41 = vld [vmem:[#allocation11 + $0x18] sm:$0xff]   ;;  %v262_v42 = vsel %vm133_vm0, %v1476_v40, 0  ;;  %v1478_v44 = vld [vmem:[#allocation12] sm:$0xff]  }
  0x85   :  { %1427 = vmatprep.subr.msk.bf16.mxu0 %vm133_vm0, %v1472_v32  ;;  %1431 = vmatprep.subr.msk.bf16.mxu1 %vm133_vm0, %v1473_v33  ;;  %v362_v43 = vsel %vm133_vm0, %v1477_v41, 0  ;;  %v1247_v59 = vld [vmem:[%s2160_s1] ss:$0 sm:$0xff]  ;;  %s1977_s1 = smov 0  }
  0x86   :  { %138 = vadd.xlane.f32.xlu0 %v137_v6  ;;  %144 = vadd.xlane.f32.xlu1 %v143_v7 }
  0x8c   :  { %1333 = vmatpush3.bf16.xpose.msra.mxu0 %v256_v34  ;;  %1345 = vmatpush3.bf16.xpose.msra.mxu1 %v356_v35 }
  0x8d   :  { %1428 = vmatprep.subr.msk.bf16.mxu0 %vm133_vm0, %v1474_v36  ;;  %1432 = vmatprep.subr.msk.bf16.mxu1 %vm133_vm0, %v1475_v37 }
  0x94   :  { %1335 = vmatpush3.bf16.xpose.msra.mxu0 %v259_v38  ;;  %1347 = vmatpush3.bf16.xpose.msra.mxu1 %v359_v39 }
  0x95   :  { %1429 = vmatprep.subr.msk.bf16.mxu0 %vm133_vm0, %v1476_v40  ;;  %1433 = vmatprep.subr.msk.bf16.mxu1 %vm133_vm0, %v1477_v41 }
  0x9c   :  { %1337 = vmatpush3.bf16.xpose.msra.mxu0 %v262_v42  ;;  %1349 = vmatpush3.bf16.xpose.msra.mxu1 %v362_v43  ;;  %v1263_v43 = vld [vmem:[#allocation17] ss:$0 sm:$0xff] }
  0x9d   :  { %1434 = vmatprep.subr.msk.bf16.mxu0 %vm133_vm0, %v1478_v44 }
 0x10f   :  { %v136_v11 = vpop.xlane.xlu0 %135  ;;  %v142_v12 = vpop.xlane.xlu1 %141 }
 0x110   :  { %v147_v13 = vmul.f32 0.015625, %v136_v11  ;;  %v149_v14 = vmul.f32 0.015625, %v142_v12 }
 0x112   :  { %v1919_v15 = vsub.f32 %v129_v0, %v147_v13  ;;  %v1921_v16 = vsub.f32 %v131_v1, %v149_v14  ;;  %v1248_v1 = vld [vmem:[%s2161_s2] ss:$0 sm:$0xff]  ;;  %v453_v13 = vsel %vm133_vm0, %v1478_v44, 0  ;;  %v1479_v14 = vld [vmem:[#allocation12 + $0x8] sm:$0xff]  }
 0x113   :  { %v139_v17 = vpop.xlane.xlu0 %138  ;;  %v145_v18 = vpop.xlane.xlu1 %144 }
 0x114   :  { %v148_v19 = vmul.f32 0.015625, %v139_v17  ;;  %v150_v20 = vmul.f32 0.015625, %v145_v18  ;;  %v155_v21 = vmul.f32 %v1919_v15, %v1919_v15  ;;  %v157_v22 = vmul.f32 %v1921_v16, %v1921_v16  ;;  %v1481_v18 = vld [vmem:[#allocation12 + $0x18] sm:$0xff]  }
 0x116   :  { %v152_v23 = vsub.f32 %v130_v2, %v148_v19  ;;  %v1927_v24 = vsub.f32 %v132_v5, %v150_v20  ;;  %v159_v25 = vsel %vm133_vm0, %v155_v21, 0.0  ;;  %v165_v26 = vsel %vm133_vm0, %v157_v22, 0.0  ;;  %v1249_v21 = vld [vmem:[#allocation14] ss:$0 sm:$0xff] }
 0x117   :  { %160 = vadd.xlane.f32.xlu0 %v159_v25  ;;  %v462_v19 = vsel %vm133_vm0, %v1481_v18, 0 }
 0x118   :  { %v156_v27 = vmul.f32 %v152_v23, %v152_v23  ;;  %v158_v28 = vmul.f32 %v1927_v24, %v1927_v24 }
 0x11a   :  { %v162_v29 = vsel %vm133_vm0, %v156_v27, 0.0  ;;  %v168_v30 = vsel %vm133_vm0, %v158_v28, 0.0 }
 0x11b   :  { %166 = vadd.xlane.f32.xlu0 %v165_v26  ;;  %163 = vadd.xlane.f32.xlu1 %v162_v29 }
 0x11f   :  { %169 = vadd.xlane.f32.xlu1 %v168_v30 }
 0x1a4   :  { %v161_v45 = vpop.xlane.xlu0 %160 }
 0x1a5   :  { %v171_v46 = vmul.f32 0.015625, %v161_v45 }
 0x1a7   :  { %v175_v47 = vadd.f32 1e-05, %v171_v46 }
 0x1a8   :  { %v164_v48 = vpop.xlane.xlu1 %163  ;;  %v167_v49 = vpop.xlane.xlu0 %166 }
 0x1a9   :  { %1482 = vrsqrt.f32 %v175_v47  ;;  %v172_v50 = vmul.f32 0.015625, %v164_v48  ;;  %v173_v51 = vmul.f32 0.015625, %v167_v49 }
 0x1ab   :  { %v176_v52 = vadd.f32 1e-05, %v172_v50  ;;  %v177_v53 = vadd.f32 1e-05, %v173_v51 }
 0x1ac   :  { %v170_v54 = vpop.xlane.xlu1 %169 }
 0x1ad   :  { %1484 = vrsqrt.f32 %v176_v52  ;;  %v174_v55 = vmul.f32 0.015625, %v170_v54 }
 0x1ae   :  { %1486 = vrsqrt.f32 %v177_v53 }
 0x1af   :  { %v178_v56 = vadd.f32 1e-05, %v174_v55 }
 0x1b1   :  { %1488 = vrsqrt.f32 %v178_v56 }
 0x1b3   :  { %v1483_v57 = vpop.eup %1482 }
 0x1b4   :  { %v183_v58 = vmul.f32 %v1483_v57, %v1919_v15  ;;  %v456_v15 = vsel %vm133_vm0, %v1479_v14, 0 }
 0x1b6   :  { %v194_v63 = vmul.f32 %v1247_v59, %v183_v58 }
 0x1b7   :  { %v1485_v60 = vpop.eup %1484 }
 0x1b8   :  { %v1487_v61 = vpop.eup %1486  ;;  %v184_v62 = vmul.f32 %v1485_v60, %v152_v23  ;;  %v205_v5 = vadd.f32 %v1248_v1, %v194_v63  ;;  %v1256_v23 = vld [vmem:[#allocation15] ss:$0 sm:$0xff] }
 0x1b9   :  { %v185_v0 = vmul.f32 %v1487_v61, %v1921_v16  ;;  %v1480_v16 = vld [vmem:[#allocation12 + $0x10] sm:$0xff]  }
 0x1ba   :  { %v195_v2 = vmul.f32 %v1247_v59, %v184_v62  ;;  %v459_v17 = vsel %vm133_vm0, %v1480_v16, 0 }
 0x1bb   :  { %v1489_v3 = vpop.eup %1488  ;;  %v196_v7 = vmul.f32 %v1247_v59, %v185_v0 }
 0x1bc   :  { %v186_v4 = vmul.f32 %v1489_v3, %v1927_v24  ;;  %v206_v6 = vadd.f32 %v1248_v1, %v195_v2 }
 0x1bd   :  { %v207_v10 = vadd.f32 %v1248_v1, %v196_v7 }
 0x1be   :  { %v209_v8 = vpack.c.bf16 %v206_v6, %v205_v5  ;;  %v197_v9 = vmul.f32 %v1247_v59, %v186_v4 }
 0x1c0   :  { %1338 = vmatprep.mubr.msk.bf16.mxu0 %vm133_vm0, %v209_v8  ;;  %1350 = vmatprep.mubr.msk.bf16.mxu1 %vm133_vm0, %v209_v8  ;;  %v208_v11 = vadd.f32 %v1248_v1, %v197_v9 }
 0x1c2   :  { %v210_v12 = vpack.c.bf16 %v208_v11, %v207_v10 }
 0x1c4   :  { %1339 = vmatmul.mubr.msk.bf16.vlgmr.msra.gmra.mrb[0].mxu0 %vm133_vm0, %v210_v12  ;;  %1351 = vmatmul.mubr.msk.bf16.vlgmr.msra.gmra.mrb[0].mxu1 %vm133_vm0, %v210_v12 }
 0x1c5   :  { %1355 = vmatpush3.bf16.xpose.msra.mxu0 %v453_v13  ;;  %1362 = vmatprep.mubr.msk.bf16.mxu0 %vm133_vm0, %v209_v8 }
 0x1c6   :  { %1435 = vmatprep.subr.msk.bf16.mxu0 %vm133_vm0, %v1479_v14 }
 0x1cd   :  { %1357 = vmatpush3.bf16.xpose.msra.mxu0 %v456_v15 }
 0x1ce   :  { %1436 = vmatprep.subr.msk.bf16.mxu0 %vm133_vm0, %v1480_v16 }
 0x1d5   :  { %1359 = vmatpush3.bf16.xpose.msra.mxu0 %v459_v17 }
 0x1d6   :  { %1437 = vmatprep.subr.msk.bf16.mxu0 %vm133_vm0, %v1481_v18 }
 0x1dd   :  { %1361 = vmatpush3.bf16.xpose.msra.mxu0 %v462_v19 }
 0x1e4   :  { %1363 = vmatmul.mubr.msk.bf16.vlgmr.msra.gmra.mrb[4].mxu0 %vm133_vm0, %v210_v12 }
 0x297   :  { %v1340_v20 = vpop.f32.mrb[0].mxu0  ;;  %v1352_v22 = vpop.f32.mrb[0].mxu1 }
 0x298   :  { %v298_v24 = vpop.f32.mrb[1].mxu0  ;;  %v398_v25 = vpop.f32.mrb[1].mxu1  ;;  %v307_v28 = vadd.f32 %v1340_v20, %v1249_v21  ;;  %v407_v29 = vadd.f32 %v1352_v22, %v1256_v23 }
 0x299   :  { %v1341_v26 = vpop.f32.mrb[2].mxu0  ;;  %v1353_v27 = vpop.f32.mrb[2].mxu1  ;;  %v299_v34 = vadd.f32 %v1249_v21, %v298_v24  ;;  %v399_v35 = vadd.f32 %v1256_v23, %v398_v25 }
 0x29a   :  { %v310_v30 = vadd.f32 %v1341_v26, %v1249_v21  ;;  %v410_v31 = vadd.f32 %v1353_v27, %v1256_v23  ;;  %v301_v32 = vpop.f32.mrb[3].mxu0  ;;  %v401_v33 = vpop.f32.mrb[3].mxu1 }
 0x29b   :  { %v302_v36 = vadd.f32 %v1249_v21, %v301_v32  ;;  %v402_v37 = vadd.f32 %v1256_v23, %v401_v33 }
 0x29c   :  { %v314_v38 = vpack.c.bf16 %v310_v30, %v307_v28  ;;  %v414_v39 = vpack.c.bf16 %v410_v31, %v407_v29 }
 0x29d   :  { %v313_v40 = vpack.c.bf16 %v302_v36, %v299_v34  ;;  %v413_v41 = vpack.c.bf16 %v402_v37, %v399_v35 }
 0x29e   :  { %316 = vst.msk [vmem:[#allocation2 + $0x8] sm:$0xff] %vm133_vm0, %v314_v38  ;;  %416 = vst.msk [vmem:[#allocation3 + $0x8] sm:$0xff] %vm133_vm0, %v414_v39 }
 0x29f   :  { %315 = vst.msk [vmem:[#allocation2] sm:$0xff] %vm133_vm0, %v313_v40  ;;  %415 = vst.msk [vmem:[#allocation3] sm:$0xff] %vm133_vm0, %v413_v41 }
 0x2b7   :  { %v1364_v42 = vpop.f32.mrb[4].mxu0 }
 0x2b8   :  { %v498_v44 = vpop.f32.mrb[5].mxu0  ;;  %v507_v46 = vadd.f32 %v1364_v42, %v1263_v43 }
 0x2b9   :  { %v1365_v45 = vpop.f32.mrb[6].mxu0  ;;  %v499_v49 = vadd.f32 %v1263_v43, %v498_v44 }
 0x2ba   :  { %v510_v47 = vadd.f32 %v1365_v45, %v1263_v43  ;;  %v501_v48 = vpop.f32.mrb[7].mxu0 }
 0x2bb   :  { %v502_v50 = vadd.f32 %v1263_v43, %v501_v48 }
 0x2bc   :  { %v514_v51 = vpack.c.bf16 %v510_v47, %v507_v46 }
 0x2bd   :  { %v513_v52 = vpack.c.bf16 %v502_v50, %v499_v49 }
 0x2be   :  { %516 = vst.msk [vmem:[#allocation4 + $0x8] sm:$0xff] %vm133_vm0, %v514_v51 }
 0x2bf   :  { %515 = vst.msk [vmem:[#allocation4] sm:$0xff] %vm133_vm0, %v513_v52 }
 0x2c0 LB: > { %v1747_v53 = vmov 0.0   ;;  %vm1748_vm1 = vmmov 0   ;;  %s1270_s2 = sshll.u32 %s1734_s1, 4  ;;  %vm537_vm2 = vcmask 130048   ;;  %s1749_s13 = smov 112   ;;  %vm812_vm3 = vcmask 261248   ;;  %s1734_s1 = sphi %s1977_s1, %s522_s1  }
 0x2c1   : > { %1366 = vmatprep.subr.bf16.mxu0 %v1747_v53  ;;  %1368 = vmatprep.mubr.msk.bf16.mxu0 %vm1748_vm1, %v1747_v53  ;;  %s524_s12 = sshra.s32 %s1270_s2, 4  ;;  %s1750_s4 = smov 96   ;;  %vm958_vm4 = vcmask 392448   ;;  %vm1104_vm5 = vcmask 523648  }
 0x2c2   : > { %1372 = vmatprep.subr.bf16.mxu1 %v1747_v53  ;;  %1374 = vmatprep.mubr.msk.bf16.mxu1 %vm1748_vm1, %v1747_v53  ;;  %s1989_s14 = sshll.u32 %s524_s12, 3  ;;  %s1751_s27 = smov 80  }
 0x2c3   : > { %s532_s17 = scalar_lea.vmem [#allocation3], %s1989_s14  ;;  %s527_s5 = scalar_lea.vmem [#allocation2], %s1989_s14 }
 0x2c4   : > { %v533_v54 = vld [vmem:[%s532_s17] sm:$0xff]  ;;  %s535_s28 = scalar_lea.vmem [#allocation4], %s1989_s14  ;;  %s1752_s16 = smov 16  }
 0x2c5   : > { %v542_v55 = vsel %vm537_vm2, %v533_v54, 0  ;;  %v528_v56 = vld [vmem:[%s527_s5] sm:$0xff]  ;;  %675 = vrot.lane.b32.xlu1 %v533_v54, %s1749_s13  ;;  %s2102_s20 = scalar_lea.vmem [#allocation5], %s1989_s14  ;;  %s1753_s22 = smov 32  }
 0x2c6   : > { %1367 = vmatpush3.bf16.xpose.msra.mxu0 %v542_v55  ;;  %v2006_v63 = vld [vmem:[%s535_s28] sm:$0xff]  ;;  %s1754_s23 = smov 48   ;;  %s522_s1 = sadd.s32 1, %s1734_s1  }
 0x2c7   : > { %1384 = vmatprep.subr.bf16.mxu0 %v1747_v53  ;;  %1373 = vmatpush3.bf16.msra.mxu1 %v2006_v63  ;;  %p519_p0 = scmp.ge.s32.totalorder %s522_s1, 2  }
 0x2c8   : > { %1378 = vmatprep.subr.bf16.mxu1 %v1747_v53  ;;  %s1755_s29 = smov (%p519_p0), [#allocation18]  }
 0x2c9   : > { %672 = vrot.lane.b32.xlu1 %v528_v56, %s1749_s13  ;;  %s1219_s30 = sshll.u32 (%p519_p0), %s1755_s29, 4  ;;  %s1220_s30 = int_to_ptr.vmem [resolvable:$true] %s1219_s30 }
 0x2ca   :  { %p1701_p2 = scmp.lt.s32.totalorder (%p519_p0), %s1220_s30, %s1220_s30 }
 0x2cd   : > { %1369 = vmatmul.mubr.msk.bf16.vlgmr.msra.gmra.mrb[0].mxu0 %vm537_vm2, %v528_v56  ;;  %818 = vrot.lane.b32.xlu1 %v528_v56, %s1750_s4 }
 0x2ce   : > { %1386 = vmatprep.mubr.msk.bf16.mxu0 %vm1748_vm1, %v1747_v53 }
 0x2d1   : > { %967 = vrot.lane.b32.xlu1 %v533_v54, %s1751_s27 }
 0x2d5   : > { %964 = vrot.lane.b32.xlu1 %v528_v56, %s1751_s27 }
 0x337   : > { %v676_v6 = vpop.permute.xlu1 %675 }
 0x338   : > { %v681_v9 = vsel %vm537_vm2, %v676_v6, 0 }
 0x33b   : > { %v673_v11 = vpop.permute.xlu1 %672 }
 0x33f   : > { %v819_v13 = vpop.permute.xlu1 %818 }
 0x343   : > { %v968_v15 = vpop.permute.xlu1 %967 }
 0x344   : > { %v973_v16 = vsel %vm537_vm2, %v968_v15, 0 }
 0x347   : > { %v965_v17 = vpop.permute.xlu1 %964 }
 0x3a0   : > { %v578_v57 = vpop.f32.mrb[0].mxu0 }
 0x3a1   : > { %v1370_v58 = vpop.f32.mrb[1].mxu0  ;;  %v585_v59 = vsel %vm537_vm2, %v578_v57, -inf }
 0x3a2   : > { %586 = vmax.xlane.f32.xlu0 %v585_v59  ;;  %v581_v60 = vpop.f32.mrb[2].mxu0 }
 0x3a3   : > { %v1371_v61 = vpop.f32.mrb[3].mxu0  ;;  %v588_v62 = vsel %vm537_vm2, %v581_v60, -inf }
 0x3a6   : > { %589 = vmax.xlane.f32.xlu0 %v588_v62 }
 0x3bc   : > { %821 = vrot.lane.b32.xlu0 %v533_v54, %s1750_s4 }
 0x42f   : > { %v587_v0 = vpop.xlane.xlu0 %586 }
 0x430   : > { %v597_v1 = vsub.f32 %v578_v57, %v587_v0  ;;  %v591_v18 = vsub.f32 -inf, %v587_v0 }
 0x432   : > { %v599_v3 = vmul.f32 1.442695, %v597_v1  ;;  %v593_v20 = vmul.f32 1.442695, %v591_v18 }
 0x433   : > { %v590_v2 = vpop.xlane.xlu0 %589 }
 0x434   : > { %v598_v4 = vsub.f32 %v581_v60, %v590_v2  ;;  %1490 = vpow2.f32 %v599_v3  ;;  %v592_v19 = vsub.f32 -inf, %v590_v2 }
 0x436   : > { %v601_v5 = vmul.f32 1.442695, %v598_v4  ;;  %v595_v21 = vmul.f32 1.442695, %v592_v19 }
 0x437   : > { %v822_v12 = vpop.permute.xlu0 %821 }
 0x438   : > { %1492 = vpow2.f32 %v601_v5  ;;  %v827_v14 = vsel %vm537_vm2, %v822_v12, 0 }
 0x439   : > { %1494 = vpow2.f32 %v593_v20 }
 0x43a   : > { %1496 = vpow2.f32 %v595_v21 }
 0x43e   : > { %v2011_v7 = vpop.eup %1490 }
 0x43f   : > { %v605_v18 = vsel %vm537_vm2, %v2011_v7, 0.0 }
 0x442   : > { %v2013_v8 = vpop.eup %1492 }
 0x443   : > { %v613_v10 = vpack.c.bf16 %v2013_v8, %v2011_v7  ;;  %v1495_v22 = vpop.eup %1494 }
 0x444   : > { %v1497_v23 = vpop.eup %1496  ;;  %v2032_v24 = vmul.f32 0.0, %v1495_v22 }
 0x445   : > { %1375 = vmatmul.mubr.msk.bf16.vlgmr.msra.gmra.mrb[0].mxu1 %vm537_vm2, %v613_v10  ;;  %v2037_v28 = vmul.f32 0.0, %v1497_v23 }
 0x446   : > { %1379 = vmatpush3.bf16.xpose.msra.mxu1 %v681_v9  ;;  %1380 = vmatprep.mubr.msk.bf16.mxu1 %vm1748_vm1, %v1747_v53 }
 0x447   : > { %1390 = vmatprep.subr.bf16.mxu1 %v1747_v53 }
 0x44d   : > { %1381 = vmatmul.mubr.msk.bf16.vlgmr.msra.gmra.mrb[4].mxu1 %vm537_vm2, %v673_v11 }
 0x44e   : > { %1391 = vmatpush3.bf16.xpose.msra.mxu1 %v827_v14  ;;  %1392 = vmatprep.mubr.msk.bf16.mxu1 %vm1748_vm1, %v1747_v53 }
 0x44f   : > { %1402 = vmatprep.subr.bf16.mxu1 %v1747_v53 }
 0x455   : > { %1393 = vmatmul.mubr.msk.bf16.vlgmr.msra.gmra.mrb[8].mxu1 %vm537_vm2, %v819_v13 }
 0x456   : > { %1403 = vmatpush3.bf16.xpose.msra.mxu1 %v973_v16  ;;  %1404 = vmatprep.mubr.msk.bf16.mxu1 %vm1748_vm1, %v1747_v53 }
 0x45d   : > { %1405 = vmatmul.mubr.msk.bf16.vlgmr.msra.gmra.mrb[12].mxu1 %vm537_vm2, %v965_v17 }
 0x518   : > { %v651_v25 = vpop.f32.mrb[0].mxu1 }
 0x519   : > { %v2035_v26 = vadd.f32 %v651_v25, %v2032_v24  ;;  %v1376_v27 = vpop.f32.mrb[1].mxu1 }
 0x51a   : > { %v654_v29 = vpop.f32.mrb[2].mxu1 }
 0x51b   : > { %v2040_v30 = vadd.f32 %v654_v29, %v2037_v28  ;;  %v1377_v31 = vpop.f32.mrb[3].mxu1 }
 0x520   : > { %v717_v32 = vpop.f32.mrb[4].mxu1 }
 0x521   : > { %v1382_v33 = vpop.f32.mrb[5].mxu1  ;;  %v724_v34 = vsel %vm537_vm2, %v717_v32, -inf }
 0x522   : > { %725 = vmax.xlane.f32.xlu1 %v724_v34  ;;  %v720_v35 = vpop.f32.mrb[6].mxu1 }
 0x523   : > { %v1383_v36 = vpop.f32.mrb[7].mxu1  ;;  %v727_v37 = vsel %vm537_vm2, %v720_v35, -inf }
 0x524   : > { %728 = vmax.xlane.f32.xlu0 %v727_v37 }
 0x528   : > { %v863_v38 = vpop.f32.mrb[8].mxu1 }
 0x529   : > { %v1394_v39 = vpop.f32.mrb[9].mxu1  ;;  %v870_v40 = vsel %vm537_vm2, %v863_v38, -inf }
 0x52a   : > { %871 = vmax.xlane.f32.xlu1 %v870_v40  ;;  %v866_v41 = vpop.f32.mrb[10].mxu1 }
 0x52b   : > { %v1395_v42 = vpop.f32.mrb[11].mxu1  ;;  %v873_v43 = vsel %vm537_vm2, %v866_v41, -inf }
 0x52e   : > { %874 = vmax.xlane.f32.xlu1 %v873_v43 }
 0x530   : > { %v1009_v44 = vpop.f32.mrb[12].mxu1 }
 0x531   : > { %v1016_v45 = vsel %vm537_vm2, %v1009_v44, -inf  ;;  %v1406_v46 = vpop.f32.mrb[13].mxu1 }
 0x532   : > { %1017 = vmax.xlane.f32.xlu0 %v1016_v45  ;;  %v1012_v47 = vpop.f32.mrb[14].mxu1 }
 0x533   : > { %v1407_v48 = vpop.f32.mrb[15].mxu1  ;;  %v1019_v49 = vsel %vm537_vm2, %v1012_v47, -inf }
 0x53f   : > { %900 = vrot.lane.b32.xlu1 %v2006_v63, %s1750_s4 }
 0x548   : > { %754 = vrot.lane.b32.xlu0 %v2006_v63, %s1749_s13 }
 0x563   : > { %1020 = vmax.xlane.f32.xlu1 %v1019_v49 }
 0x574   : > { %1046 = vrot.lane.b32.xlu1 %v2006_v63, %s1751_s27 }
 0x5af   : > { %v2054_v50 = vpop.xlane.xlu1 %725 }
 0x5b0   : > { %v736_v51 = vsub.f32 %v717_v32, %v2054_v50 }
 0x5b1   : > { %v2057_v52 = vpop.xlane.xlu0 %728 }
 0x5b2   : > { %v738_v54 = vmul.f32 1.442695, %v736_v51  ;;  %v737_v55 = vsub.f32 %v720_v35, %v2057_v52  ;;  %v730_v35 = vsub.f32 -inf, %v2054_v50  ;;  %v731_v36 = vsub.f32 -inf, %v2057_v52 }
 0x5b4   : > { %v740_v56 = vmul.f32 1.442695, %v737_v55  ;;  %1498 = vpow2.f32 %v738_v54  ;;  %v732_v37 = vmul.f32 1.442695, %v730_v35 }
 0x5b6   : > { %1500 = vpow2.f32 %v740_v56 }
 0x5b7   : > { %v2060_v57 = vpop.xlane.xlu1 %871 }
 0x5b8   : > { %v882_v58 = vsub.f32 %v863_v38, %v2060_v57  ;;  %v734_v38 = vmul.f32 1.442695, %v731_v36 }
 0x5ba   : > { %v884_v59 = vmul.f32 1.442695, %v882_v58 }
 0x5bb   : > { %v2063_v60 = vpop.xlane.xlu1 %874 }
 0x5bc   : > { %v883_v61 = vsub.f32 %v866_v41, %v2063_v60  ;;  %1502 = vpow2.f32 %v884_v59  ;;  %v877_v39 = vsub.f32 -inf, %v2063_v60 }
 0x5be   : > { %v886_v62 = vmul.f32 1.442695, %v883_v61  ;;  %v1499_v63 = vpop.eup %1498  ;;  %v880_v42 = vmul.f32 1.442695, %v877_v39 }
 0x5bf   : > { %v2066_v0 = vpop.xlane.xlu0 %1017  ;;  %v744_v2 = vsel %vm537_vm2, %v1499_v63, 0.0  ;;  %v901_v11 = vpop.permute.xlu1 %900 }
 0x5c0   : > { %v1028_v1 = vsub.f32 %v1009_v44, %v2066_v0  ;;  %v1501_v3 = vpop.eup %1500  ;;  %1504 = vpow2.f32 %v886_v62  ;;  %745 = vadd.xlane.f32.xlu0 %v744_v2 }
 0x5c1   : > { %v747_v5 = vsel %vm537_vm2, %v1501_v3, 0.0  ;;  %v752_v6 = vpack.c.bf16 %v1501_v3, %v1499_v63 }
 0x5c2   : > { %v1030_v4 = vmul.f32 1.442695, %v1028_v1  ;;  %748 = vadd.xlane.f32.xlu1 %v747_v5 }
 0x5c3   : > { %v755_v9 = vpop.permute.xlu0 %754 }
 0x5c4   : > { %1385 = vmatpush3.bf16.msra.mxu0 %v755_v9  ;;  %1506 = vpow2.f32 %v1030_v4 }
 0x5c5   : > { %1396 = vmatprep.subr.bf16.mxu0 %v1747_v53 }
 0x5c6   : > { %v1503_v10 = vpop.eup %1502 }
 0x5c7   : > { %1387 = vmatmul.mubr.msk.bf16.vlgmr.msra.gmra.mrb[4].mxu0 %vm537_vm2, %v752_v6  ;;  %v890_v12 = vsel %vm537_vm2, %v1503_v10, 0.0 }
 0x5c8   : > { %1397 = vmatpush3.bf16.msra.mxu0 %v901_v11  ;;  %1398 = vmatprep.mubr.msk.bf16.mxu0 %vm1748_vm1, %v1747_v53 }
 0x5c9   : > { %891 = vadd.xlane.f32.xlu0 %v890_v12  ;;  %1408 = vmatprep.subr.bf16.mxu0 %v1747_v53 }
 0x5ca   : > { %v1505_v13 = vpop.eup %1504 }
 0x5cb   : > { %v893_v14 = vsel %vm537_vm2, %v1505_v13, 0.0  ;;  %v898_v15 = vpack.c.bf16 %v1505_v13, %v1503_v10 }
 0x5cd   : > { %894 = vadd.xlane.f32.xlu0 %v893_v14 }
 0x5ce   : > { %v1507_v16 = vpop.eup %1506 }
 0x5cf   : > { %1399 = vmatmul.mubr.msk.bf16.vlgmr.msra.gmra.mrb[8].mxu0 %vm537_vm2, %v898_v15  ;;  %v1036_v17 = vsel %vm537_vm2, %v1507_v16, 0.0 }
 0x5d0   : > { %1410 = vmatprep.mubr.msk.bf16.mxu0 %vm1748_vm1, %v1747_v53  ;;  %1037 = vadd.xlane.f32.xlu1 %v1036_v17  ;;  %v608_v53 = vsel %vm537_vm2, %v2013_v8, 0.0  ;;  %v876_v8 = vsub.f32 -inf, %v2060_v57 }
 0x5d2   : > { %v878_v41 = vmul.f32 1.442695, %v876_v8 }
 0x5d4   : > { %606 = vadd.xlane.f32.xlu1 %v605_v18 }
 0x5f0   : > { %v2084_v19 = vpop.xlane.xlu1 %1020 }
 0x5f1   : > { %v1029_v20 = vsub.f32 %v1012_v47, %v2084_v19 }
 0x5f3   : > { %v1032_v21 = vmul.f32 1.442695, %v1029_v20 }
 0x5f4   : > { %v1047_v22 = vpop.permute.xlu1 %1046 }
 0x5f5   : > { %1409 = vmatpush3.bf16.msra.mxu0 %v1047_v22  ;;  %1508 = vpow2.f32 %v1032_v21  ;;  %v1022_v22 = vsub.f32 -inf, %v2066_v0 }
 0x5ff   : > { %v1509_v23 = vpop.eup %1508 }
 0x600   : > { %v1039_v25 = vsel %vm537_vm2, %v1509_v23, 0.0  ;;  %v1044_v27 = vpack.c.bf16 %v1509_v23, %v1507_v16  ;;  %v1023_v23 = vsub.f32 -inf, %v2084_v19 }
 0x601   : > { %1040 = vadd.xlane.f32.xlu0 %v1039_v25  ;;  %v1024_v25 = vmul.f32 1.442695, %v1022_v22 }
 0x602   : > { %1411 = vmatmul.mubr.msk.bf16.vlgmr.msra.gmra.mrb[12].mxu0 %vm537_vm2, %v1044_v27  ;;  %v1026_v27 = vmul.f32 1.442695, %v1023_v23 }
 0x605   : > { %609 = vadd.xlane.f32.xlu0 %v608_v53 }
 0x64d   : > { %v746_v40 = vpop.xlane.xlu0 %745 }
 0x64f   : > { %v749_v7 = vpop.xlane.xlu1 %748 }
 0x65d   : > { %v2091_v29 = vpop.xlane.xlu1 %1037 }
 0x661   : > { %v607_v31 = vpop.xlane.xlu1 %606 }
 0x662   : > { %v611_v32 = vadd.f32 %v607_v31, %v2032_v24  ;;  %v892_v24 = vpop.xlane.xlu0 %891 }
 0x664   : > { %1510 = vrcp.f32 %v611_v32 }
 0x665   : > { %1512 = vpow2.f32 %v732_v37 }
 0x666   : > { %1514 = vpow2.f32 %v734_v38  ;;  %v895_v44 = vpop.xlane.xlu0 %894 }
 0x667   : > { %1516 = vpow2.f32 %v878_v41 }
 0x668   : > { %1518 = vpow2.f32 %v880_v42 }
 0x66e   : > { %v1511_v33 = vpop.eup %1510 }
 0x66f   : > { %v662_v34 = vmul.f32 %v1511_v33, %v2035_v26  ;;  %v1513_v43 = vpop.eup %1512 }
 0x670   : > { %v1515_v26 = vpop.eup %1514  ;;  %v742_v45 = vmul.f32 0.0, %v1513_v43 }
 0x671   : > { %v743_v47 = vmul.f32 0.0, %v1515_v26  ;;  %v1517_v50 = vpop.eup %1516  ;;  %v1538_v26 = vld [vmem:[%s2168_s9] sm:$0xff] (%p519_p0)  }
 0x672   : > { %v750_v46 = vadd.f32 %v746_v40, %v742_v45  ;;  %v1519_v51 = vpop.eup %1518  ;;  %v888_v54 = vmul.f32 0.0, %v1517_v50  ;;  %1438 = vmatprep.subr.msk.bf16.mxu0 (%p519_p0), %vm133_vm0, %v1538_v26  ;;  %v1541_v50 = vld [vmem:[%s2168_s9 + $0x18] sm:$0xff] (%p519_p0)  }
 0x673   : > { %v751_v49 = vadd.f32 %v749_v7, %v743_v47  ;;  %v889_v57 = vmul.f32 0.0, %v1519_v51  ;;  %v1159_v51 = vsel (%p519_p0), %vm133_vm0, %v1541_v50, 0 }
 0x674   : > { %1520 = vrcp.f32 %v750_v46  ;;  %v896_v56 = vadd.f32 %v892_v24, %v888_v54 }
 0x675   : > { %1522 = vrcp.f32 %v751_v49  ;;  %v897_v58 = vadd.f32 %v895_v44, %v889_v57  ;;  %v1539_v44 = vld [vmem:[%s2168_s9 + $0x8] sm:$0xff] (%p519_p0)  }
 0x67e   : > { %v1521_v62 = vpop.eup %1520 }
 0x67f   : > { %v1523_v4 = vpop.eup %1522 }
 0x68e   : > { %v1041_v48 = vpop.xlane.xlu0 %1040 }
 0x692   : > { %v610_v52 = vpop.xlane.xlu0 %609 }
 0x693   : > { %v612_v55 = vadd.f32 %v610_v52, %v2037_v28 }
 0x695   : > { %1524 = vrcp.f32 %v612_v55 }
 0x696   : > { %1526 = vrcp.f32 %v896_v56 }
 0x697   : > { %1528 = vrcp.f32 %v897_v58 }
 0x698   : > { %1530 = vpow2.f32 %v1024_v25 }
 0x699   : > { %1532 = vpow2.f32 %v1026_v27 }
 0x69a   : > { %v794_v59 = vpop.f32.mrb[4].mxu0 }
 0x69b   : > { %v801_v60 = vadd.f32 %v794_v59, %v742_v45  ;;  %v1388_v61 = vpop.f32.mrb[5].mxu0  ;;  %v1150_v45 = vsel (%p519_p0), %vm133_vm0, %v1538_v26, 0 }
 0x69c   : > { %v797_v63 = vpop.f32.mrb[6].mxu0  ;;  %1415 = vmatpush3.bf16.xpose.msra.mxu0 (%p519_p0), %v1150_v45 }
 0x69d   : > { %v805_v1 = vmul.f32 %v1521_v62, %v801_v60  ;;  %v802_v2 = vadd.f32 %v797_v63, %v743_v47  ;;  %v1389_v3 = vpop.f32.mrb[7].mxu0  ;;  %1439 = vmatprep.subr.msk.bf16.mxu0 (%p519_p0), %vm133_vm0, %v1539_v44  ;;  %v1153_v47 = vsel (%p519_p0), %vm133_vm0, %v1539_v44, 0 }
 0x69f   : > { %v806_v5 = vmul.f32 %v1523_v4, %v802_v2  ;;  %v1525_v6 = vpop.eup %1524 }
 0x6a0   : > { %v663_v28 = vmul.f32 %v1525_v6, %v2040_v30  ;;  %v1527_v14 = vpop.eup %1526 }
 0x6a1   : > { %v807_v9 = vpack.c.bf16 %v806_v5, %v805_v1  ;;  %v1529_v20 = vpop.eup %1528 }
 0x6a2   : > { %v940_v10 = vpop.f32.mrb[8].mxu0  ;;  %v664_v13 = vpack.c.bf16 %v663_v28, %v662_v34  ;;  %v1531_v53 = vpop.eup %1530 }
 0x6a3   : > { %v947_v11 = vadd.f32 %v940_v10, %v888_v54  ;;  %809 = vrot.lane.b32.xlu1 %v807_v9, %s1752_s16  ;;  %v1400_v12 = vpop.f32.mrb[9].mxu0  ;;  %v1533_v7 = vpop.eup %1532  ;;  %v1034_v31 = vmul.f32 0.0, %v1531_v53  ;;  %v1283_v54 = vld [vmem:[%s2169_s10] ss:$0 sm:$0xff] (%p519_p0) }
 0x6a4   : > { %v943_v15 = vpop.f32.mrb[10].mxu0  ;;  %667 = vst.msk [vmem:[%s2102_s20] sm:$0xff] %vm537_vm2, %v664_v13  ;;  %v1035_v33 = vmul.f32 0.0, %v1533_v7  ;;  %1417 = vmatpush3.bf16.xpose.msra.mxu0 (%p519_p0), %v1153_v47 }
 0x6a5   : > { %v951_v16 = vmul.f32 %v1527_v14, %v947_v11  ;;  %v948_v17 = vadd.f32 %v943_v15, %v889_v57  ;;  %v1401_v18 = vpop.f32.mrb[11].mxu0  ;;  %v1042_v32 = vadd.f32 %v2091_v29, %v1034_v31 }
 0x6a6   : > { %v1043_v34 = vadd.f32 %v1041_v48, %v1035_v33  ;;  %v1540_v48 = vld [vmem:[%s2168_s9 + $0x10] sm:$0xff] (%p519_p0)   ;;  %s1696_s9 = scalar_lea.vmem (%p519_p0), %s1220_s30, 512 }
 0x6a7   : > { %v952_v21 = vmul.f32 %v1529_v20, %v948_v17  ;;  %1534 = vrcp.f32 %v1042_v32  ;;  %1440 = vmatprep.subr.msk.bf16.mxu0 (%p519_p0), %vm133_vm0, %v1540_v48  ;;  %v1156_v49 = vsel (%p519_p0), %vm133_vm0, %v1540_v48, 0  ;;  %p1697_p1 = scmp.ne.s32.totalorder (%p519_p0), %s1220_s30, %s1696_s9  ;;  %p1702_p3 = scmp.lt.s32.totalorder (%p519_p0), %s1696_s9, %s1696_s9 }
 0x6a8   : > { %1536 = vrcp.f32 %v1043_v34 }
 0x6a9   : > { %v953_v30 = vpack.c.bf16 %v952_v21, %v951_v16  ;;  %p1703_p4 = por (%p519_p0), %p1702_p3, %p1701_p2 }
 0x6ab   : > { %955 = vrot.lane.b32.xlu0 %v953_v30, %s1753_s22  ;;  %p1704_p5 = pnand (%p519_p0), %p1703_p4, %p1697_p1 }
 0x6ac   :  { %1419 = vmatpush3.bf16.xpose.msra.mxu0 (%p519_p0), %v1156_v49 }
 0x6ad   :  { %1441 = vmatprep.subr.msk.bf16.mxu0 (%p519_p0), %vm133_vm0, %v1541_v50 }
 0x6b1   : > { %v1535_v0 = vpop.eup %1534 }
 0x6b2   : > { %v1537_v40 = vpop.eup %1536 }
 0x6b4   :  { %1421 = vmatpush3.bf16.xpose.msra.mxu0 (%p519_p0), %v1159_v51 }
 0x6d5   : > { %v1086_v35 = vpop.f32.mrb[12].mxu0 }
 0x6d6   : > { %v1093_v36 = vadd.f32 %v1086_v35, %v1034_v31  ;;  %v1412_v37 = vpop.f32.mrb[13].mxu0 }
 0x6d7   : > { %v1089_v19 = vpop.f32.mrb[14].mxu0 }
 0x6d8   : > { %v1097_v38 = vmul.f32 %v1535_v0, %v1093_v36  ;;  %v1094_v8 = vadd.f32 %v1089_v19, %v1035_v33  ;;  %v1413_v39 = vpop.f32.mrb[15].mxu0 }
 0x6da   : > { %v1098_v41 = vmul.f32 %v1537_v40, %v1094_v8 }
 0x6dc   : > { %v1099_v42 = vpack.c.bf16 %v1098_v41, %v1097_v38 }
 0x6de   : > { %1101 = vrot.lane.b32.xlu1 %v1099_v42, %s1754_s23 }
 0x715   : > { %v810_v29 = vpop.permute.xlu1 %809 }
 0x716   : > { %813 = vst.msk [vmem:[%s2102_s20] sm:$0xff] %vm812_vm3, %v810_v29 }
 0x71d   : > { %v956_v24 = vpop.permute.xlu0 %955 }
 0x71e   : > { %959 = vst.msk [vmem:[%s2102_s20] sm:$0xff] %vm958_vm4, %v956_v24 }
 0x74b   :  { %521 = sbr.rel (!%p519_p0) target bundleno = 704 (0x2c0), region = 103 }
 0x750   : > { %v1102_v43 = vpop.permute.xlu1 %1101 }
 0x751   : > { %1105 = vst.msk [vmem:[%s2102_s20] sm:$0xff] %vm1104_vm5, %v1102_v43 }
 0x758   :  { %v1106_v46 = vld [vmem:[#allocation5] sm:$0xff]  ;;  %v1107_v52 = vld [vmem:[#allocation5 + $0x8] sm:$0xff] }
 0x759   :  { %1422 = vmatprep.mubr.msk.bf16.mxu0 %vm133_vm0, %v1106_v46 }
 0x75a   :  { %1423 = vmatmul.mubr.msk.bf16.vlgmr.msra.gmra.mrb[0].mxu0 %vm133_vm0, %v1107_v52 }
 0x82d   :  { %v1424_v55 = vpop.f32.mrb[0].mxu0 }
 0x82e   :  { %v1204_v56 = vadd.f32 %v1424_v55, %v1283_v54  ;;  %v1195_v57 = vpop.f32.mrb[1].mxu0 }
 0x82f   :  { %v1196_v58 = vadd.f32 %v1283_v54, %v1195_v57  ;;  %v1425_v59 = vpop.f32.mrb[2].mxu0 }
 0x830   :  { %1212 = vst.msk [vmem:[#allocation18 + $0x10] sm:$0xff] %vm133_vm0, %v1204_v56  ;;  %v1207_v60 = vadd.f32 %v1425_v59, %v1283_v54  ;;  %v1198_v61 = vpop.f32.mrb[3].mxu0 }
 0x831   :  { %1210 = vst.msk [vmem:[#allocation18] sm:$0xff] %vm133_vm0, %v1196_v58  ;;  %v1199_v62 = vadd.f32 %v1283_v54, %v1198_v61 }
 0x832   :  { %1213 = vst.msk [vmem:[#allocation18 + $0x18] sm:$0xff] %vm133_vm0, %v1207_v60 }
 0x833   :  { %1211 = vst.msk [vmem:[#allocation18 + $0x8] sm:$0xff] %vm133_vm0, %v1199_v62 }
 0x834   :  { %1707 = shalt.err (!%p1704_p5)
}
 0x835   :  { %s1708_s2 = scalar_lea.hbm %s2170_s11, 512 }
 0x836   :  { %p1709_p6 = scmp.ne.s32.totalorder %s2170_s11, %s1708_s2  ;;  %p1712_p7 = scmp.lt.u32.totalorder %s1708_s2, %s2170_s11 }
 0x838   :  { %p1714_p8 = pnand %p1712_p7, %p1709_p6 }
 0x83a   :  { %1717 = shalt.err (!%p1714_p8)
}
 0x83b   :  { %1225 = dma.vmem_to_hbm [thread:$0]  %s1220_s30, 512, %s2170_s11, [#allocation8], %s1742_s7, %s1742_s7, %s1743_s15  }
 0x83c   :  { %1730 = dma.done.wait [#allocation8], 512  }
 0x83d   :  { %1731 = vsyncadd [#allocation8], 4294966784 }
 0x83e   :  { %1229 = vsyncpa [#allocation7], 1 }
 0x83f   :  { %1230 = vsyncpa [#allocation10], 1 }
 0x840   :  { %1231 = vsyncpa [#allocation13], 1 }
 0x841   :  { %1232 = vsyncpa [#allocation16], 1 }
 0x842   :  { %1233 = vsyncpa [#allocation8], 1 }

// kernel: tpu_custom_call.1
= control target key start
LH: loop header
LB: loop body
LE: loop exit
PB: predicated region body
PF: predicated region fallthrough
CT: control target
= control target key end

     0   :  { %16 = vsyncpa [#allocation7], 0  ;;  %s2159_s0 = inlined_call_operand.hbm [shape: f32[32,64], index: 0, kind: input, shape index: {}]   ;;  %s2160_s1 = inlined_call_operand.vmem [shape: f32[1,64], index: 1, kind: input, shape index: {}]   ;;  %s2161_s2 = inlined_call_operand.vmem [shape: f32[1,64], index: 2, kind: input, shape index: {}]   ;;  %s2162_s3 = inlined_call_operand.hbm [shape: bf16[64,64], index: 3, kind: input, shape index: {}]   ;;  %s2163_s4 = inlined_call_operand.hbm [shape: bf16[64,64], index: 4, kind: input, shape index: {}]   ;;  %s2164_s5 = inlined_call_operand.hbm [shape: bf16[64,64], index: 5, kind: input, shape index: {}]   ;;  %s2165_s6 = inlined_call_operand.hbm [shape: f32[1,64], index: 6, kind: input, shape index: {}]   ;;  %s2166_s7 = inlined_call_operand.hbm [shape: f32[1,64], index: 7, kind: input, shape index: {}]   ;;  %s2167_s8 = inlined_call_operand.hbm [shape: f32[1,64], index: 8, kind: input, shape index: {}]   ;;  %s2168_s9 = inlined_call_operand.vmem [shape: bf16[64,64], index: 9, kind: input, shape index: {}]   ;;  %s2169_s10 = inlined_call_operand.vmem [shape: f32[1,64], index: 10, kind: input, shape index: {}]   ;;  %s2170_s11 = inlined_call_operand.hbm [shape: f32[32,64], index: 11, kind: output, shape index: {}]  }
   0x1   :  { %17 = vsyncpa [#allocation10], 0 }
   0x2   :  { %18 = vsyncpa [#allocation13], 0 }
   0x3   :  { %19 = vsyncpa [#allocation16], 0 }
   0x4   :  { %20 = vsyncpa [#allocation8], 0  ;;  %s1736_s17 = smov [#allocation9]   ;;  %s1542_s21 = scalar_lea.hbm %s2162_s3, 512 }
   0x5   :  { %s42_s18 = sshll.u32 %s1736_s17, 4  ;;  %p1543_p0 = scmp.ne.s32.totalorder %s2162_s3, %s1542_s21  ;;  %s43_s18 = int_to_ptr.vmem [resolvable:$true] %s42_s18 }
   0x6   :  { %p1546_p1 = scmp.lt.u32.totalorder %s1542_s21, %s2162_s3 }
   0x8   :  { %p1548_p2 = pnand %p1546_p1, %p1543_p0 }
   0xa   :  { %1551 = shalt.err (!%p1548_p2)
}
   0xb   :  { %s1552_s26 = scalar_lea.vmem %s43_s18, 512  ;;  %p1557_p4 = scmp.lt.s32.totalorder %s43_s18, %s43_s18 }
   0xc   :  { %p1553_p3 = scmp.ne.s32.totalorder %s43_s18, %s1552_s26  ;;  %p1558_p5 = scmp.lt.s32.totalorder %s1552_s26, %s1552_s26 }
   0xe   :  { %p1559_p6 = por %p1558_p5, %p1557_p4 }
  0x10   :  { %p1560_p7 = pnand %p1559_p6, %p1553_p3 }
  0x12   :  { %1563 = shalt.err (!%p1560_p7)
}
  0x13   :  { %s1737_s27 = smov 64   ;;  %s1738_s28 = smov 4  }
  0x14   :  { %48 = dma.hbm_to_vmem [thread:$0]  %s2162_s3, 512, %s43_s18, [#allocation10], %s1737_s27, %s1737_s27, %s1738_s28  }
  0x15   :  { %s1739_s12 = smov [#allocation12]   ;;  %s1740_s14 = smov [#allocation15]  }
  0x16   :  { %s66_s13 = sshll.u32 %s1739_s12, 4  ;;  %s89_s15 = sshll.u32 %s1740_s14, 4  ;;  %s67_s13 = int_to_ptr.vmem [resolvable:$true] %s66_s13  ;;  %s90_s15 = int_to_ptr.vmem [resolvable:$true] %s89_s15 }
  0x17   :  { %s1564_s19 = scalar_lea.hbm %s2164_s5, 512 }
  0x18   :  { %p1565_p8 = scmp.ne.s32.totalorder %s2164_s5, %s1564_s19  ;;  %p1568_p9 = scmp.lt.u32.totalorder %s1564_s19, %s2164_s5 }
  0x1a   :  { %p1570_p10 = pnand %p1568_p9, %p1565_p8 }
  0x1c   :  { %1573 = shalt.err (!%p1570_p10)
}
  0x1d   :  { %s1574_s3 = scalar_lea.vmem %s67_s13, 512  ;;  %p1579_p12 = scmp.lt.s32.totalorder %s67_s13, %s67_s13 }
  0x1e   :  { %p1575_p11 = scmp.ne.s32.totalorder %s67_s13, %s1574_s3  ;;  %p1580_p13 = scmp.lt.s32.totalorder %s1574_s3, %s1574_s3 }
  0x20   :  { %p1581_p0 = por %p1580_p13, %p1579_p12 }
  0x22   :  { %p1582_p1 = pnand %p1581_p0, %p1575_p11 }
  0x24   :  { %1585 = shalt.err (!%p1582_p1)
}
  0x25   :  { %72 = dma.hbm_to_vmem [thread:$0]  %s2164_s5, 512, %s67_s13, [#allocation13], %s1737_s27, %s1737_s27, %s1738_s28  }
  0x26   :  { %s1586_s29 = scalar_lea.hbm %s2166_s7, 16 }
  0x27   :  { %p1587_p2 = scmp.ne.s32.totalorder %s2166_s7, %s1586_s29  ;;  %p1590_p3 = scmp.lt.u32.totalorder %s1586_s29, %s2166_s7 }
  0x29   :  { %p1592_p4 = pnand %p1590_p3, %p1587_p2 }
  0x2b   :  { %1595 = shalt.err (!%p1592_p4)
}
  0x2c   :  { %s1596_s17 = scalar_lea.vmem %s90_s15, 16  ;;  %s1600_s19 = scalar_lea.vmem %s90_s15, 32 }
  0x2d   :  { %p1597_p5 = scmp.ne.s32.totalorder %s90_s15, %s1596_s17  ;;  %p1601_p6 = scmp.lt.s32.totalorder %s90_s15, %s90_s15 }
  0x2e   :  { %p1602_p7 = scmp.lt.s32.totalorder %s1600_s19, %s1596_s17 }
  0x30   :  { %p1603_p8 = por %p1602_p7, %p1601_p6 }
  0x32   :  { %p1604_p9 = pnand %p1603_p8, %p1597_p5 }
  0x34   :  { %1607 = shalt.err (!%p1604_p9)
}
  0x35   :  { %92 = dma.hbm_to_vmem [thread:$0]  %s2166_s7, 16, %s90_s15, [#allocation16]  }
  0x36   :  { %s1741_s20 = smov [#allocation6]   ;;  %s1608_s3 = scalar_lea.hbm %s2159_s0, 512 }
  0x37   :  { %s26_s21 = sshll.u32 %s1741_s20, 4  ;;  %p1609_p10 = scmp.ne.s32.totalorder %s2159_s0, %s1608_s3  ;;  %s27_s21 = int_to_ptr.vmem [resolvable:$true] %s26_s21 }
  0x38   :  { %p1612_p11 = scmp.lt.u32.totalorder %s1608_s3, %s2159_s0 }
  0x3a   :  { %p1614_p12 = pnand %p1612_p11, %p1609_p10 }
  0x3c   :  { %1617 = shalt.err (!%p1614_p12)
}
  0x3d   :  { %s1618_s29 = scalar_lea.vmem %s27_s21, 512  ;;  %p1623_p0 = scmp.lt.s32.totalorder %s27_s21, %s27_s21 }
  0x3e   :  { %p1619_p13 = scmp.ne.s32.totalorder %s27_s21, %s1618_s29  ;;  %p1624_p1 = scmp.lt.s32.totalorder %s1618_s29, %s1618_s29 }
  0x40   :  { %p1625_p2 = por %p1624_p1, %p1623_p0 }
  0x42   :  { %p1626_p3 = pnand %p1625_p2, %p1619_p13 }
  0x44   :  { %1629 = shalt.err (!%p1626_p3)
}
  0x45   :  { %s1742_s7 = smov 128   ;;  %s1743_s15 = smov 8  }
  0x46   :  { %32 = dma.hbm_to_vmem [thread:$0]  %s2159_s0, 512, %s27_s21, [#allocation7], %s1742_s7, %s1742_s7, %s1743_s15  }
  0x47   :  { %s1744_s14 = smov [#allocation11]   ;;  %s1745_s17 = smov [#allocation14]  }
  0x48   :  { %s54_s16 = sshll.u32 %s1744_s14, 4  ;;  %s79_s19 = sshll.u32 %s1745_s17, 4  ;;  %s55_s16 = int_to_ptr.vmem [resolvable:$true] %s54_s16  ;;  %s80_s19 = int_to_ptr.vmem [resolvable:$true] %s79_s19 }
  0x49   :  { %s1630_s20 = scalar_lea.hbm %s2163_s4, 512 }
  0x4a   :  { %p1631_p4 = scmp.ne.s32.totalorder %s2163_s4, %s1630_s20  ;;  %p1634_p5 = scmp.lt.u32.totalorder %s1630_s20, %s2163_s4 }
  0x4c   :  { %p1636_p6 = pnand %p1634_p5, %p1631_p4 }
  0x4e   :  { %1639 = shalt.err (!%p1636_p6)
}
  0x4f   :  { %s1640_s0 = scalar_lea.vmem %s55_s16, 512  ;;  %p1645_p8 = scmp.lt.s32.totalorder %s55_s16, %s55_s16 }
  0x50   :  { %p1641_p7 = scmp.ne.s32.totalorder %s55_s16, %s1640_s0  ;;  %p1646_p9 = scmp.lt.s32.totalorder %s1640_s0, %s1640_s0 }
  0x52   :  { %p1647_p10 = por %p1646_p9, %p1645_p8 }
  0x54   :  { %p1648_p11 = pnand %p1647_p10, %p1641_p7 }
  0x56   :  { %1651 = shalt.err (!%p1648_p11)
}
  0x57   :  { %60 = dma.hbm_to_vmem [thread:$0]  %s2163_s4, 512, %s55_s16, [#allocation10], %s1737_s27, %s1737_s27, %s1738_s28  }
  0x58   :  { %s1652_s29 = scalar_lea.hbm %s2165_s6, 16 }
  0x59   :  { %p1653_p12 = scmp.ne.s32.totalorder %s2165_s6, %s1652_s29  ;;  %p1656_p13 = scmp.lt.u32.totalorder %s1652_s29, %s2165_s6 }
  0x5b   :  { %p1658_p0 = pnand %p1656_p13, %p1653_p12 }
  0x5d   :  { %1661 = shalt.err (!%p1658_p0)
}
  0x5e   :  { %s1662_s5 = scalar_lea.vmem %s80_s19, 16  ;;  %s1666_s13 = scalar_lea.vmem %s80_s19, 32 }
  0x5f   :  { %p1663_p1 = scmp.ne.s32.totalorder %s80_s19, %s1662_s5  ;;  %p1667_p2 = scmp.lt.s32.totalorder %s80_s19, %s80_s19 }
  0x60   :  { %p1668_p3 = scmp.lt.s32.totalorder %s1666_s13, %s1662_s5 }
  0x62   :  { %p1669_p4 = por %p1668_p3, %p1667_p2 }
  0x64   :  { %p1670_p5 = pnand %p1669_p4, %p1663_p1 }
  0x66   :  { %1673 = shalt.err (!%p1670_p5)
}
  0x67   :  { %82 = dma.hbm_to_vmem [thread:$0]  %s2165_s6, 16, %s80_s19, [#allocation13]  }
  0x68   :  { %s1746_s28 = smov [#allocation17]   ;;  %s1674_s23 = scalar_lea.hbm %s2167_s8, 16 }
  0x69   :  { %s99_s16 = sshll.u32 %s1746_s28, 4  ;;  %p1675_p6 = scmp.ne.s32.totalorder %s2167_s8, %s1674_s23  ;;  %s100_s16 = int_to_ptr.vmem [resolvable:$true] %s99_s16 }
  0x6a   :  { %p1678_p7 = scmp.lt.u32.totalorder %s1674_s23, %s2167_s8 }
  0x6c   :  { %p1680_p8 = pnand %p1678_p7, %p1675_p6 }
  0x6e   :  { %1683 = shalt.err (!%p1680_p8)
}
  0x6f   :  { %s1684_s24 = scalar_lea.vmem %s100_s16, 16  ;;  %s1688_s6 = scalar_lea.vmem %s100_s16, 32 }
  0x70   :  { %p1685_p9 = scmp.ne.s32.totalorder %s100_s16, %s1684_s24  ;;  %p1689_p10 = scmp.lt.s32.totalorder %s100_s16, %s100_s16 }
  0x71   :  { %p1690_p11 = scmp.lt.s32.totalorder %s1688_s6, %s1684_s24 }
  0x73   :  { %p1691_p12 = por %p1690_p11, %p1689_p10 }
  0x75   :  { %p1692_p13 = pnand %p1691_p12, %p1685_p9 }
  0x77   :  { %1695 = shalt.err (!%p1692_p13)
}
  0x78   :  { %102 = dma.hbm_to_vmem [thread:$0]  %s2167_s8, 16, %s100_s16, [#allocation16]  }
  0x79   :  { %1722 = dma.done.wait [#allocation7], 512  }
  0x7a   :  { %1723 = vsyncadd [#allocation7], 4294966784 }
  0x7b   :  { %1724 = dma.done.wait [#allocation10], 1024  }
  0x7c   :  { %1725 = vsyncadd [#allocation10], 4294966272 }
  0x7d   :  { %1726 = dma.done.wait [#allocation13], 528  }
  0x7e   :  { %1727 = vsyncadd [#allocation13], 4294966768 }
  0x7f   :  { %1728 = dma.done.wait [#allocation16], 32  }
  0x80   :  { %1729 = vsyncadd [#allocation16], 4294967264  ;;  %vm133_vm0 = vcmask 523264   ;;  %v129_v0 = vld [vmem:[#allocation6] sm:$0xff]  ;;  %v131_v1 = vld [vmem:[#allocation6 + $0x10] sm:$0xff] }
  0x81   :  { %v130_v2 = vld [vmem:[#allocation6 + $0x8] sm:$0xff]  ;;  %v134_v3 = vsel %vm133_vm0, %v129_v0, 0.0  ;;  %v140_v4 = vsel %vm133_vm0, %v131_v1, 0.0  ;;  %v132_v5 = vld [vmem:[#allocation6 + $0x18] sm:$0xff]  ;;  %v1470_v8 = vld [vmem:[#allocation9] sm:$0xff]  }
  0x82   :  { %135 = vadd.xlane.f32.xlu0 %v134_v3  ;;  %141 = vadd.xlane.f32.xlu1 %v140_v4  ;;  %v137_v6 = vsel %vm133_vm0, %v130_v2, 0.0  ;;  %v143_v7 = vsel %vm133_vm0, %v132_v5, 0.0  ;;  %v1471_v9 = vld [vmem:[#allocation11] sm:$0xff]   ;;  %v253_v10 = vsel %vm133_vm0, %v1470_v8, 0  ;;  %v1472_v32 = vld [vmem:[#allocation9 + $0x8] sm:$0xff]   ;;  %v1474_v36 = vld [vmem:[#allocation9 + $0x10] sm:$0xff]  }
  0x83   :  { %1426 = vmatprep.subr.msk.bf16.mxu0 %vm133_vm0, %v1470_v8  ;;  %1430 = vmatprep.subr.msk.bf16.mxu1 %vm133_vm0, %v1471_v9  ;;  %v353_v31 = vsel %vm133_vm0, %v1471_v9, 0  ;;  %v1473_v33 = vld [vmem:[#allocation11 + $0x8] sm:$0xff]   ;;  %v256_v34 = vsel %vm133_vm0, %v1472_v32, 0  ;;  %v1475_v37 = vld [vmem:[#allocation11 + $0x10] sm:$0xff]   ;;  %v259_v38 = vsel %vm133_vm0, %v1474_v36, 0  ;;  %v1476_v40 = vld [vmem:[#allocation9 + $0x18] sm:$0xff]  }
  0x84   :  { %1331 = vmatpush3.bf16.xpose.msra.mxu0 %v253_v10  ;;  %1343 = vmatpush3.bf16.xpose.msra.mxu1 %v353_v31  ;;  %v356_v35 = vsel %vm133_vm0, %v1473_v33, 0  ;;  %v359_v39 = vsel %vm133_vm0, %v1475_v37, 0  ;;  %v1477_v41 = vld [vmem:[#allocation11 + $0x18] sm:$0xff]   ;;  %v262_v42 = vsel %vm133_vm0, %v1476_v40, 0  ;;  %v1478_v44 = vld [vmem:[#allocation12] sm:$0xff]  }
  0x85   :  { %1427 = vmatprep.subr.msk.bf16.mxu0 %vm133_vm0, %v1472_v32  ;;  %1431 = vmatprep.subr.msk.bf16.mxu1 %vm133_vm0, %v1473_v33  ;;  %v362_v43 = vsel %vm133_vm0, %v1477_v41, 0  ;;  %v1247_v59 = vld [vmem:[%s2160_s1] ss:$0 sm:$0xff]  ;;  %s1977_s1 = smov 0  }
  0x86   :  { %138 = vadd.xlane.f32.xlu0 %v137_v6  ;;  %144 = vadd.xlane.f32.xlu1 %v143_v7 }
  0x8c   :  { %1333 = vmatpush3.bf16.xpose.msra.mxu0 %v256_v34  ;;  %1345 = vmatpush3.bf16.xpose.msra.mxu1 %v356_v35 }
  0x8d   :  { %1428 = vmatprep.subr.msk.bf16.mxu0 %vm133_vm0, %v1474_v36  ;;  %1432 = vmatprep.subr.msk.bf16.mxu1 %vm133_vm0, %v1475_v37 }
  0x94   :  { %1335 = vmatpush3.bf16.xpose.msra.mxu0 %v259_v38  ;;  %1347 = vmatpush3.bf16.xpose.msra.mxu1 %v359_v39 }
  0x95   :  { %1429 = vmatprep.subr.msk.bf16.mxu0 %vm133_vm0, %v1476_v40  ;;  %1433 = vmatprep.subr.msk.bf16.mxu1 %vm133_vm0, %v1477_v41 }
  0x9c   :  { %1337 = vmatpush3.bf16.xpose.msra.mxu0 %v262_v42  ;;  %1349 = vmatpush3.bf16.xpose.msra.mxu1 %v362_v43  ;;  %v1263_v43 = vld [vmem:[#allocation17] ss:$0 sm:$0xff] }
  0x9d   :  { %1434 = vmatprep.subr.msk.bf16.mxu0 %vm133_vm0, %v1478_v44 }
 0x10f   :  { %v136_v11 = vpop.xlane.xlu0 %135  ;;  %v142_v12 = vpop.xlane.xlu1 %141 }
 0x110   :  { %v147_v13 = vmul.f32 0.015625, %v136_v11  ;;  %v149_v14 = vmul.f32 0.015625, %v142_v12 }
 0x112   :  { %v1919_v15 = vsub.f32 %v129_v0, %v147_v13  ;;  %v1921_v16 = vsub.f32 %v131_v1, %v149_v14  ;;  %v1248_v1 = vld [vmem:[%s2161_s2] ss:$0 sm:$0xff]  ;;  %v453_v13 = vsel %vm133_vm0, %v1478_v44, 0  ;;  %v1479_v14 = vld [vmem:[#allocation12 + $0x8] sm:$0xff]  }
 0x113   :  { %v139_v17 = vpop.xlane.xlu0 %138  ;;  %v145_v18 = vpop.xlane.xlu1 %144 }
 0x114   :  { %v148_v19 = vmul.f32 0.015625, %v139_v17  ;;  %v150_v20 = vmul.f32 0.015625, %v145_v18  ;;  %v155_v21 = vmul.f32 %v1919_v15, %v1919_v15  ;;  %v157_v22 = vmul.f32 %v1921_v16, %v1921_v16  ;;  %v1481_v18 = vld [vmem:[#allocation12 + $0x18] sm:$0xff]  }
 0x116   :  { %v152_v23 = vsub.f32 %v130_v2, %v148_v19  ;;  %v1927_v24 = vsub.f32 %v132_v5, %v150_v20  ;;  %v159_v25 = vsel %vm133_vm0, %v155_v21, 0.0  ;;  %v165_v26 = vsel %vm133_vm0, %v157_v22, 0.0  ;;  %v1249_v21 = vld [vmem:[#allocation14] ss:$0 sm:$0xff] }
 0x117   :  { %160 = vadd.xlane.f32.xlu0 %v159_v25  ;;  %v462_v19 = vsel %vm133_vm0, %v1481_v18, 0 }
 0x118   :  { %v156_v27 = vmul.f32 %v152_v23, %v152_v23  ;;  %v158_v28 = vmul.f32 %v1927_v24, %v1927_v24 }
 0x11a   :  { %v162_v29 = vsel %vm133_vm0, %v156_v27, 0.0  ;;  %v168_v30 = vsel %vm133_vm0, %v158_v28, 0.0 }
 0x11b   :  { %166 = vadd.xlane.f32.xlu0 %v165_v26  ;;  %163 = vadd.xlane.f32.xlu1 %v162_v29 }
 0x11f   :  { %169 = vadd.xlane.f32.xlu1 %v168_v30 }
 0x1a4   :  { %v161_v45 = vpop.xlane.xlu0 %160 }
 0x1a5   :  { %v171_v46 = vmul.f32 0.015625, %v161_v45 }
 0x1a7   :  { %v175_v47 = vadd.f32 1e-05, %v171_v46 }
 0x1a8   :  { %v164_v48 = vpop.xlane.xlu1 %163  ;;  %v167_v49 = vpop.xlane.xlu0 %166 }
 0x1a9   :  { %1482 = vrsqrt.f32 %v175_v47  ;;  %v172_v50 = vmul.f32 0.015625, %v164_v48  ;;  %v173_v51 = vmul.f32 0.015625, %v167_v49 }
 0x1ab   :  { %v176_v52 = vadd.f32 1e-05, %v172_v50  ;;  %v177_v53 = vadd.f32 1e-05, %v173_v51 }
 0x1ac   :  { %v170_v54 = vpop.xlane.xlu1 %169 }
 0x1ad   :  { %1484 = vrsqrt.f32 %v176_v52  ;;  %v174_v55 = vmul.f32 0.015625, %v170_v54 }
 0x1ae   :  { %1486 = vrsqrt.f32 %v177_v53 }
 0x1af   :  { %v178_v56 = vadd.f32 1e-05, %v174_v55 }
 0x1b1   :  { %1488 = vrsqrt.f32 %v178_v56 }
 0x1b3   :  { %v1483_v57 = vpop.eup %1482 }
 0x1b4   :  { %v183_v58 = vmul.f32 %v1483_v57, %v1919_v15  ;;  %v456_v15 = vsel %vm133_vm0, %v1479_v14, 0 }
 0x1b6   :  { %v194_v63 = vmul.f32 %v1247_v59, %v183_v58 }
 0x1b7   :  { %v1485_v60 = vpop.eup %1484 }
 0x1b8   :  { %v1487_v61 = vpop.eup %1486  ;;  %v184_v62 = vmul.f32 %v1485_v60, %v152_v23  ;;  %v205_v5 = vadd.f32 %v1248_v1, %v194_v63  ;;  %v1256_v23 = vld [vmem:[#allocation15] ss:$0 sm:$0xff] }
 0x1b9   :  { %v185_v0 = vmul.f32 %v1487_v61, %v1921_v16  ;;  %v1480_v16 = vld [vmem:[#allocation12 + $0x10] sm:$0xff]  }
 0x1ba   :  { %v195_v2 = vmul.f32 %v1247_v59, %v184_v62  ;;  %v459_v17 = vsel %vm133_vm0, %v1480_v16, 0 }
 0x1bb   :  { %v1489_v3 = vpop.eup %1488  ;;  %v196_v7 = vmul.f32 %v1247_v59, %v185_v0 }
 0x1bc   :  { %v186_v4 = vmul.f32 %v1489_v3, %v1927_v24  ;;  %v206_v6 = vadd.f32 %v1248_v1, %v195_v2 }
 0x1bd   :  { %v207_v10 = vadd.f32 %v1248_v1, %v196_v7 }
 0x1be   :  { %v209_v8 = vpack.c.bf16 %v206_v6, %v205_v5  ;;  %v197_v9 = vmul.f32 %v1247_v59, %v186_v4 }
 0x1c0   :  { %1338 = vmatprep.mubr.msk.bf16.mxu0 %vm133_vm0, %v209_v8  ;;  %1350 = vmatprep.mubr.msk.bf16.mxu1 %vm133_vm0, %v209_v8  ;;  %v208_v11 = vadd.f32 %v1248_v1, %v197_v9 }
 0x1c2   :  { %v210_v12 = vpack.c.bf16 %v208_v11, %v207_v10 }
 0x1c4   :  { %1339 = vmatmul.mubr.msk.bf16.vlgmr.msra.gmra.mrb[0].mxu0 %vm133_vm0, %v210_v12  ;;  %1351 = vmatmul.mubr.msk.bf16.vlgmr.msra.gmra.mrb[0].mxu1 %vm133_vm0, %v210_v12 }
 0x1c5   :  { %1355 = vmatpush3.bf16.xpose.msra.mxu0 %v453_v13  ;;  %1362 = vmatprep.mubr.msk.bf16.mxu0 %vm133_vm0, %v209_v8 }
 0x1c6   :  { %1435 = vmatprep.subr.msk.bf16.mxu0 %vm133_vm0, %v1479_v14 }
 0x1cd   :  { %1357 = vmatpush3.bf16.xpose.msra.mxu0 %v456_v15 }
 0x1ce   :  { %1436 = vmatprep.subr.msk.bf16.mxu0 %vm133_vm0, %v1480_v16 }
 0x1d5   :  { %1359 = vmatpush3.bf16.xpose.msra.mxu0 %v459_v17 }
 0x1d6   :  { %1437 = vmatprep.subr.msk.bf16.mxu0 %vm133_vm0, %v1481_v18 }
 0x1dd   :  { %1361 = vmatpush3.bf16.xpose.msra.mxu0 %v462_v19 }
 0x1e4   :  { %1363 = vmatmul.mubr.msk.bf16.vlgmr.msra.gmra.mrb[4].mxu0 %vm133_vm0, %v210_v12 }
 0x297   :  { %v1340_v20 = vpop.f32.mrb[0].mxu0  ;;  %v1352_v22 = vpop.f32.mrb[0].mxu1 }
 0x298   :  { %v298_v24 = vpop.f32.mrb[1].mxu0  ;;  %v398_v25 = vpop.f32.mrb[1].mxu1  ;;  %v307_v28 = vadd.f32 %v1340_v20, %v1249_v21  ;;  %v407_v29 = vadd.f32 %v1352_v22, %v1256_v23 }
 0x299   :  { %v1341_v26 = vpop.f32.mrb[2].mxu0  ;;  %v1353_v27 = vpop.f32.mrb[2].mxu1  ;;  %v299_v34 = vadd.f32 %v1249_v21, %v298_v24  ;;  %v399_v35 = vadd.f32 %v1256_v23, %v398_v25 }
 0x29a   :  { %v310_v30 = vadd.f32 %v1341_v26, %v1249_v21  ;;  %v410_v31 = vadd.f32 %v1353_v27, %v1256_v23  ;;  %v301_v32 = vpop.f32.mrb[3].mxu0  ;;  %v401_v33 = vpop.f32.mrb[3].mxu1 }
 0x29b   :  { %v302_v36 = vadd.f32 %v1249_v21, %v301_v32  ;;  %v402_v37 = vadd.f32 %v1256_v23, %v401_v33 }
 0x29c   :  { %v314_v38 = vpack.c.bf16 %v310_v30, %v307_v28  ;;  %v414_v39 = vpack.c.bf16 %v410_v31, %v407_v29 }
 0x29d   :  { %v313_v40 = vpack.c.bf16 %v302_v36, %v299_v34  ;;  %v413_v41 = vpack.c.bf16 %v402_v37, %v399_v35 }
 0x29e   :  { %316 = vst.msk [vmem:[#allocation2 + $0x8] sm:$0xff] %vm133_vm0, %v314_v38  ;;  %416 = vst.msk [vmem:[#allocation3 + $0x8] sm:$0xff] %vm133_vm0, %v414_v39 }
 0x29f   :  { %315 = vst.msk [vmem:[#allocation2] sm:$0xff] %vm133_vm0, %v313_v40  ;;  %415 = vst.msk [vmem:[#allocation3] sm:$0xff] %vm133_vm0, %v413_v41 }
 0x2b7   :  { %v1364_v42 = vpop.f32.mrb[4].mxu0 }
 0x2b8   :  { %v498_v44 = vpop.f32.mrb[5].mxu0  ;;  %v507_v46 = vadd.f32 %v1364_v42, %v1263_v43 }
 0x2b9   :  { %v1365_v45 = vpop.f32.mrb[6].mxu0  ;;  %v499_v49 = vadd.f32 %v1263_v43, %v498_v44 }
 0x2ba   :  { %v510_v47 = vadd.f32 %v1365_v45, %v1263_v43  ;;  %v501_v48 = vpop.f32.mrb[7].mxu0 }
 0x2bb   :  { %v502_v50 = vadd.f32 %v1263_v43, %v501_v48 }
 0x2bc   :  { %v514_v51 = vpack.c.bf16 %v510_v47, %v507_v46 }
 0x2bd   :  { %v513_v52 = vpack.c.bf16 %v502_v50, %v499_v49 }
 0x2be   :  { %516 = vst.msk [vmem:[#allocation4 + $0x8] sm:$0xff] %vm133_vm0, %v514_v51 }
 0x2bf   :  { %515 = vst.msk [vmem:[#allocation4] sm:$0xff] %vm133_vm0, %v513_v52 }
 0x2c0 LB: > { %v1747_v53 = vmov 0.0   ;;  %vm1748_vm1 = vmmov 0   ;;  %s1270_s2 = sshll.u32 %s1734_s1, 4  ;;  %vm537_vm2 = vcmask 130048   ;;  %s1749_s13 = smov 112   ;;  %vm812_vm3 = vcmask 261248   ;;  %s1734_s1 = sphi %s1977_s1, %s522_s1  }
 0x2c1   : > { %1366 = vmatprep.subr.bf16.mxu0 %v1747_v53  ;;  %1368 = vmatprep.mubr.msk.bf16.mxu0 %vm1748_vm1, %v1747_v53  ;;  %s524_s12 = sshra.s32 %s1270_s2, 4  ;;  %s1750_s4 = smov 96   ;;  %vm958_vm4 = vcmask 392448   ;;  %vm1104_vm5 = vcmask 523648  }
 0x2c2   : > { %1372 = vmatprep.subr.bf16.mxu1 %v1747_v53  ;;  %1374 = vmatprep.mubr.msk.bf16.mxu1 %vm1748_vm1, %v1747_v53  ;;  %s1989_s14 = sshll.u32 %s524_s12, 3  ;;  %s1751_s27 = smov 80  }
 0x2c3   : > { %s532_s17 = scalar_lea.vmem [#allocation3], %s1989_s14  ;;  %s527_s5 = scalar_lea.vmem [#allocation2], %s1989_s14 }
 0x2c4   : > { %v533_v54 = vld [vmem:[%s532_s17] sm:$0xff]  ;;  %s535_s28 = scalar_lea.vmem [#allocation4], %s1989_s14  ;;  %s1752_s16 = smov 16  }
 0x2c5   : > { %v542_v55 = vsel %vm537_vm2, %v533_v54, 0  ;;  %v528_v56 = vld [vmem:[%s527_s5] sm:$0xff]  ;;  %675 = vrot.lane.b32.xlu1 %v533_v54, %s1749_s13  ;;  %s2102_s20 = scalar_lea.vmem [#allocation5], %s1989_s14  ;;  %s1753_s22 = smov 32  }
 0x2c6   : > { %1367 = vmatpush3.bf16.xpose.msra.mxu0 %v542_v55  ;;  %v2006_v63 = vld [vmem:[%s535_s28] sm:$0xff]  ;;  %s1754_s23 = smov 48   ;;  %s522_s1 = sadd.s32 1, %s1734_s1  }
 0x2c7   : > { %1384 = vmatprep.subr.bf16.mxu0 %v1747_v53  ;;  %1373 = vmatpush3.bf16.msra.mxu1 %v2006_v63  ;;  %p519_p0 = scmp.ge.s32.totalorder %s522_s1, 2  }
 0x2c8   : > { %1378 = vmatprep.subr.bf16.mxu1 %v1747_v53  ;;  %s1755_s29 = smov (%p519_p0), [#allocation18]  }
 0x2c9   : > { %672 = vrot.lane.b32.xlu1 %v528_v56, %s1749_s13  ;;  %s1219_s30 = sshll.u32 (%p519_p0), %s1755_s29, 4  ;;  %s1220_s30 = int_to_ptr.vmem [resolvable:$true] %s1219_s30 }
 0x2ca   :  { %p1701_p2 = scmp.lt.s32.totalorder (%p519_p0), %s1220_s30, %s1220_s30 }
 0x2cd   : > { %1369 = vmatmul.mubr.msk.bf16.vlgmr.msra.gmra.mrb[0].mxu0 %vm537_vm2, %v528_v56  ;;  %818 = vrot.lane.b32.xlu1 %v528_v56, %s1750_s4 }
 0x2ce   : > { %1386 = vmatprep.mubr.msk.bf16.mxu0 %vm1748_vm1, %v1747_v53 }
 0x2d1   : > { %967 = vrot.lane.b32.xlu1 %v533_v54, %s1751_s27 }
 0x2d5   : > { %964 = vrot.lane.b32.xlu1 %v528_v56, %s1751_s27 }
 0x337   : > { %v676_v6 = vpop.permute.xlu1 %675 }
 0x338   : > { %v681_v9 = vsel %vm537_vm2, %v676_v6, 0 }
 0x33b   : > { %v673_v11 = vpop.permute.xlu1 %672 }
 0x33f   : > { %v819_v13 = vpop.permute.xlu1 %818 }
 0x343   : > { %v968_v15 = vpop.permute.xlu1 %967 }
 0x344   : > { %v973_v16 = vsel %vm537_vm2, %v968_v15, 0 }
 0x347   : > { %v965_v17 = vpop.permute.xlu1 %964 }
 0x3a0   : > { %v578_v57 = vpop.f32.mrb[0].mxu0 }
 0x3a1   : > { %v1370_v58 = vpop.f32.mrb[1].mxu0  ;;  %v585_v59 = vsel %vm537_vm2, %v578_v57, -inf }
 0x3a2   : > { %586 = vmax.xlane.f32.xlu0 %v585_v59  ;;  %v581_v60 = vpop.f32.mrb[2].mxu0 }
 0x3a3   : > { %v1371_v61 = vpop.f32.mrb[3].mxu0  ;;  %v588_v62 = vsel %vm537_vm2, %v581_v60, -inf }
 0x3a6   : > { %589 = vmax.xlane.f32.xlu0 %v588_v62 }
 0x3bc   : > { %821 = vrot.lane.b32.xlu0 %v533_v54, %s1750_s4 }
 0x42f   : > { %v587_v0 = vpop.xlane.xlu0 %586 }
 0x430   : > { %v597_v1 = vsub.f32 %v578_v57, %v587_v0  ;;  %v591_v18 = vsub.f32 -inf, %v587_v0 }
 0x432   : > { %v599_v3 = vmul.f32 1.442695, %v597_v1  ;;  %v593_v20 = vmul.f32 1.442695, %v591_v18 }
 0x433   : > { %v590_v2 = vpop.xlane.xlu0 %589 }
 0x434   : > { %v598_v4 = vsub.f32 %v581_v60, %v590_v2  ;;  %1490 = vpow2.f32 %v599_v3  ;;  %v592_v19 = vsub.f32 -inf, %v590_v2 }
 0x436   : > { %v601_v5 = vmul.f32 1.442695, %v598_v4  ;;  %v595_v21 = vmul.f32 1.442695, %v592_v19 }
 0x437   : > { %v822_v12 = vpop.permute.xlu0 %821 }
 0x438   : > { %1492 = vpow2.f32 %v601_v5  ;;  %v827_v14 = vsel %vm537_vm2, %v822_v12, 0 }
 0x439   : > { %1494 = vpow2.f32 %v593_v20 }
 0x43a   : > { %1496 = vpow2.f32 %v595_v21 }
 0x43e   : > { %v2011_v7 = vpop.eup %1490 }
 0x43f   : > { %v605_v18 = vsel %vm537_vm2, %v2011_v7, 0.0 }
 0x442   : > { %v2013_v8 = vpop.eup %1492 }
 0x443   : > { %v613_v10 = vpack.c.bf16 %v2013_v8, %v2011_v7  ;;  %v1495_v22 = vpop.eup %1494 }
 0x444   : > { %v1497_v23 = vpop.eup %1496  ;;  %v2032_v24 = vmul.f32 0.0, %v1495_v22 }
 0x445   : > { %1375 = vmatmul.mubr.msk.bf16.vlgmr.msra.gmra.mrb[0].mxu1 %vm537_vm2, %v613_v10  ;;  %v2037_v28 = vmul.f32 0.0, %v1497_v23 }
 0x446   : > { %1379 = vmatpush3.bf16.xpose.msra.mxu1 %v681_v9  ;;  %1380 = vmatprep.mubr.msk.bf16.mxu1 %vm1748_vm1, %v1747_v53 }
 0x447   : > { %1390 = vmatprep.subr.bf16.mxu1 %v1747_v53 }
 0x44d   : > { %1381 = vmatmul.mubr.msk.bf16.vlgmr.msra.gmra.mrb[4].mxu1 %vm537_vm2, %v673_v11 }
 0x44e   : > { %1391 = vmatpush3.bf16.xpose.msra.mxu1 %v827_v14  ;;  %1392 = vmatprep.mubr.msk.bf16.mxu1 %vm1748_vm1, %v1747_v53 }
 0x44f   : > { %1402 = vmatprep.subr.bf16.mxu1 %v1747_v53 }
 0x455   : > { %1393 = vmatmul.mubr.msk.bf16.vlgmr.msra.gmra.mrb[8].mxu1 %vm537_vm2, %v819_v13 }
 0x456   : > { %1403 = vmatpush3.bf16.xpose.msra.mxu1 %v973_v16  ;;  %1404 = vmatprep.mubr.msk.bf16.mxu1 %vm1748_vm1, %v1747_v53 }
 0x45d   : > { %1405 = vmatmul.mubr.msk.bf16.vlgmr.msra.gmra.mrb[12].mxu1 %vm537_vm2, %v965_v17 }
 0x518   : > { %v651_v25 = vpop.f32.mrb[0].mxu1 }
 0x519   : > { %v2035_v26 = vadd.f32 %v651_v25, %v2032_v24  ;;  %v1376_v27 = vpop.f32.mrb[1].mxu1 }
 0x51a   : > { %v654_v29 = vpop.f32.mrb[2].mxu1 }
 0x51b   : > { %v2040_v30 = vadd.f32 %v654_v29, %v2037_v28  ;;  %v1377_v31 = vpop.f32.mrb[3].mxu1 }
 0x520   : > { %v717_v32 = vpop.f32.mrb[4].mxu1 }
 0x521   : > { %v1382_v33 = vpop.f32.mrb[5].mxu1  ;;  %v724_v34 = vsel %vm537_vm2, %v717_v32, -inf }
 0x522   : > { %725 = vmax.xlane.f32.xlu1 %v724_v34  ;;  %v720_v35 = vpop.f32.mrb[6].mxu1 }
 0x523   : > { %v1383_v36 = vpop.f32.mrb[7].mxu1  ;;  %v727_v37 = vsel %vm537_vm2, %v720_v35, -inf }
 0x524   : > { %728 = vmax.xlane.f32.xlu0 %v727_v37 }
 0x528   : > { %v863_v38 = vpop.f32.mrb[8].mxu1 }
 0x529   : > { %v1394_v39 = vpop.f32.mrb[9].mxu1  ;;  %v870_v40 = vsel %vm537_vm2, %v863_v38, -inf }
 0x52a   : > { %871 = vmax.xlane.f32.xlu1 %v870_v40  ;;  %v866_v41 = vpop.f32.mrb[10].mxu1 }
 0x52b   : > { %v1395_v42 = vpop.f32.mrb[11].mxu1  ;;  %v873_v43 = vsel %vm537_vm2, %v866_v41, -inf }
 0x52e   : > { %874 = vmax.xlane.f32.xlu1 %v873_v43 }
 0x530   : > { %v1009_v44 = vpop.f32.mrb[12].mxu1 }
 0x531   : > { %v1016_v45 = vsel %vm537_vm2, %v1009_v44, -inf  ;;  %v1406_v46 = vpop.f32.mrb[13].mxu1 }
 0x532   : > { %1017 = vmax.xlane.f32.xlu0 %v1016_v45  ;;  %v1012_v47 = vpop.f32.mrb[14].mxu1 }
 0x533   : > { %v1407_v48 = vpop.f32.mrb[15].mxu1  ;;  %v1019_v49 = vsel %vm537_vm2, %v1012_v47, -inf }
 0x53f   : > { %900 = vrot.lane.b32.xlu1 %v2006_v63, %s1750_s4 }
 0x548   : > { %754 = vrot.lane.b32.xlu0 %v2006_v63, %s1749_s13 }
 0x563   : > { %1020 = vmax.xlane.f32.xlu1 %v1019_v49 }
 0x574   : > { %1046 = vrot.lane.b32.xlu1 %v2006_v63, %s1751_s27 }
 0x5af   : > { %v2054_v50 = vpop.xlane.xlu1 %725 }
 0x5b0   : > { %v736_v51 = vsub.f32 %v717_v32, %v2054_v50 }
 0x5b1   : > { %v2057_v52 = vpop.xlane.xlu0 %728 }
 0x5b2   : > { %v738_v54 = vmul.f32 1.442695, %v736_v51  ;;  %v737_v55 = vsub.f32 %v720_v35, %v2057_v52  ;;  %v730_v35 = vsub.f32 -inf, %v2054_v50  ;;  %v731_v36 = vsub.f32 -inf, %v2057_v52 }
 0x5b4   : > { %v740_v56 = vmul.f32 1.442695, %v737_v55  ;;  %1498 = vpow2.f32 %v738_v54  ;;  %v732_v37 = vmul.f32 1.442695, %v730_v35 }
 0x5b6   : > { %1500 = vpow2.f32 %v740_v56 }
 0x5b7   : > { %v2060_v57 = vpop.xlane.xlu1 %871 }
 0x5b8   : > { %v882_v58 = vsub.f32 %v863_v38, %v2060_v57  ;;  %v734_v38 = vmul.f32 1.442695, %v731_v36 }
 0x5ba   : > { %v884_v59 = vmul.f32 1.442695, %v882_v58 }
 0x5bb   : > { %v2063_v60 = vpop.xlane.xlu1 %874 }
 0x5bc   : > { %v883_v61 = vsub.f32 %v866_v41, %v2063_v60  ;;  %1502 = vpow2.f32 %v884_v59  ;;  %v877_v39 = vsub.f32 -inf, %v2063_v60 }
 0x5be   : > { %v886_v62 = vmul.f32 1.442695, %v883_v61  ;;  %v1499_v63 = vpop.eup %1498  ;;  %v880_v42 = vmul.f32 1.442695, %v877_v39 }
 0x5bf   : > { %v2066_v0 = vpop.xlane.xlu0 %1017  ;;  %v744_v2 = vsel %vm537_vm2, %v1499_v63, 0.0  ;;  %v901_v11 = vpop.permute.xlu1 %900 }
 0x5c0   : > { %v1028_v1 = vsub.f32 %v1009_v44, %v2066_v0  ;;  %v1501_v3 = vpop.eup %1500  ;;  %1504 = vpow2.f32 %v886_v62  ;;  %745 = vadd.xlane.f32.xlu0 %v744_v2 }
 0x5c1   : > { %v747_v5 = vsel %vm537_vm2, %v1501_v3, 0.0  ;;  %v752_v6 = vpack.c.bf16 %v1501_v3, %v1499_v63 }
 0x5c2   : > { %v1030_v4 = vmul.f32 1.442695, %v1028_v1  ;;  %748 = vadd.xlane.f32.xlu1 %v747_v5 }
 0x5c3   : > { %v755_v9 = vpop.permute.xlu0 %754 }
 0x5c4   : > { %1385 = vmatpush3.bf16.msra.mxu0 %v755_v9  ;;  %1506 = vpow2.f32 %v1030_v4 }
 0x5c5   : > { %1396 = vmatprep.subr.bf16.mxu0 %v1747_v53 }
 0x5c6   : > { %v1503_v10 = vpop.eup %1502 }
 0x5c7   : > { %1387 = vmatmul.mubr.msk.bf16.vlgmr.msra.gmra.mrb[4].mxu0 %vm537_vm2, %v752_v6  ;;  %v890_v12 = vsel %vm537_vm2, %v1503_v10, 0.0 }
 0x5c8   : > { %1397 = vmatpush3.bf16.msra.mxu0 %v901_v11  ;;  %1398 = vmatprep.mubr.msk.bf16.mxu0 %vm1748_vm1, %v1747_v53 }
 0x5c9   : > { %891 = vadd.xlane.f32.xlu0 %v890_v12  ;;  %1408 = vmatprep.subr.bf16.mxu0 %v1747_v53 }
 0x5ca   : > { %v1505_v13 = vpop.eup %1504 }
 0x5cb   : > { %v893_v14 = vsel %vm537_vm2, %v1505_v13, 0.0  ;;  %v898_v15 = vpack.c.bf16 %v1505_v13, %v1503_v10 }
 0x5cd   : > { %894 = vadd.xlane.f32.xlu0 %v893_v14 }
 0x5ce   : > { %v1507_v16 = vpop.eup %1506 }
 0x5cf   : > { %1399 = vmatmul.mubr.msk.bf16.vlgmr.msra.gmra.mrb[8].mxu0 %vm537_vm2, %v898_v15  ;;  %v1036_v17 = vsel %vm537_vm2, %v1507_v16, 0.0 }
 0x5d0   : > { %1410 = vmatprep.mubr.msk.bf16.mxu0 %vm1748_vm1, %v1747_v53  ;;  %1037 = vadd.xlane.f32.xlu1 %v1036_v17  ;;  %v608_v53 = vsel %vm537_vm2, %v2013_v8, 0.0  ;;  %v876_v8 = vsub.f32 -inf, %v2060_v57 }
 0x5d2   : > { %v878_v41 = vmul.f32 1.442695, %v876_v8 }
 0x5d4   : > { %606 = vadd.xlane.f32.xlu1 %v605_v18 }
 0x5f0   : > { %v2084_v19 = vpop.xlane.xlu1 %1020 }
 0x5f1   : > { %v1029_v20 = vsub.f32 %v1012_v47, %v2084_v19 }
 0x5f3   : > { %v1032_v21 = vmul.f32 1.442695, %v1029_v20 }
 0x5f4   : > { %v1047_v22 = vpop.permute.xlu1 %1046 }
 0x5f5   : > { %1409 = vmatpush3.bf16.msra.mxu0 %v1047_v22  ;;  %1508 = vpow2.f32 %v1032_v21  ;;  %v1022_v22 = vsub.f32 -inf, %v2066_v0 }
 0x5ff   : > { %v1509_v23 = vpop.eup %1508 }
 0x600   : > { %v1039_v25 = vsel %vm537_vm2, %v1509_v23, 0.0  ;;  %v1044_v27 = vpack.c.bf16 %v1509_v23, %v1507_v16  ;;  %v1023_v23 = vsub.f32 -inf, %v2084_v19 }
 0x601   : > { %1040 = vadd.xlane.f32.xlu0 %v1039_v25  ;;  %v1024_v25 = vmul.f32 1.442695, %v1022_v22 }
 0x602   : > { %1411 = vmatmul.mubr.msk.bf16.vlgmr.msra.gmra.mrb[12].mxu0 %vm537_vm2, %v1044_v27  ;;  %v1026_v27 = vmul.f32 1.442695, %v1023_v23 }
 0x605   : > { %609 = vadd.xlane.f32.xlu0 %v608_v53 }
 0x64d   : > { %v746_v40 = vpop.xlane.xlu0 %745 }
 0x64f   : > { %v749_v7 = vpop.xlane.xlu1 %748 }
 0x65d   : > { %v2091_v29 = vpop.xlane.xlu1 %1037 }
 0x661   : > { %v607_v31 = vpop.xlane.xlu1 %606 }
 0x662   : > { %v611_v32 = vadd.f32 %v607_v31, %v2032_v24  ;;  %v892_v24 = vpop.xlane.xlu0 %891 }
 0x664   : > { %1510 = vrcp.f32 %v611_v32 }
 0x665   : > { %1512 = vpow2.f32 %v732_v37 }
 0x666   : > { %1514 = vpow2.f32 %v734_v38  ;;  %v895_v44 = vpop.xlane.xlu0 %894 }
 0x667   : > { %1516 = vpow2.f32 %v878_v41 }
 0x668   : > { %1518 = vpow2.f32 %v880_v42 }
 0x66e   : > { %v1511_v33 = vpop.eup %1510 }
 0x66f   : > { %v662_v34 = vmul.f32 %v1511_v33, %v2035_v26  ;;  %v1513_v43 = vpop.eup %1512 }
 0x670   : > { %v1515_v26 = vpop.eup %1514  ;;  %v742_v45 = vmul.f32 0.0, %v1513_v43 }
 0x671   : > { %v743_v47 = vmul.f32 0.0, %v1515_v26  ;;  %v1517_v50 = vpop.eup %1516  ;;  %v1538_v26 = vld [vmem:[%s2168_s9] sm:$0xff] (%p519_p0)  }
 0x672   : > { %v750_v46 = vadd.f32 %v746_v40, %v742_v45  ;;  %v1519_v51 = vpop.eup %1518  ;;  %v888_v54 = vmul.f32 0.0, %v1517_v50  ;;  %1438 = vmatprep.subr.msk.bf16.mxu0 (%p519_p0), %vm133_vm0, %v1538_v26  ;;  %v1541_v50 = vld [vmem:[%s2168_s9 + $0x18] sm:$0xff] (%p519_p0)  }
 0x673   : > { %v751_v49 = vadd.f32 %v749_v7, %v743_v47  ;;  %v889_v57 = vmul.f32 0.0, %v1519_v51  ;;  %v1159_v51 = vsel (%p519_p0), %vm133_vm0, %v1541_v50, 0 }
 0x674   : > { %1520 = vrcp.f32 %v750_v46  ;;  %v896_v56 = vadd.f32 %v892_v24, %v888_v54 }
 0x675   : > { %1522 = vrcp.f32 %v751_v49  ;;  %v897_v58 = vadd.f32 %v895_v44, %v889_v57  ;;  %v1539_v44 = vld [vmem:[%s2168_s9 + $0x8] sm:$0xff] (%p519_p0)  }
 0x67e   : > { %v1521_v62 = vpop.eup %1520 }
 0x67f   : > { %v1523_v4 = vpop.eup %1522 }
 0x68e   : > { %v1041_v48 = vpop.xlane.xlu0 %1040 }
 0x692   : > { %v610_v52 = vpop.xlane.xlu0 %609 }
 0x693   : > { %v612_v55 = vadd.f32 %v610_v52, %v2037_v28 }
 0x695   : > { %1524 = vrcp.f32 %v612_v55 }
 0x696   : > { %1526 = vrcp.f32 %v896_v56 }
 0x697   : > { %1528 = vrcp.f32 %v897_v58 }
 0x698   : > { %1530 = vpow2.f32 %v1024_v25 }
 0x699   : > { %1532 = vpow2.f32 %v1026_v27 }
 0x69a   : > { %v794_v59 = vpop.f32.mrb[4].mxu0 }
 0x69b   : > { %v801_v60 = vadd.f32 %v794_v59, %v742_v45  ;;  %v1388_v61 = vpop.f32.mrb[5].mxu0  ;;  %v1150_v45 = vsel (%p519_p0), %vm133_vm0, %v1538_v26, 0 }
 0x69c   : > { %v797_v63 = vpop.f32.mrb[6].mxu0  ;;  %1415 = vmatpush3.bf16.xpose.msra.mxu0 (%p519_p0), %v1150_v45 }
 0x69d   : > { %v805_v1 = vmul.f32 %v1521_v62, %v801_v60  ;;  %v802_v2 = vadd.f32 %v797_v63, %v743_v47  ;;  %v1389_v3 = vpop.f32.mrb[7].mxu0  ;;  %1439 = vmatprep.subr.msk.bf16.mxu0 (%p519_p0), %vm133_vm0, %v1539_v44  ;;  %v1153_v47 = vsel (%p519_p0), %vm133_vm0, %v1539_v44, 0 }
 0x69f   : > { %v806_v5 = vmul.f32 %v1523_v4, %v802_v2  ;;  %v1525_v6 = vpop.eup %1524 }
 0x6a0   : > { %v663_v28 = vmul.f32 %v1525_v6, %v2040_v30  ;;  %v1527_v14 = vpop.eup %1526 }
 0x6a1   : > { %v807_v9 = vpack.c.bf16 %v806_v5, %v805_v1  ;;  %v1529_v20 = vpop.eup %1528 }
 0x6a2   : > { %v940_v10 = vpop.f32.mrb[8].mxu0  ;;  %v664_v13 = vpack.c.bf16 %v663_v28, %v662_v34  ;;  %v1531_v53 = vpop.eup %1530 }
 0x6a3   : > { %v947_v11 = vadd.f32 %v940_v10, %v888_v54  ;;  %809 = vrot.lane.b32.xlu1 %v807_v9, %s1752_s16  ;;  %v1400_v12 = vpop.f32.mrb[9].mxu0  ;;  %v1533_v7 = vpop.eup %1532  ;;  %v1034_v31 = vmul.f32 0.0, %v1531_v53  ;;  %v1283_v54 = vld [vmem:[%s2169_s10] ss:$0 sm:$0xff] (%p519_p0) }
 0x6a4   : > { %v943_v15 = vpop.f32.mrb[10].mxu0  ;;  %667 = vst.msk [vmem:[%s2102_s20] sm:$0xff] %vm537_vm2, %v664_v13  ;;  %v1035_v33 = vmul.f32 0.0, %v1533_v7  ;;  %1417 = vmatpush3.bf16.xpose.msra.mxu0 (%p519_p0), %v1153_v47 }
 0x6a5   : > { %v951_v16 = vmul.f32 %v1527_v14, %v947_v11  ;;  %v948_v17 = vadd.f32 %v943_v15, %v889_v57  ;;  %v1401_v18 = vpop.f32.mrb[11].mxu0  ;;  %v1042_v32 = vadd.f32 %v2091_v29, %v1034_v31 }
 0x6a6   : > { %v1043_v34 = vadd.f32 %v1041_v48, %v1035_v33  ;;  %v1540_v48 = vld [vmem:[%s2168_s9 + $0x10] sm:$0xff] (%p519_p0)   ;;  %s1696_s9 = scalar_lea.vmem (%p519_p0), %s1220_s30, 512 }
 0x6a7   : > { %v952_v21 = vmul.f32 %v1529_v20, %v948_v17  ;;  %1534 = vrcp.f32 %v1042_v32  ;;  %1440 = vmatprep.subr.msk.bf16.mxu0 (%p519_p0), %vm133_vm0, %v1540_v48  ;;  %v1156_v49 = vsel (%p519_p0), %vm133_vm0, %v1540_v48, 0  ;;  %p1697_p1 = scmp.ne.s32.totalorder (%p519_p0), %s1220_s30, %s1696_s9  ;;  %p1702_p3 = scmp.lt.s32.totalorder (%p519_p0), %s1696_s9, %s1696_s9 }
 0x6a8   : > { %1536 = vrcp.f32 %v1043_v34 }
 0x6a9   : > { %v953_v30 = vpack.c.bf16 %v952_v21, %v951_v16  ;;  %p1703_p4 = por (%p519_p0), %p1702_p3, %p1701_p2 }
 0x6ab   : > { %955 = vrot.lane.b32.xlu0 %v953_v30, %s1753_s22  ;;  %p1704_p5 = pnand (%p519_p0), %p1703_p4, %p1697_p1 }
 0x6ac   :  { %1419 = vmatpush3.bf16.xpose.msra.mxu0 (%p519_p0), %v1156_v49 }
 0x6ad   :  { %1441 = vmatprep.subr.msk.bf16.mxu0 (%p519_p0), %vm133_vm0, %v1541_v50 }
 0x6b1   : > { %v1535_v0 = vpop.eup %1534 }
 0x6b2   : > { %v1537_v40 = vpop.eup %1536 }
 0x6b4   :  { %1421 = vmatpush3.bf16.xpose.msra.mxu0 (%p519_p0), %v1159_v51 }
 0x6d5   : > { %v1086_v35 = vpop.f32.mrb[12].mxu0 }
 0x6d6   : > { %v1093_v36 = vadd.f32 %v1086_v35, %v1034_v31  ;;  %v1412_v37 = vpop.f32.mrb[13].mxu0 }
 0x6d7   : > { %v1089_v19 = vpop.f32.mrb[14].mxu0 }
 0x6d8   : > { %v1097_v38 = vmul.f32 %v1535_v0, %v1093_v36  ;;  %v1094_v8 = vadd.f32 %v1089_v19, %v1035_v33  ;;  %v1413_v39 = vpop.f32.mrb[15].mxu0 }
 0x6da   : > { %v1098_v41 = vmul.f32 %v1537_v40, %v1094_v8 }
 0x6dc   : > { %v1099_v42 = vpack.c.bf16 %v1098_v41, %v1097_v38 }
 0x6de   : > { %1101 = vrot.lane.b32.xlu1 %v1099_v42, %s1754_s23 }
 0x715   : > { %v810_v29 = vpop.permute.xlu1 %809 }
 0x716   : > { %813 = vst.msk [vmem:[%s2102_s20] sm:$0xff] %vm812_vm3, %v810_v29 }
 0x71d   : > { %v956_v24 = vpop.permute.xlu0 %955 }
 0x71e   : > { %959 = vst.msk [vmem:[%s2102_s20] sm:$0xff] %vm958_vm4, %v956_v24 }
 0x74b   :  { %521 = sbr.rel (!%p519_p0) target bundleno = 704 (0x2c0), region = 103 }
 0x750   : > { %v1102_v43 = vpop.permute.xlu1 %1101 }
 0x751   : > { %1105 = vst.msk [vmem:[%s2102_s20] sm:$0xff] %vm1104_vm5, %v1102_v43 }
 0x758   :  { %v1106_v46 = vld [vmem:[#allocation5] sm:$0xff]  ;;  %v1107_v52 = vld [vmem:[#allocation5 + $0x8] sm:$0xff] }
 0x759   :  { %1422 = vmatprep.mubr.msk.bf16.mxu0 %vm133_vm0, %v1106_v46 }
 0x75a   :  { %1423 = vmatmul.mubr.msk.bf16.vlgmr.msra.gmra.mrb[0].mxu0 %vm133_vm0, %v1107_v52 }
 0x82d   :  { %v1424_v55 = vpop.f32.mrb[0].mxu0 }
 0x82e   :  { %v1204_v56 = vadd.f32 %v1424_v55, %v1283_v54  ;;  %v1195_v57 = vpop.f32.mrb[1].mxu0 }
 0x82f   :  { %v1196_v58 = vadd.f32 %v1283_v54, %v1195_v57  ;;  %v1425_v59 = vpop.f32.mrb[2].mxu0 }
 0x830   :  { %1212 = vst.msk [vmem:[#allocation18 + $0x10] sm:$0xff] %vm133_vm0, %v1204_v56  ;;  %v1207_v60 = vadd.f32 %v1425_v59, %v1283_v54  ;;  %v1198_v61 = vpop.f32.mrb[3].mxu0 }
 0x831   :  { %1210 = vst.msk [vmem:[#allocation18] sm:$0xff] %vm133_vm0, %v1196_v58  ;;  %v1199_v62 = vadd.f32 %v1283_v54, %v1198_v61 }
 0x832   :  { %1213 = vst.msk [vmem:[#allocation18 + $0x18] sm:$0xff] %vm133_vm0, %v1207_v60 }
 0x833   :  { %1211 = vst.msk [vmem:[#allocation18 + $0x8] sm:$0xff] %vm133_vm0, %v1199_v62 }
 0x834   :  { %1707 = shalt.err (!%p1704_p5)
}
 0x835   :  { %s1708_s2 = scalar_lea.hbm %s2170_s11, 512 }
 0x836   :  { %p1709_p6 = scmp.ne.s32.totalorder %s2170_s11, %s1708_s2  ;;  %p1712_p7 = scmp.lt.u32.totalorder %s1708_s2, %s2170_s11 }
 0x838   :  { %p1714_p8 = pnand %p1712_p7, %p1709_p6 }
 0x83a   :  { %1717 = shalt.err (!%p1714_p8)
}
 0x83b   :  { %1225 = dma.vmem_to_hbm [thread:$0]  %s1220_s30, 512, %s2170_s11, [#allocation8], %s1742_s7, %s1742_s7, %s1743_s15  }
 0x83c   :  { %1730 = dma.done.wait [#allocation8], 512  }
 0x83d   :  { %1731 = vsyncadd [#allocation8], 4294966784 }
 0x83e   :  { %1229 = vsyncpa [#allocation7], 1 }
 0x83f   :  { %1230 = vsyncpa [#allocation10], 1 }
 0x840   :  { %1231 = vsyncpa [#allocation13], 1 }
 0x841   :  { %1232 = vsyncpa [#allocation16], 1 }
 0x842   :  { %1233 = vsyncpa [#allocation8], 1 }

</bundles_post_ra>
